<compile_context>
chip_gen: v6e
topology: v6e:2x2x1
jax: 0.10.0
libtpu: 0.0.40
codegen_flags: <defaults>
</compile_context>

<pallas_src>
import functools

import jax
import jax.numpy as jnp
from jax.experimental import pallas as pl
from jax.experimental.pallas import tpu as pltpu

PTS_CHANNEL = 63
DIR_CHANNEL = 27
OUTPUT_CHANNEL = 4
HIDDEN = 256
HIDDEN2 = 128
PAD_IN = 128    # pts in cols 0:63, dirs in cols 63:90, zeros elsewhere
PAD_OUT = 128   # rgb in cols 0:3, density in col 3, zeros elsewhere
N_XC = 3        # number of matmuls fed by the padded input (fused slab width 3*256)


# --------------------------------------------------------------------------- #
# Kernel
# --------------------------------------------------------------------------- #
def _nerf_kernel(
    compute_dtype,
    x_ref,            # [tm, 128]  compute dtype (pts | dirs | zero pad)
    wxc_ref,          # [128, 768] compute dtype (wr0 | wd0_pts | wg0_dirs)
    wslab_ref,        # [256, 2688] compute dtype (wr1..4|wd0_h|wd1..3|wfo|wg0_f|wrgb)
    wdo_ref,          # [1, 256]  f32 density-head row (VPU mul + XLU reduce)
    bdo_ref,          # [1, 1]    f32
    br0, br1, br2, br3, br4,
    bd0, bd1, bd2, bd3,
    bfo, bg0, brgb,
    out_ref,          # [tm, 128] f32
):
    f32 = jnp.float32
    cd = compute_dtype
    H = HIDDEN

    def wslab(j, width=H):  # static, lane-aligned column slice of the weight slab
        c = j * H
        return wslab_ref[:, c:c + width]

    def mm(a_f32, w):  # MXU matmul with f32 accumulation; cast only at boundary
        return jnp.dot(a_f32.astype(cd), w, preferred_element_type=f32)

    def lin_relu(a, w, b_ref):
        return jnp.maximum(mm(a, w) + b_ref[...], 0.0)

    xc = x_ref[...]  # already in compute dtype (cast done in the wrapper)

    # One fused K=128 MXU pass for the three matmuls that consume the padded
    # input.  Zero-padded weight rows annihilate the unused lanes -> exact.
    xw = jnp.dot(xc, wxc_ref[...], preferred_element_type=f32)   # [tm, 768]
    xr0 = xw[:, 0:H]          # residual layer 0 pre-activation
    xd0 = xw[:, H:2 * H]      # density layer 0: pts contribution
    xg0 = xw[:, 2 * H:3 * H]  # rgb layer 0: dirs contribution

    # residual block: Linear(63,256)+ReLU, 4 x Linear(256,256)+ReLU
    h = jnp.maximum(xr0 + br0[...], 0.0)
    h = lin_relu(h, wslab(0), br1)
    h = lin_relu(h, wslab(1), br2)
    h = lin_relu(h, wslab(2), br3)
    h = lin_relu(h, wslab(3), br4)

    # density block; layer 0 consumes cat([pts, h]) -> split matmul
    h2 = jnp.maximum(xd0 + mm(h, wslab(4)) + bd0[...], 0.0)
    h2 = lin_relu(h2, wslab(5), bd1)
    h2 = lin_relu(h2, wslab(6), bd2)
    h2 = lin_relu(h2, wslab(7), bd3)

    # density head: [tm,256]x[256,1] wastes a full MXU pass for one column;
    # compute it on the VPU (mul) + XLU (lane reduce) which have slack here.
    density = jnp.sum(h2 * wdo_ref[...], axis=-1, keepdims=True) + bdo_ref[...]

    feat = mm(h2, wslab(8)) + bfo[...]                                # [tm,256]

    # rgb block; layer 0 consumes cat([feature, dirs]) -> split matmul
    g = jnp.maximum(mm(feat, wslab(9)) + xg0 + bg0[...], 0.0)

    # folded rgb head ((wg1 @ wro), zero-padded to 128 lanes) -> lane-dense store
    rgb_pad = mm(g, wslab(10, PAD_OUT)) + brgb[...]                   # [tm,128]

    lane = jax.lax.broadcasted_iota(jnp.int32, rgb_pad.shape, 1)
    out_ref[...] = jnp.where(lane == OUTPUT_CHANNEL - 1, density, rgb_pad)


# --------------------------------------------------------------------------- #
# pl.Buffered(1) capability probe (once, cached; tiny dedicated kernel so a
# failure here can never mask a real error in the NeRF kernel)
# --------------------------------------------------------------------------- #
_BUFFERED1_SUPPORTED = None


def _buffered1_supported():
    global _BUFFERED1_SUPPORTED
    if _BUFFERED1_SUPPORTED is None:
        def _probe(w_ref, o_ref):
            o_ref[...] = w_ref[...] * 2.0
        try:
            w = jnp.ones((8, 128), jnp.float32)
            out = pl.pallas_call(
                _probe,
                out_shape=jax.ShapeDtypeStruct((16, 128), jnp.float32),
                grid=(2,),
                in_specs=[pl.BlockSpec((8, 128), lambda i: (0, 0),
                                       pipeline_mode=pl.Buffered(1))],
                out_specs=pl.BlockSpec((8, 128), lambda i: (i, 0)),
            )(w)
            jax.block_until_ready(out)
            _BUFFERED1_SUPPORTED = True
        except Exception:  # capability probe only; main kernel errors never land here
            _BUFFERED1_SUPPORTED = False
    return _BUFFERED1_SUPPORTED


# --------------------------------------------------------------------------- #
# Wrapper
# --------------------------------------------------------------------------- #
def _pick_tm(n, requested, *, min_grid=2, multiple=16):
    """Largest tile <= requested that divides n, is a multiple of 16 (bf16
    sublane packing) and, if possible, leaves >= min_grid grid steps so both
    v7x TensorCores get work via dimension_semantics=('parallel',)."""
    requested = max(int(requested), multiple)
    cands = [t for t in range(multiple, min(requested, n) + 1, multiple)
             if n % t == 0]
    if not cands:
        raise ValueError(f"N={n} must be a multiple of {multiple}")
    grid_ok = [t for t in cands if n // t >= min_grid]
    return max(grid_ok) if grid_ok else max(cands)


def _weight_spec(shape, single_buffer):
    if single_buffer:
        # Weights are constant across grid steps -> one VMEM buffer is enough.
        return pl.BlockSpec(shape, lambda i: (0, 0), pipeline_mode=pl.Buffered(1))
    return pl.BlockSpec(shape, lambda i: (0, 0))


def _run_pallas(x_pad, kparams, tm, single_buffer):
    n = x_pad.shape[0]
    kernel = functools.partial(_nerf_kernel, kparams[0].dtype)
    return pl.pallas_call(
        kernel,
        out_shape=jax.ShapeDtypeStruct((n, PAD_OUT), jnp.float32),
        grid=(n // tm,),
        in_specs=[pl.BlockSpec((tm, PAD_IN), lambda i: (i, 0))]
                 + [_weight_spec(p.shape, single_buffer) for p in kparams],
        out_specs=pl.BlockSpec((tm, PAD_OUT), lambda i: (i, 0)),
        compiler_params=pltpu.CompilerParams(
            dimension_semantics=("parallel",),        # megacore sharding of row tiles
            vmem_limit_bytes=48 * 1024 * 1024,        # headroom for tm=1024 tiles
        ),
    )(x_pad, *kparams)


@functools.partial(jax.jit, static_argnames=("sample_num", "tm", "single_buffer"))
def _nerf_forward_impl(x, kparams, *, sample_num, tm, single_buffer):
    n = x.shape[0]
    cd = kparams[0].dtype
    # Pad + cast to compute dtype here (fuses under jit; halves input DMA in bf16).
    x_pad = jnp.zeros((n, PAD_IN), cd).at[:, :x.shape[1]].set(x.astype(cd))
    out = _run_pallas(x_pad, kparams, tm, single_buffer)
    out = out[:, :OUTPUT_CHANNEL]
    return out.reshape(n // sample_num, sample_num, OUTPUT_CHANNEL)


def nerf_forward(x, kernel_params, sampling, *, tm=1024):
    """x: [N, 90] f32.  kernel_params: output of pack_kernel_params.
    Returns [N // sample_num, sample_num, 4] f32."""
    if sampling.lower() == "coarse":
        sample_num = 64
    elif sampling.lower() == "fine":
        sample_num = 128
    else:
        raise ValueError(sampling)

    n = x.shape[0]
    assert n % sample_num == 0
    tm_eff = _pick_tm(n, tm)
    return _nerf_forward_impl(x, tuple(kernel_params), sample_num=sample_num,
                              tm=tm_eff, single_buffer=_buffered1_supported())


# --------------------------------------------------------------------------- #
# Parameters (PyTorch-Linear-style init), packing, and pure-JAX reference
# --------------------------------------------------------------------------- #
def init_params(key):
    """Plain f32 parameters mirroring the PyTorch module structure."""
    def linear(k, fan_in, fan_out):
        kw, kb = jax.random.split(k)
        bound = fan_in ** -0.5
        w = jax.random.uniform(kw, (fan_in, fan_out), jnp.float32, -bound, bound)
        b = jax.random.uniform(kb, (1, fan_out), jnp.float32, -bound, bound)
        return w, b

    keys = iter(jax.random.split(key, 16))
    p = {}
    p["res"] = [linear(next(keys), PTS_CHANNEL, HIDDEN)]
    p["res"] += [linear(next(keys), HIDDEN, HIDDEN) for _ in range(4)]
    p["wd0"], p["bd0"] = linear(next(keys), PTS_CHANNEL + HIDDEN, HIDDEN)
    p["den"] = [linear(next(keys), HIDDEN, HIDDEN) for _ in range(3)]
    p["wdo"], p["bdo"] = linear(next(keys), HIDDEN, 1)
    p["wfo"], p["bfo"] = linear(next(keys), HIDDEN, HIDDEN)
    p["wg0"], p["bg0"] = linear(next(keys), HIDDEN + DIR_CHANNEL, HIDDEN)
    p["wg1"], p["bg1"] = linear(next(keys), HIDDEN, HIDDEN2)
    p["wro"], p["bro"] = linear(next(keys), HIDDEN2, 3)
    return p


def pack_kernel_params(p, compute_dtype=jnp.bfloat16):
    """Pad / split / fold / pack the f32 params into the kernel's argument order.

    Returns: [wxc(128,768), w256(256,2688), wdo(1,256), bdo(1,1),
              br0..br4, bd0..bd3, bfo, bg0, brgb]  (weights in compute_dtype,
              biases / density head in f32)."""
    cd = compute_dtype

    def pad_rows(w, rows, row_offset=0):
        out = jnp.zeros((rows, w.shape[1]), w.dtype)
        return out.at[row_offset:row_offset + w.shape[0]].set(w)

    def pad_cols(a, cols):
        out = jnp.zeros((a.shape[0], cols), a.dtype)
        return out.at[:, :a.shape[1]].set(a)

    # --- [128, 768] slab for the three matmuls fed by the padded input ---
    wr0, br0 = p["res"][0]
    wxc = jnp.concatenate([
        pad_rows(wr0, PAD_IN),                                        # residual layer 0
        pad_rows(p["wd0"][:PTS_CHANNEL], PAD_IN),                     # density l0: pts
        pad_rows(p["wg0"][HIDDEN:], PAD_IN, row_offset=PTS_CHANNEL),  # rgb l0: dirs
    ], axis=1).astype(cd)

    # --- [256, 2688] slab: wr1..wr4 | wd0_h | wd1..wd3 | wfo | wg0_f | wrgb ---
    wrgb = pad_cols(p["wg1"] @ p["wro"], PAD_OUT)     # folded rgb head, [256,128]
    w256 = jnp.concatenate(
        [w for w, _ in p["res"][1:]]
        + [p["wd0"][PTS_CHANNEL:]]
        + [w for w, _ in p["den"]]
        + [p["wfo"], p["wg0"][:HIDDEN], wrgb], axis=1).astype(cd)

    # density head as a broadcastable f32 row (VPU mul + lane reduce in-kernel)
    wdo_row = p["wdo"].reshape(1, HIDDEN)
    bdo = p["bdo"].reshape(1, 1)
    brgb = pad_cols(p["bg1"] @ p["wro"] + p["bro"], PAD_OUT)

    biases = ([br0] + [b for _, b in p["res"][1:]]
              + [p["bd0"]] + [b for _, b in p["den"]]
              + [p["bfo"], p["bg0"], brgb])
    return [wxc, w256, wdo_row, bdo] + biases


def nerf_reference(x, p):
    """Pure-JAX f32 reference mirroring the PyTorch forward (with real concats)."""
    relu = lambda v: jnp.maximum(v, 0.0)
    pts = x[:, :PTS_CHANNEL]
    dirs = x[:, PTS_CHANNEL:PTS_CHANNEL + DIR_CHANNEL]
    h = pts
    for w, b in p["res"]:
        h = relu(h @ w + b)
    feature = jnp.concatenate([pts, h], axis=1)
    h2 = relu(feature @ p["wd0"] + p["bd0"])
    for w, b in p["den"]:
        h2 = relu(h2 @ w + b)
    density = h2 @ p["wdo"] + p["bdo"]
    fo = h2 @ p["wfo"] + p["bfo"]
    g = relu(jnp.concatenate([fo, dirs], axis=1) @ p["wg0"] + p["bg0"])
    g = g @ p["wg1"] + p["bg1"]
    rgb = g @ p["wro"] + p["bro"]
    return jnp.concatenate([rgb, density], axis=1)


# --------------------------------------------------------------------------- #
# Test
# --------------------------------------------------------------------------- #
if __name__ == "__main__":
    key = jax.random.PRNGKey(0)
    k_x, k_p = jax.random.split(key)

    sample_num = 64            # 'coarse'
    n_rays = 2
    n = n_rays * sample_num    # 128 rows (small test; tm auto-shrinks, grid >= 2)
    x = jax.random.normal(k_x, (n, PTS_CHANNEL + DIR_CHANNEL), jnp.float32)

    params = init_params(k_p)
    ref = nerf_reference(x, params).reshape(n_rays, sample_num, OUTPUT_CHANNEL)

    # 1) exact f32 path: validates kernel structure (fused/split matmuls, padding,
    #    folded rgb head, VPU/XLU density head, lane-dense output).
    out_f32 = jax.block_until_ready(
        nerf_forward(x, pack_kernel_params(params, jnp.float32), "coarse"))
    assert out_f32.shape == (n_rays, sample_num, OUTPUT_CHANNEL)
    assert jnp.allclose(out_f32, ref, atol=1e-4, rtol=1e-4), "f32 kernel mismatch vs reference"

    # 2) bf16-matmul path (production config): loose tolerance vs the f32 reference.
    out_bf16 = jax.block_until_ready(
        nerf_forward(x, pack_kernel_params(params, jnp.bfloat16), "coarse"))
    assert out_bf16.shape == (n_rays, sample_num, OUTPUT_CHANNEL)
    err = float(jnp.max(jnp.abs(out_bf16 - ref)))
    assert err < 0.15, f"bf16 kernel deviates from f32 reference by {err}"

    print("KERNEL_OK")
</pallas_src>

<mosaic_0001>
module attributes {stable_mosaic.version = 11 : i64} {
  func.func @_probe(%arg0: i32, %arg1: memref<8x128xf32, #tpu.memory_space<vmem>>, %arg2: memref<8x128xf32, #tpu.memory_space<vmem>>) attributes {dimension_semantics = [#tpu.dimension_semantics<arbitrary>], iteration_bounds = array<i64: 2>, scalar_prefetch = 0 : i64, scratch_operands = 0 : i64, tpu.core_type = #tpu.core_type<tc>, window_params = [{pipeline_mode = #tpu.pipeline_mode<synchronous>, transform_indices = @transform_0, window_bounds = array<i64: 8, 128>}, {transform_indices = @transform_1, window_bounds = array<i64: 8, 128>}]} {
    %c0 = arith.constant 0 : index
    %c0_0 = arith.constant 0 : index
    %0 = vector.load %arg1[%c0, %c0_0] : memref<8x128xf32, #tpu.memory_space<vmem>>, vector<8x128xf32>
    %cst = arith.constant 2.000000e+00 : f32
    %1 = vector.broadcast %cst : f32 to vector<8x128xf32>
    %2 = arith.mulf %0, %1 : vector<8x128xf32>
    %c0_1 = arith.constant 0 : index
    %c0_2 = arith.constant 0 : index
    %3 = vector.load %arg2[%c0_1, %c0_2] : memref<8x128xf32, #tpu.memory_space<vmem>>, vector<8x128xf32>
    tpu.vector_store %arg2[%c0_1, %c0_2], %2 {strides = array<i32>} : memref<8x128xf32, #tpu.memory_space<vmem>>, vector<8x128xf32>,
    return
  }
  func.func @transform_0(%arg0: i32) -> (i32, i32) {
    %c0_i32 = arith.constant 0 : i32
    %c0_i32_0 = arith.constant 0 : i32
    %c0_i32_1 = arith.constant 0 : i32
    return %c0_i32, %c0_i32_0 : i32, i32
  }
  func.func @transform_1(%arg0: i32) -> (i32, i32) {
    %c0_i32 = arith.constant 0 : i32
    %c0_i32_0 = arith.constant 0 : i32
    return %arg0, %c0_i32 : i32, i32
  }
}

module attributes {stable_mosaic.version = 11 : i64} {
  func.func @_nerf_kernel(%arg0: i32, %arg1: memref<64x128xf32, #tpu.memory_space<vmem>>, %arg2: memref<128x768xf32, #tpu.memory_space<vmem>>, %arg3: memref<256x2688xf32, #tpu.memory_space<vmem>>, %arg4: memref<1x256xf32, #tpu.memory_space<vmem>>, %arg5: memref<1x1xf32, #tpu.memory_space<vmem>>, %arg6: memref<1x256xf32, #tpu.memory_space<vmem>>, %arg7: memref<1x256xf32, #tpu.memory_space<vmem>>, %arg8: memref<1x256xf32, #tpu.memory_space<vmem>>, %arg9: memref<1x256xf32, #tpu.memory_space<vmem>>, %arg10: memref<1x256xf32, #tpu.memory_space<vmem>>, %arg11: memref<1x256xf32, #tpu.memory_space<vmem>>, %arg12: memref<1x256xf32, #tpu.memory_space<vmem>>, %arg13: memref<1x256xf32, #tpu.memory_space<vmem>>, %arg14: memref<1x256xf32, #tpu.memory_space<vmem>>, %arg15: memref<1x256xf32, #tpu.memory_space<vmem>>, %arg16: memref<1x256xf32, #tpu.memory_space<vmem>>, %arg17: memref<1x128xf32, #tpu.memory_space<vmem>>, %arg18: memref<64x128xf32, #tpu.memory_space<vmem>>) attributes {dimension_semantics = [#tpu.dimension_semantics<parallel>], iteration_bounds = array<i64: 2>, scalar_prefetch = 0 : i64, scratch_operands = 0 : i64, tpu.core_type = #tpu.core_type<tc>, window_params = [{transform_indices = @transform_0, window_bounds = array<i64: 64, 128>}, {pipeline_mode = #tpu.pipeline_mode<synchronous>, transform_indices = @transform_1, window_bounds = array<i64: 128, 768>}, {pipeline_mode = #tpu.pipeline_mode<synchronous>, transform_indices = @transform_2, window_bounds = array<i64: 256, 2688>}, {pipeline_mode = #tpu.pipeline_mode<synchronous>, transform_indices = @transform_3, window_bounds = array<i64: 1, 256>}, {pipeline_mode = #tpu.pipeline_mode<synchronous>, transform_indices = @transform_4, window_bounds = array<i64: 1, 1>}, {pipeline_mode = #tpu.pipeline_mode<synchronous>, transform_indices = @transform_5, window_bounds = array<i64: 1, 256>}, {pipeline_mode = #tpu.pipeline_mode<synchronous>, transform_indices = @transform_6, window_bounds = array<i64: 1, 256>}, {pipeline_mode = #tpu.pipeline_mode<synchronous>, transform_indices = @transform_7, window_bounds = array<i64: 1, 256>}, {pipeline_mode = #tpu.pipeline_mode<synchronous>, transform_indices = @transform_8, window_bounds = array<i64: 1, 256>}, {pipeline_mode = #tpu.pipeline_mode<synchronous>, transform_indices = @transform_9, window_bounds = array<i64: 1, 256>}, {pipeline_mode = #tpu.pipeline_mode<synchronous>, transform_indices = @transform_10, window_bounds = array<i64: 1, 256>}, {pipeline_mode = #tpu.pipeline_mode<synchronous>, transform_indices = @transform_11, window_bounds = array<i64: 1, 256>}, {pipeline_mode = #tpu.pipeline_mode<synchronous>, transform_indices = @transform_12, window_bounds = array<i64: 1, 256>}, {pipeline_mode = #tpu.pipeline_mode<synchronous>, transform_indices = @transform_13, window_bounds = array<i64: 1, 256>}, {pipeline_mode = #tpu.pipeline_mode<synchronous>, transform_indices = @transform_14, window_bounds = array<i64: 1, 256>}, {pipeline_mode = #tpu.pipeline_mode<synchronous>, transform_indices = @transform_15, window_bounds = array<i64: 1, 256>}, {pipeline_mode = #tpu.pipeline_mode<synchronous>, transform_indices = @transform_16, window_bounds = array<i64: 1, 128>}, {transform_indices = @transform_17, window_bounds = array<i64: 64, 128>}]} {
    %c0 = arith.constant 0 : index
    %c0_0 = arith.constant 0 : index
    %0 = vector.load %arg1[%c0, %c0_0] : memref<64x128xf32, #tpu.memory_space<vmem>>, vector<64x128xf32>
    %c0_1 = arith.constant 0 : index
    %c0_2 = arith.constant 0 : index
    %1 = vector.load %arg2[%c0_1, %c0_2] : memref<128x768xf32, #tpu.memory_space<vmem>>, vector<128x768xf32>
    %cst = arith.constant dense<0.000000e+00> : vector<64x768xf32>
    %2 = tpu.matmul %0, %1, %cst {dimension_numbers = #tpu.dot_dimension_numbers<[1], [0], [0], [1], [0, 0, 1, 1], [], []>} : vector<64x128xf32>, vector<128x768xf32>, vector<64x768xf32> -> vector<64x768xf32>
    %3 = vector.extract_strided_slice %2 {offsets = [0, 0], sizes = [64, 256], strides = [1, 1]} : vector<64x768xf32> to vector<64x256xf32>
    %4 = vector.extract_strided_slice %2 {offsets = [0, 256], sizes = [64, 256], strides = [1, 1]} : vector<64x768xf32> to vector<64x256xf32>
    %5 = vector.extract_strided_slice %2 {offsets = [0, 512], sizes = [64, 256], strides = [1, 1]} : vector<64x768xf32> to vector<64x256xf32>
    %c0_3 = arith.constant 0 : index
    %c0_4 = arith.constant 0 : index
    %6 = vector.load %arg6[%c0_3, %c0_4] : memref<1x256xf32, #tpu.memory_space<vmem>>, vector<1x256xf32>
    %7 = vector.broadcast %6 : vector<1x256xf32> to vector<64x256xf32>
    %8 = arith.addf %3, %7 : vector<64x256xf32>
    %cst_5 = arith.constant 0.000000e+00 : f32
    %9 = vector.broadcast %cst_5 : f32 to vector<64x256xf32>
    %10 = arith.maximumf %8, %9 : vector<64x256xf32>
    %c0_6 = arith.constant 0 : index
    %c0_7 = arith.constant 0 : index
    %11 = vector.load %arg3[%c0_6, %c0_7] : memref<256x2688xf32, #tpu.memory_space<vmem>>, vector<256x256xf32>
    %cst_8 = arith.constant dense<0.000000e+00> : vector<64x256xf32>
    %12 = tpu.matmul %10, %11, %cst_8 {dimension_numbers = #tpu.dot_dimension_numbers<[1], [0], [0], [1], [0, 0, 1, 1], [], []>} : vector<64x256xf32>, vector<256x256xf32>, vector<64x256xf32> -> vector<64x256xf32>
    %c0_9 = arith.constant 0 : index
    %c0_10 = arith.constant 0 : index
    %13 = vector.load %arg7[%c0_9, %c0_10] : memref<1x256xf32, #tpu.memory_space<vmem>>, vector<1x256xf32>
    %14 = vector.broadcast %13 : vector<1x256xf32> to vector<64x256xf32>
    %15 = arith.addf %12, %14 : vector<64x256xf32>
    %cst_11 = arith.constant 0.000000e+00 : f32
    %16 = vector.broadcast %cst_11 : f32 to vector<64x256xf32>
    %17 = arith.maximumf %15, %16 : vector<64x256xf32>
    %c0_12 = arith.constant 0 : index
    %c256 = arith.constant 256 : index
    %18 = vector.load %arg3[%c0_12, %c256] : memref<256x2688xf32, #tpu.memory_space<vmem>>, vector<256x256xf32>
    %cst_13 = arith.constant dense<0.000000e+00> : vector<64x256xf32>
    %19 = tpu.matmul %17, %18, %cst_13 {dimension_numbers = #tpu.dot_dimension_numbers<[1], [0], [0], [1], [0, 0, 1, 1], [], []>} : vector<64x256xf32>, vector<256x256xf32>, vector<64x256xf32> -> vector<64x256xf32>
    %c0_14 = arith.constant 0 : index
    %c0_15 = arith.constant 0 : index
    %20 = vector.load %arg8[%c0_14, %c0_15] : memref<1x256xf32, #tpu.memory_space<vmem>>, vector<1x256xf32>
    %21 = vector.broadcast %20 : vector<1x256xf32> to vector<64x256xf32>
    %22 = arith.addf %19, %21 : vector<64x256xf32>
    %cst_16 = arith.constant 0.000000e+00 : f32
    %23 = vector.broadcast %cst_16 : f32 to vector<64x256xf32>
    %24 = arith.maximumf %22, %23 : vector<64x256xf32>
    %c0_17 = arith.constant 0 : index
    %c512 = arith.constant 512 : index
    %25 = vector.load %arg3[%c0_17, %c512] : memref<256x2688xf32, #tpu.memory_space<vmem>>, vector<256x256xf32>
    %cst_18 = arith.constant dense<0.000000e+00> : vector<64x256xf32>
    %26 = tpu.matmul %24, %25, %cst_18 {dimension_numbers = #tpu.dot_dimension_numbers<[1], [0], [0], [1], [0, 0, 1, 1], [], []>} : vector<64x256xf32>, vector<256x256xf32>, vector<64x256xf32> -> vector<64x256xf32>
    %c0_19 = arith.constant 0 : index
    %c0_20 = arith.constant 0 : index
    %27 = vector.load %arg9[%c0_19, %c0_20] : memref<1x256xf32, #tpu.memory_space<vmem>>, vector<1x256xf32>
    %28 = vector.broadcast %27 : vector<1x256xf32> to vector<64x256xf32>
    %29 = arith.addf %26, %28 : vector<64x256xf32>
    %cst_21 = arith.constant 0.000000e+00 : f32
    %30 = vector.broadcast %cst_21 : f32 to vector<64x256xf32>
    %31 = arith.maximumf %29, %30 : vector<64x256xf32>
    %c0_22 = arith.constant 0 : index
    %c768 = arith.constant 768 : index
    %32 = vector.load %arg3[%c0_22, %c768] : memref<256x2688xf32, #tpu.memory_space<vmem>>, vector<256x256xf32>
    %cst_23 = arith.constant dense<0.000000e+00> : vector<64x256xf32>
    %33 = tpu.matmul %31, %32, %cst_23 {dimension_numbers = #tpu.dot_dimension_numbers<[1], [0], [0], [1], [0, 0, 1, 1], [], []>} : vector<64x256xf32>, vector<256x256xf32>, vector<64x256xf32> -> vector<64x256xf32>
    %c0_24 = arith.constant 0 : index
    %c0_25 = arith.constant 0 : index
    %34 = vector.load %arg10[%c0_24, %c0_25] : memref<1x256xf32, #tpu.memory_space<vmem>>, vector<1x256xf32>
    %35 = vector.broadcast %34 : vector<1x256xf32> to vector<64x256xf32>
    %36 = arith.addf %33, %35 : vector<64x256xf32>
    %cst_26 = arith.constant 0.000000e+00 : f32
    %37 = vector.broadcast %cst_26 : f32 to vector<64x256xf32>
    %38 = arith.maximumf %36, %37 : vector<64x256xf32>
    %c0_27 = arith.constant 0 : index
    %c1024 = arith.constant 1024 : index
    %39 = vector.load %arg3[%c0_27, %c1024] : memref<256x2688xf32, #tpu.memory_space<vmem>>, vector<256x256xf32>
    %cst_28 = arith.constant dense<0.000000e+00> : vector<64x256xf32>
    %40 = tpu.matmul %38, %39, %cst_28 {dimension_numbers = #tpu.dot_dimension_numbers<[1], [0], [0], [1], [0, 0, 1, 1], [], []>} : vector<64x256xf32>, vector<256x256xf32>, vector<64x256xf32> -> vector<64x256xf32>
    %41 = arith.addf %4, %40 : vector<64x256xf32>
    %c0_29 = arith.constant 0 : index
    %c0_30 = arith.constant 0 : index
    %42 = vector.load %arg11[%c0_29, %c0_30] : memref<1x256xf32, #tpu.memory_space<vmem>>, vector<1x256xf32>
    %43 = vector.broadcast %42 : vector<1x256xf32> to vector<64x256xf32>
    %44 = arith.addf %41, %43 : vector<64x256xf32>
    %cst_31 = arith.constant 0.000000e+00 : f32
    %45 = vector.broadcast %cst_31 : f32 to vector<64x256xf32>
    %46 = arith.maximumf %44, %45 : vector<64x256xf32>
    %c0_32 = arith.constant 0 : index
    %c1280 = arith.constant 1280 : index
    %47 = vector.load %arg3[%c0_32, %c1280] : memref<256x2688xf32, #tpu.memory_space<vmem>>, vector<256x256xf32>
    %cst_33 = arith.constant dense<0.000000e+00> : vector<64x256xf32>
    %48 = tpu.matmul %46, %47, %cst_33 {dimension_numbers = #tpu.dot_dimension_numbers<[1], [0], [0], [1], [0, 0, 1, 1], [], []>} : vector<64x256xf32>, vector<256x256xf32>, vector<64x256xf32> -> vector<64x256xf32>
    %c0_34 = arith.constant 0 : index
    %c0_35 = arith.constant 0 : index
    %49 = vector.load %arg12[%c0_34, %c0_35] : memref<1x256xf32, #tpu.memory_space<vmem>>, vector<1x256xf32>
    %50 = vector.broadcast %49 : vector<1x256xf32> to vector<64x256xf32>
    %51 = arith.addf %48, %50 : vector<64x256xf32>
    %cst_36 = arith.constant 0.000000e+00 : f32
    %52 = vector.broadcast %cst_36 : f32 to vector<64x256xf32>
    %53 = arith.maximumf %51, %52 : vector<64x256xf32>
    %c0_37 = arith.constant 0 : index
    %c1536 = arith.constant 1536 : index
    %54 = vector.load %arg3[%c0_37, %c1536] : memref<256x2688xf32, #tpu.memory_space<vmem>>, vector<256x256xf32>
    %cst_38 = arith.constant dense<0.000000e+00> : vector<64x256xf32>
    %55 = tpu.matmul %53, %54, %cst_38 {dimension_numbers = #tpu.dot_dimension_numbers<[1], [0], [0], [1], [0, 0, 1, 1], [], []>} : vector<64x256xf32>, vector<256x256xf32>, vector<64x256xf32> -> vector<64x256xf32>
    %c0_39 = arith.constant 0 : index
    %c0_40 = arith.constant 0 : index
    %56 = vector.load %arg13[%c0_39, %c0_40] : memref<1x256xf32, #tpu.memory_space<vmem>>, vector<1x256xf32>
    %57 = vector.broadcast %56 : vector<1x256xf32> to vector<64x256xf32>
    %58 = arith.addf %55, %57 : vector<64x256xf32>
    %cst_41 = arith.constant 0.000000e+00 : f32
    %59 = vector.broadcast %cst_41 : f32 to vector<64x256xf32>
    %60 = arith.maximumf %58, %59 : vector<64x256xf32>
    %c0_42 = arith.constant 0 : index
    %c1792 = arith.constant 1792 : index
    %61 = vector.load %arg3[%c0_42, %c1792] : memref<256x2688xf32, #tpu.memory_space<vmem>>, vector<256x256xf32>
    %cst_43 = arith.constant dense<0.000000e+00> : vector<64x256xf32>
    %62 = tpu.matmul %60, %61, %cst_43 {dimension_numbers = #tpu.dot_dimension_numbers<[1], [0], [0], [1], [0, 0, 1, 1], [], []>} : vector<64x256xf32>, vector<256x256xf32>, vector<64x256xf32> -> vector<64x256xf32>
    %c0_44 = arith.constant 0 : index
    %c0_45 = arith.constant 0 : index
    %63 = vector.load %arg14[%c0_44, %c0_45] : memref<1x256xf32, #tpu.memory_space<vmem>>, vector<1x256xf32>
    %64 = vector.broadcast %63 : vector<1x256xf32> to vector<64x256xf32>
    %65 = arith.addf %62, %64 : vector<64x256xf32>
    %cst_46 = arith.constant 0.000000e+00 : f32
    %66 = vector.broadcast %cst_46 : f32 to vector<64x256xf32>
    %67 = arith.maximumf %65, %66 : vector<64x256xf32>
    %c0_47 = arith.constant 0 : index
    %c0_48 = arith.constant 0 : index
    %68 = vector.load %arg4[%c0_47, %c0_48] : memref<1x256xf32, #tpu.memory_space<vmem>>, vector<1x256xf32>
    %69 = vector.broadcast %68 : vector<1x256xf32> to vector<64x256xf32>
    %70 = arith.mulf %67, %69 : vector<64x256xf32>
    %cst_49 = arith.constant dense<0.000000e+00> : vector<64xf32>
    %71 = vector.multi_reduction <add>, %70, %cst_49 [1] : vector<64x256xf32> to vector<64xf32>
    %72 = vector.shape_cast %71 : vector<64xf32> to vector<64x1xf32>
    %c0_50 = arith.constant 0 : index
    %c0_51 = arith.constant 0 : index
    %73 = vector.load %arg5[%c0_50, %c0_51] : memref<1x1xf32, #tpu.memory_space<vmem>>, vector<1x1xf32>
    %74 = vector.broadcast %73 : vector<1x1xf32> to vector<64x1xf32>
    %75 = arith.addf %72, %74 : vector<64x1xf32>
    %c0_52 = arith.constant 0 : index
    %c2048 = arith.constant 2048 : index
    %76 = vector.load %arg3[%c0_52, %c2048] : memref<256x2688xf32, #tpu.memory_space<vmem>>, vector<256x256xf32>
    %cst_53 = arith.constant dense<0.000000e+00> : vector<64x256xf32>
    %77 = tpu.matmul %67, %76, %cst_53 {dimension_numbers = #tpu.dot_dimension_numbers<[1], [0], [0], [1], [0, 0, 1, 1], [], []>} : vector<64x256xf32>, vector<256x256xf32>, vector<64x256xf32> -> vector<64x256xf32>
    %c0_54 = arith.constant 0 : index
    %c0_55 = arith.constant 0 : index
    %78 = vector.load %arg15[%c0_54, %c0_55] : memref<1x256xf32, #tpu.memory_space<vmem>>, vector<1x256xf32>
    %79 = vector.broadcast %78 : vector<1x256xf32> to vector<64x256xf32>
    %80 = arith.addf %77, %79 : vector<64x256xf32>
    %c0_56 = arith.constant 0 : index
    %c2304 = arith.constant 2304 : index
    %81 = vector.load %arg3[%c0_56, %c2304] : memref<256x2688xf32, #tpu.memory_space<vmem>>, vector<256x256xf32>
    %cst_57 = arith.constant dense<0.000000e+00> : vector<64x256xf32>
    %82 = tpu.matmul %80, %81, %cst_57 {dimension_numbers = #tpu.dot_dimension_numbers<[1], [0], [0], [1], [0, 0, 1, 1], [], []>} : vector<64x256xf32>, vector<256x256xf32>, vector<64x256xf32> -> vector<64x256xf32>
    %83 = arith.addf %82, %5 : vector<64x256xf32>
    %c0_58 = arith.constant 0 : index
    %c0_59 = arith.constant 0 : index
    %84 = vector.load %arg16[%c0_58, %c0_59] : memref<1x256xf32, #tpu.memory_space<vmem>>, vector<1x256xf32>
    %85 = vector.broadcast %84 : vector<1x256xf32> to vector<64x256xf32>
    %86 = arith.addf %83, %85 : vector<64x256xf32>
    %cst_60 = arith.constant 0.000000e+00 : f32
    %87 = vector.broadcast %cst_60 : f32 to vector<64x256xf32>
    %88 = arith.maximumf %86, %87 : vector<64x256xf32>
    %c0_61 = arith.constant 0 : index
    %c2560 = arith.constant 2560 : index
    %89 = vector.load %arg3[%c0_61, %c2560] : memref<256x2688xf32, #tpu.memory_space<vmem>>, vector<256x128xf32>
    %cst_62 = arith.constant dense<0.000000e+00> : vector<64x128xf32>
    %90 = tpu.matmul %88, %89, %cst_62 {dimension_numbers = #tpu.dot_dimension_numbers<[1], [0], [0], [1], [0, 0, 1, 1], [], []>} : vector<64x256xf32>, vector<256x128xf32>, vector<64x128xf32> -> vector<64x128xf32>
    %c0_63 = arith.constant 0 : index
    %c0_64 = arith.constant 0 : index
    %91 = vector.load %arg17[%c0_63, %c0_64] : memref<1x128xf32, #tpu.memory_space<vmem>>, vector<1x128xf32>
    %92 = vector.broadcast %91 : vector<1x128xf32> to vector<64x128xf32>
    %93 = arith.addf %90, %92 : vector<64x128xf32>
    %94 = tpu.iota {dimensions = array<i32: 1>} : vector<64x128xi32>
    %c3_i32 = arith.constant 3 : i32
    %95 = vector.broadcast %c3_i32 : i32 to vector<64x128xi32>
    %96 = arith.cmpi eq, %94, %95 : vector<64x128xi32>
    %97 = vector.shape_cast %75 : vector<64x1xf32> to vector<64x1xf32>
    %98 = vector.broadcast %97 : vector<64x1xf32> to vector<64x128xf32>
    %99 = arith.select %96, %98, %93 : vector<64x128xi1>, vector<64x128xf32>
    %c0_65 = arith.constant 0 : index
    %c0_66 = arith.constant 0 : index
    %100 = vector.load %arg18[%c0_65, %c0_66] : memref<64x128xf32, #tpu.memory_space<vmem>>, vector<64x128xf32>
    tpu.vector_store %arg18[%c0_65, %c0_66], %99 {strides = array<i32>} : memref<64x128xf32, #tpu.memory_space<vmem>>, vector<64x128xf32>,
    return
  }
  func.func @transform_0(%arg0: i32) -> (i32, i32) {
    %c0_i32 = arith.constant 0 : i32
    %c0_i32_0 = arith.constant 0 : i32
    return %arg0, %c0_i32 : i32, i32
  }
  func.func @transform_1(%arg0: i32) -> (i32, i32) {
    %c0_i32 = arith.constant 0 : i32
    %c0_i32_0 = arith.constant 0 : i32
    %c0_i32_1 = arith.constant 0 : i32
    return %c0_i32, %c0_i32_0 : i32, i32
  }
  func.func @transform_2(%arg0: i32) -> (i32, i32) {
    %c0_i32 = arith.constant 0 : i32
    %c0_i32_0 = arith.constant 0 : i32
    %c0_i32_1 = arith.constant 0 : i32
    return %c0_i32, %c0_i32_0 : i32, i32
  }
  func.func @transform_3(%arg0: i32) -> (i32, i32) {
    %c0_i32 = arith.constant 0 : i32
    %c0_i32_0 = arith.constant 0 : i32
    %c0_i32_1 = arith.constant 0 : i32
    return %c0_i32, %c0_i32_0 : i32, i32
  }
  func.func @transform_4(%arg0: i32) -> (i32, i32) {
    %c0_i32 = arith.constant 0 : i32
    %c0_i32_0 = arith.constant 0 : i32
    %c0_i32_1 = arith.constant 0 : i32
    return %c0_i32, %c0_i32_0 : i32, i32
  }
  func.func @transform_5(%arg0: i32) -> (i32, i32) {
    %c0_i32 = arith.constant 0 : i32
    %c0_i32_0 = arith.constant 0 : i32
    %c0_i32_1 = arith.constant 0 : i32
    return %c0_i32, %c0_i32_0 : i32, i32
  }
  func.func @transform_6(%arg0: i32) -> (i32, i32) {
    %c0_i32 = arith.constant 0 : i32
    %c0_i32_0 = arith.constant 0 : i32
    %c0_i32_1 = arith.constant 0 : i32
    return %c0_i32, %c0_i32_0 : i32, i32
  }
  func.func @transform_7(%arg0: i32) -> (i32, i32) {
    %c0_i32 = arith.constant 0 : i32
    %c0_i32_0 = arith.constant 0 : i32
    %c0_i32_1 = arith.constant 0 : i32
    return %c0_i32, %c0_i32_0 : i32, i32
  }
  func.func @transform_8(%arg0: i32) -> (i32, i32) {
    %c0_i32 = arith.constant 0 : i32
    %c0_i32_0 = arith.constant 0 : i32
    %c0_i32_1 = arith.constant 0 : i32
    return %c0_i32, %c0_i32_0 : i32, i32
  }
  func.func @transform_9(%arg0: i32) -> (i32, i32) {
    %c0_i32 = arith.constant 0 : i32
    %c0_i32_0 = arith.constant 0 : i32
    %c0_i32_1 = arith.constant 0 : i32
    return %c0_i32, %c0_i32_0 : i32, i32
  }
  func.func @transform_10(%arg0: i32) -> (i32, i32) {
    %c0_i32 = arith.constant 0 : i32
    %c0_i32_0 = arith.constant 0 : i32
    %c0_i32_1 = arith.constant 0 : i32
    return %c0_i32, %c0_i32_0 : i32, i32
  }
  func.func @transform_11(%arg0: i32) -> (i32, i32) {
    %c0_i32 = arith.constant 0 : i32
    %c0_i32_0 = arith.constant 0 : i32
    %c0_i32_1 = arith.constant 0 : i32
    return %c0_i32, %c0_i32_0 : i32, i32
  }
  func.func @transform_12(%arg0: i32) -> (i32, i32) {
    %c0_i32 = arith.constant 0 : i32
    %c0_i32_0 = arith.constant 0 : i32
    %c0_i32_1 = arith.constant 0 : i32
    return %c0_i32, %c0_i32_0 : i32, i32
  }
  func.func @transform_13(%arg0: i32) -> (i32, i32) {
    %c0_i32 = arith.constant 0 : i32
    %c0_i32_0 = arith.constant 0 : i32
    %c0_i32_1 = arith.constant 0 : i32
    return %c0_i32, %c0_i32_0 : i32, i32
  }
  func.func @transform_14(%arg0: i32) -> (i32, i32) {
    %c0_i32 = arith.constant 0 : i32
    %c0_i32_0 = arith.constant 0 : i32
    %c0_i32_1 = arith.constant 0 : i32
    return %c0_i32, %c0_i32_0 : i32, i32
  }
  func.func @transform_15(%arg0: i32) -> (i32, i32) {
    %c0_i32 = arith.constant 0 : i32
    %c0_i32_0 = arith.constant 0 : i32
    %c0_i32_1 = arith.constant 0 : i32
    return %c0_i32, %c0_i32_0 : i32, i32
  }
  func.func @transform_16(%arg0: i32) -> (i32, i32) {
    %c0_i32 = arith.constant 0 : i32
    %c0_i32_0 = arith.constant 0 : i32
    %c0_i32_1 = arith.constant 0 : i32
    return %c0_i32, %c0_i32_0 : i32, i32
  }
  func.func @transform_17(%arg0: i32) -> (i32, i32) {
    %c0_i32 = arith.constant 0 : i32
    %c0_i32_0 = arith.constant 0 : i32
    return %arg0, %c0_i32 : i32, i32
  }
}

</mosaic_0001>

<bundles_post_ra>
// kernel: tpu_custom_call.1
= control target key start
LH: loop header
LB: loop body
LE: loop exit
PB: predicated region body
PF: predicated region fallthrough
CT: control target
= control target key end

     0   :  { %6 = vsyncpa [#allocation3], 0  ;;  %s448_s0 = inlined_call_operand.hbm [shape: f32[8,128], index: 0, kind: input, shape index: {}]   ;;  %s449_s1 = inlined_call_operand.hbm [shape: f32[16,128], index: 1, kind: output, shape index: {}]  }
   0x1   :  { %7 = vsyncpa [#allocation4], 0 }
   0x2   :  { %9 = vsyncpa [#allocation4 + $0x1], 0  ;;  %s348_s6 = smov 0   ;;  %s350_s7 = smov 0  }
   0x3   :  { %s352_s8 = smov 0   ;;  %s354_s9 = smov 0  }
   0x4 LB: > { %s369_s10 = sadd.s32 4294967295, %s334_s9   ;;  %s184_s11 = sadd.s32 4294967294, %s334_s9   ;;  %s334_s9 = sphi %s354_s9, %s457_s9   ;;  %s330_s8 = sphi %s352_s8, %s456_s8   ;;  %s326_s7 = sphi %s350_s7, %s455_s7   ;;  %s322_s6 = sphi %s348_s6, %s454_s6  }
   0x5   : > { %s373_s12 = sadd.s32 1, %s334_s9   ;;  %s43_s13 = sadd.s32 1, %s330_s8 }
   0x6   : > { %s40_s14 = ssub.s32 %s334_s9, %s373_s12  ;;  %p53_p0 = scmp.ne.s32.totalorder %s330_s8, %s326_s7 }
   0x7   : > { %p41_p1 = scmp.eq.s32.totalorder %s40_s14, 0  ;;  %p54_p2 = scmp.eq.s32.totalorder %s369_s10, 1 }
   0x8   : > { %p59_p3 = scmp.ne.s32.totalorder %s326_s7, %s322_s6  ;;  %p60_p4 = scmp.eq.s32.totalorder %s184_s11, 1 }
   0x9   : > { %s384_s15 = scalar_select %p41_p1, %s330_s8, %s43_s13  }
   0xa   : > { %p386_p5 = por %p54_p2, %p53_p0  ;;  %p390_p6 = por %p60_p4, %p59_p3 }
   0xb   : > { %p185_p7 = scmp.ge.s32.totalorder %s334_s9, 1  ;;  %p67_p8 = scmp.lt.s32.totalorder %s334_s9, 3 }
   0xc   : > { %s451_s17 = scalar_select %p390_p6, 1, 0 }
   0xd   : > { %p208_p9 = scmp.eq.s32.totalorder %s369_s10, 0  ;;  %p397_p10 = pnand %p185_p7, %p67_p8 }
   0xe   : > { %s336_s19 = smov [#allocation2]  }
   0xf   : > { %s80_s20 = sshll.u32 %s336_s19, 4  ;;  %p200_p11 = pneg %p397_p10  ;;  %s81_s20 = int_to_ptr.vmem [resolvable:$true] %s80_s20 }
  0x10   : > { %s255_s21 = scalar_lea.vmem %s81_s20, 128  ;;  %p263_p3 = scmp.lt.s32.totalorder %s81_s20, %s81_s20 }
  0x11   : > { %p201_p12 = pnand %p208_p9, %p200_p11  ;;  %p256_p0 = scmp.ne.s32.totalorder %s81_s20, %s255_s21 }
  0x12   : > { %p264_p4 = scmp.lt.s32.totalorder %s255_s21, %s255_s21 }
  0x13   : > { %p246_p13 = pneg %p201_p12 }
  0x14   : > { %p265_p6 = por %p264_p4, %p263_p3 }
  0x15   : > { %p258_p1 = pnand %p256_p0, %p246_p13 }
  0x17   : > { %p259_p2 = pneg %p258_p1 }
  0x19   : > { %p266_p7 = pnand %p265_p6, %p259_p2 }
  0x1b   : > { %269 = shalt.err (!%p266_p7)
}
  0x1c   : > { %203 = dma.hbm_to_vmem [thread:$0]  (!%p201_p12), %s448_s0, 128, %s81_s20, [#allocation3]  }
  0x1d   : > { %93 = sbr.rel (%p397_p10) target bundleno = 60 (0x3c), region = 24 }
  0x22   : > { %313 = dma.done.wait (%p208_p9), [#allocation3], 128  }
  0x23   : > { %315 = vsyncadd (%p208_p9), [#allocation3], 4294967168  ;;  %s105_s24 = sand.u32 1, %s326_s7   ;;  %s191_s28 = sshll.u32 %s369_s10, 7  ;;  %v108_v0 = vld [vmem:[#allocation2] sm:$0xff] }
  0x24   : > { %s189_s25 = sshll.u32 %s105_s24, 3  ;;  %v109_v1 = vmul.f32 2.0, %v108_v0  ;;  %s123_s2 = scalar_lea.hbm %s449_s1, %s191_s28 }
  0x25   : > { %s107_s26 = scalar_lea.vmem [#allocation5], %s189_s25  ;;  %s112_s3 = scalar_lea.sflag [#allocation4], %s105_s24 }
  0x26   : > { %s125_s27 = sshll.u32 %s107_s26, 4  ;;  %110 = vst [vmem:[%s107_s26] sm:$0xff] %v109_v1  ;;  %s337_s5 = smov [#allocation5]   ;;  %s126_s27 = int_to_ptr.vmem [resolvable:$true] %s125_s27 }
  0x27   : > { %s270_s4 = scalar_lea.vmem %s126_s27, 128  ;;  %s274_s11 = sshll.u32 %s337_s5, 4  ;;  %s275_s11 = int_to_ptr.vmem [resolvable:$false] %s274_s11 }
  0x28   : > { %p271_p6 = scmp.ne.s32.totalorder %s126_s27, %s270_s4  ;;  %s276_s13 = scalar_lea.vmem %s275_s11, 256 }
  0x29   : > { %p277_p10 = scmp.lt.s32.totalorder %s126_s27, %s275_s11  ;;  %p278_p11 = scmp.lt.s32.totalorder %s276_s13, %s270_s4 }
  0x2a   : > { %p272_p8 = pnand %p271_p6, %p386_p5 }
  0x2b   : > { %p279_p12 = por %p278_p11, %p277_p10 }
  0x2c   : > { %p273_p9 = pneg %p272_p8 }
  0x2e   : > { %p280_p13 = pnand %p279_p12, %p273_p9 }
  0x30   : > { %283 = shalt.err (!%p280_p13)
}
  0x31   : > { %s284_s10 = scalar_lea.hbm %s123_s2, 128  ;;  %s288_s19 = scalar_lea.hbm %s449_s1, 256 }
  0x32   : > { %p285_p0 = scmp.ne.s32.totalorder %s123_s2, %s284_s10  ;;  %p289_p3 = scmp.lt.s32.totalorder %s123_s2, %s449_s1 }
  0x33   : > { %p290_p4 = scmp.lt.s32.totalorder %s288_s19, %s284_s10 }
  0x34   : > { %p286_p1 = pnand %p285_p0, %p386_p5 }
  0x35   : > { %p291_p7 = por %p290_p4, %p289_p3 }
  0x36   : > { %p287_p2 = pneg %p286_p1 }
  0x38   : > { %p292_p6 = pnand %p291_p7, %p287_p2 }
  0x3a   : > { %295 = shalt.err (!%p292_p6)
}
  0x3b   : > { %198 = dma.vmem_to_hbm [thread:$0]  (%p386_p5), %s126_s27, 128, %s123_s2, %s112_s3  }
  0x3c PF: > { %p210_p8 = scmp.ge.s32.totalorder %s334_s9, 2  ;;  %s137_s22 = sand.u32 1, %s322_s6  }
  0x3d   : > { %p453_p9 = scmp.ne.s32.totalorder %s451_s17, 0  ;;  %s138_s23 = scalar_lea.sflag [#allocation4], %s137_s22 }
  0x3f   : > { %p205_p10 = pnand %p210_p8, %p453_p9 }
  0x41   : > { %p206_p11 = pneg %p205_p10 }
  0x43   : > { %317 = dma.done.wait (%p206_p11), %s138_s23, 128  }
  0x44   : > { %319 = vsyncadd (%p206_p11), %s138_s23, 4294967168  ;;  %p12_p12 = scmp.ge.s32.totalorder %s373_s12, 4   ;;  %s454_s6 = smov %s326_s7 }
  0x45   : > { %s455_s7 = smov %s330_s8  ;;  %s456_s8 = smov %s384_s15 }
  0x46   : > { %s457_s9 = smov %s373_s12  ;;  %14 = sbr.rel (!%p12_p12) target bundleno = 4 (0x4), region = 61 }
  0x4b   :  { %143 = vsyncpa [#allocation3], 1 }
  0x4c   :  { %145 = vsyncpa [#allocation3 + $0x1], 1 }
  0x4d   :  { %146 = vsyncpa [#allocation4], 1 }
  0x4e   :  { %148 = vsyncpa [#allocation4 + $0x1], 1 }

// kernel: _nerf_forward_impl.1
= control target key start
LH: loop header
LB: loop body
LE: loop exit
PB: predicated region body
PF: predicated region fallthrough
CT: control target
= control target key end

     0   :  { %s5106_s0 = inlined_call_operand.vmem [shape: f32[128,128], index: 0, kind: input, shape index: {}]   ;;  %s5107_s1 = inlined_call_operand.hbm [shape: f32[128,768], index: 1, kind: input, shape index: {}]   ;;  %s5108_s2 = inlined_call_operand.hbm [shape: f32[256,2688], index: 2, kind: input, shape index: {}]   ;;  %s5109_s3 = inlined_call_operand.hbm [shape: f32[1,256], index: 3, kind: input, shape index: {}]   ;;  %s5110_s4 = inlined_call_operand.<no memory space> [shape: f32[1,1], index: 4, kind: input, shape index: {}]   ;;  %s5111_s5 = inlined_call_operand.hbm [shape: f32[1,256], index: 5, kind: input, shape index: {}]   ;;  %s5112_s6 = inlined_call_operand.hbm [shape: f32[1,256], index: 6, kind: input, shape index: {}]   ;;  %s5113_s7 = inlined_call_operand.hbm [shape: f32[1,256], index: 7, kind: input, shape index: {}]   ;;  %s5114_s8 = inlined_call_operand.hbm [shape: f32[1,256], index: 8, kind: input, shape index: {}]   ;;  %s5115_s9 = inlined_call_operand.hbm [shape: f32[1,256], index: 9, kind: input, shape index: {}]   ;;  %s5116_s10 = inlined_call_operand.hbm [shape: f32[1,256], index: 10, kind: input, shape index: {}]   ;;  %s5117_s11 = inlined_call_operand.hbm [shape: f32[1,256], index: 11, kind: input, shape index: {}]   ;;  %s5118_s12 = inlined_call_operand.hbm [shape: f32[1,256], index: 12, kind: input, shape index: {}]   ;;  %s5119_s13 = inlined_call_operand.hbm [shape: f32[1,256], index: 13, kind: input, shape index: {}]   ;;  %s5120_s14 = inlined_call_operand.hbm [shape: f32[1,256], index: 14, kind: input, shape index: {}]   ;;  %s5121_s15 = inlined_call_operand.hbm [shape: f32[1,256], index: 15, kind: input, shape index: {}]   ;;  %s5122_s16 = inlined_call_operand.hbm [shape: f32[1,128], index: 16, kind: input, shape index: {}]   ;;  %s5123_s17 = inlined_call_operand.vmem [shape: f32[128,128], index: 17, kind: output, shape index: {}]  }
   0x1   :  { %5128 = sst [smem:[#allocation34_spill]] %s5106_s0  ;;  %v22_v0 = vstv %s5110_s4 }
   0x2   :  { %5129 = sst [smem:[#allocation35_spill]] %s5107_s1  ;;  %23 = vst [vmem:[#allocation2] sm:$0x1] %v22_v0 }
   0x3   :  { %5130 = sst [smem:[#allocation36_spill]] %s5108_s2 }
   0x4   :  { %24 = vsyncpa [#allocation4], 0 }
   0x5   :  { %25 = vsyncpa [#allocation6], 0 }
   0x6   :  { %26 = vsyncpa [#allocation9], 0 }
   0x7   :  { %27 = vsyncpa [#allocation12], 0 }
   0x8   :  { %28 = vsyncpa [#allocation15], 0 }
   0x9   :  { %29 = vsyncpa [#allocation18], 0 }
   0xa   :  { %30 = vsyncpa [#allocation21], 0 }
   0xb   :  { %31 = vsyncpa [#allocation24], 0  ;;  %s4596_s26 = smov 0  }
   0xc LB: > { %s4482_s4 = smov [#allocation5]   ;;  %s5124_s28 = sadd.s32 4294967295, %s4480_s26   ;;  %s4480_s26 = sphi %s4596_s26, %s37_s26  }
   0xd   : > { %s455_s27 = sshll.u32 %s4482_s4, 4  ;;  %p3788_p0 = scmp.ge.s32.totalorder %s4480_s26, 1  ;;  %s456_s27 = int_to_ptr.vmem [resolvable:$true] %s455_s27 }
   0xe   : > { %p430_p1 = scmp.lt.s32.totalorder %s4480_s26, 3  ;;  %p4606_p2 = scmp.eq.s32.totalorder %s5124_s28, 0 }
   0xf   : > { %s4483_s30 = smov [#allocation8]   ;;  %s4484_s1 = smov [#allocation11]  }
  0x10   : > { %s5131_s29 = scalar_select %p4606_p2, 1, 0 }
  0x11   : > { %p4610_p3 = pnand %p3788_p0, %p430_p1  ;;  %s483_s18 = sshll.u32 %s4483_s30, 4  ;;  %s4616_s18 = int_to_ptr.vmem [resolvable:$true] %s483_s18 }
  0x12   : > { %s505_s20 = sshll.u32 %s4484_s1, 4  ;;  %s4485_s21 = smov [#allocation14]   ;;  %s4624_s20 = int_to_ptr.vmem [resolvable:$true] %s505_s20 }
  0x13   : > { %s5132_s0 = scalar_select %p4610_p3, 1, 0 }
  0x14   : > { %p3945_p4 = pneg %p4610_p3  ;;  %s4626_s22 = sshll.u32 %s4485_s21, 4  ;;  %s528_s22 = int_to_ptr.vmem [resolvable:$true] %s4626_s22 }
  0x15   : > { %s4063_s24 = scalar_lea.vmem %s456_s27, 86016  ;;  %p4071_p10 = scmp.lt.s32.totalorder %s456_s27, %s456_s27 }
  0x16   : > { %p4620_p5 = pnand %p4606_p2, %p3945_p4  ;;  %p4064_p7 = scmp.ne.s32.totalorder %s456_s27, %s4063_s24 }
  0x17   : > { %p4072_p11 = scmp.lt.s32.totalorder %s4063_s24, %s4063_s24 }
  0x18   : > { %p4630_p6 = pneg %p4620_p5 }
  0x19   : > { %p4073_p12 = por %p4072_p11, %p4071_p10 }
  0x1a   : > { %p4066_p8 = pnand %p4064_p7, %p4630_p6 }
  0x1c   : > { %p4067_p9 = pneg %p4066_p8 }
  0x1e   : > { %p4074_p13 = pnand %p4073_p12, %p4067_p9 }
  0x20   : > { %4077 = shalt.err (!%p4074_p13)
}
  0x21   : > { %s4486_s25 = smov 2688   ;;  %s4487_s4 = smov 168  }
  0x22   : > { %s5135_s2 = sld [smem:[#allocation36_spill]]  ;;  %s4089_s21 = scalar_lea.vmem %s4616_s18, 32 }
  0x23   : > { %p4090_p0 = scmp.ne.s32.totalorder %s4616_s18, %s4089_s21  ;;  %p4097_p7 = scmp.lt.s32.totalorder %s4616_s18, %s4616_s18 }
  0x24   : > { %p4098_p8 = scmp.lt.s32.totalorder %s4089_s21, %s4089_s21 }
  0x25   : > { %p4092_p1 = pnand %p4090_p0, %p4630_p6 }
  0x26   : > { %p4099_p9 = por %p4098_p8, %p4097_p7 }
  0x27   : > { %p4093_p4 = pneg %p4092_p1 }
  0x28   : > { %3951 = dma.hbm_to_vmem [thread:$0]  (!%p4620_p5), %s5135_s2, 86016, %s456_s27, [#allocation6], %s4486_s25, %s4486_s25, %s4487_s4  }
  0x29   : > { %p4100_p10 = pnand %p4099_p9, %p4093_p4 }
  0x2b   : > { %4103 = shalt.err (!%p4100_p10)
}
  0x2c   : > { %3957 = dma.hbm_to_vmem [thread:$0]  (!%p4620_p5), %s5111_s5, 32, %s4616_s18, [#allocation9]  }
  0x2d   : > { %s4115_s27 = scalar_lea.vmem %s4624_s20, 32  ;;  %p4123_p0 = scmp.lt.s32.totalorder %s4624_s20, %s4624_s20 }
  0x2e   : > { %p4116_p11 = scmp.ne.s32.totalorder %s4624_s20, %s4115_s27  ;;  %p4124_p1 = scmp.lt.s32.totalorder %s4115_s27, %s4115_s27 }
  0x30   : > { %p4118_p12 = pnand %p4116_p11, %p4630_p6  ;;  %p4125_p4 = por %p4124_p1, %p4123_p0 }
  0x32   : > { %p4119_p13 = pneg %p4118_p12 }
  0x34   : > { %p4126_p7 = pnand %p4125_p4, %p4119_p13 }
  0x36   : > { %4129 = shalt.err (!%p4126_p7)
}
  0x37   : > { %3963 = dma.hbm_to_vmem [thread:$0]  (!%p4620_p5), %s5113_s7, 32, %s4624_s20, [#allocation12]  }
  0x38   : > { %s4141_s18 = scalar_lea.vmem %s528_s22, 32  ;;  %p4149_p11 = scmp.lt.s32.totalorder %s528_s22, %s528_s22 }
  0x39   : > { %p4142_p8 = scmp.ne.s32.totalorder %s528_s22, %s4141_s18  ;;  %p4150_p12 = scmp.lt.s32.totalorder %s4141_s18, %s4141_s18 }
  0x3b   : > { %p4144_p9 = pnand %p4142_p8, %p4630_p6  ;;  %p4151_p0 = por %p4150_p12, %p4149_p11 }
  0x3d   : > { %p4145_p10 = pneg %p4144_p9 }
  0x3f   : > { %p4152_p13 = pnand %p4151_p0, %p4145_p10 }
  0x41   : > { %4155 = shalt.err (!%p4152_p13)
}
  0x42   : > { %3969 = dma.hbm_to_vmem [thread:$0]  (!%p4620_p5), %s5115_s9, 32, %s528_s22, [#allocation15]  }
  0x43   : > { %s4488_s1 = smov [#allocation17]   ;;  %s4489_s21 = smov [#allocation20]  }
  0x44   : > { %s549_s20 = sshll.u32 %s4488_s1, 4  ;;  %s571_s24 = sshll.u32 %s4489_s21, 4  ;;  %s550_s20 = int_to_ptr.vmem [resolvable:$true] %s549_s20  ;;  %s572_s24 = int_to_ptr.vmem [resolvable:$true] %s571_s24 }
  0x45   : > { %s4167_s27 = scalar_lea.vmem %s550_s20, 32  ;;  %p4175_p8 = scmp.lt.s32.totalorder %s550_s20, %s550_s20 }
  0x46   : > { %p4168_p1 = scmp.ne.s32.totalorder %s550_s20, %s4167_s27  ;;  %p4176_p9 = scmp.lt.s32.totalorder %s4167_s27, %s4167_s27 }
  0x48   : > { %p4170_p4 = pnand %p4168_p1, %p4630_p6  ;;  %p4177_p10 = por %p4176_p9, %p4175_p8 }
  0x4a   : > { %p4171_p7 = pneg %p4170_p4 }
  0x4c   : > { %p4178_p11 = pnand %p4177_p10, %p4171_p7 }
  0x4e   : > { %4181 = shalt.err (!%p4178_p11)
}
  0x4f   : > { %3975 = dma.hbm_to_vmem [thread:$0]  (!%p4620_p5), %s5117_s11, 32, %s550_s20, [#allocation18]  }
  0x50   : > { %s4193_s22 = scalar_lea.vmem %s572_s24, 32  ;;  %p4201_p1 = scmp.lt.s32.totalorder %s572_s24, %s572_s24 }
  0x51   : > { %p4194_p12 = scmp.ne.s32.totalorder %s572_s24, %s4193_s22  ;;  %p4202_p4 = scmp.lt.s32.totalorder %s4193_s22, %s4193_s22 }
  0x53   : > { %p4196_p0 = pnand %p4194_p12, %p4630_p6  ;;  %p4203_p2 = por %p4202_p4, %p4201_p1 }
  0x55   : > { %p4197_p13 = pneg %p4196_p0 }
  0x57   : > { %p4204_p3 = pnand %p4203_p2, %p4197_p13 }
  0x59   : > { %4207 = shalt.err (!%p4204_p3)
}
  0x5a   : > { %3981 = dma.hbm_to_vmem [thread:$0]  (!%p4620_p5), %s5119_s13, 32, %s572_s24, [#allocation21]  }
  0x5b   : > { %s4490_s30 = smov [#allocation23]   ;;  %s4491_s20 = smov [#allocation3]  }
  0x5c   : > { %s593_s1 = sshll.u32 %s4490_s30, 4  ;;  %s442_s21 = sshll.u32 %s4491_s20, 4  ;;  %s594_s1 = int_to_ptr.vmem [resolvable:$true] %s593_s1  ;;  %s443_s21 = int_to_ptr.vmem [resolvable:$true] %s442_s21 }
  0x5d   : > { %s4219_s27 = scalar_lea.vmem %s594_s1, 32  ;;  %p4227_p10 = scmp.lt.s32.totalorder %s594_s1, %s594_s1 }
  0x5e   : > { %p4220_p7 = scmp.ne.s32.totalorder %s594_s1, %s4219_s27  ;;  %p4228_p2 = scmp.lt.s32.totalorder %s4219_s27, %s4219_s27 }
  0x60   : > { %p4222_p8 = pnand %p4220_p7, %p4630_p6  ;;  %p4229_p3 = por %p4228_p2, %p4227_p10 }
  0x62   : > { %p4223_p9 = pneg %p4222_p8 }
  0x64   : > { %p4230_p11 = pnand %p4229_p3, %p4223_p9 }
  0x66   : > { %4233 = shalt.err (!%p4230_p11)
}
  0x67   : > { %3987 = dma.hbm_to_vmem [thread:$0]  (!%p4620_p5), %s5121_s15, 32, %s594_s1, [#allocation24]  }
  0x68   : > { %s4245_s24 = scalar_lea.vmem %s443_s21, 12288  ;;  %p4253_p1 = scmp.lt.s32.totalorder %s443_s21, %s443_s21 }
  0x69   : > { %p4246_p12 = scmp.ne.s32.totalorder %s443_s21, %s4245_s24  ;;  %p4254_p4 = scmp.lt.s32.totalorder %s4245_s24, %s4245_s24 }
  0x6b   : > { %p4248_p0 = pnand %p4246_p12, %p4630_p6  ;;  %p4255_p7 = por %p4254_p4, %p4253_p1 }
  0x6d   : > { %p4249_p13 = pneg %p4248_p0 }
  0x6f   : > { %p4256_p8 = pnand %p4255_p7, %p4249_p13 }
  0x71   : > { %4259 = shalt.err (!%p4256_p8)
}
  0x72   : > { %s4492_s22 = smov 768   ;;  %s4493_s18 = smov 48  }
  0x73   : > { %s5136_s20 = sld [smem:[#allocation35_spill]]  ;;  %s4494_s1 = smov [#allocation7]  }
  0x74   : > { %s469_s27 = sshll.u32 %s4494_s1, 4  ;;  %s4495_s28 = smov [#allocation10]   ;;  %s470_s27 = int_to_ptr.vmem [resolvable:$true] %s469_s27 }
  0x75   : > { %s494_s25 = sshll.u32 %s4495_s28, 4  ;;  %s4271_s2 = scalar_lea.vmem %s470_s27, 32  ;;  %s495_s25 = int_to_ptr.vmem [resolvable:$true] %s494_s25 }
  0x76   : > { %p4272_p9 = scmp.ne.s32.totalorder %s470_s27, %s4271_s2  ;;  %p4279_p3 = scmp.lt.s32.totalorder %s470_s27, %s470_s27 }
  0x77   : > { %p4280_p11 = scmp.lt.s32.totalorder %s4271_s2, %s4271_s2 }
  0x78   : > { %p4274_p10 = pnand %p4272_p9, %p4630_p6 }
  0x79   : > { %3948 = dma.hbm_to_vmem [thread:$0]  (!%p4620_p5), %s5136_s20, 12288, %s443_s21, [#allocation4], %s4492_s22, %s4492_s22, %s4493_s18  }
  0x7a   : > { %p4275_p2 = pneg %p4274_p10  ;;  %p4281_p12 = por %p4280_p11, %p4279_p3 }
  0x7c   : > { %p4282_p0 = pnand %p4281_p12, %p4275_p2 }
  0x7e   : > { %4285 = shalt.err (!%p4282_p0)
}
  0x7f   : > { %3954 = dma.hbm_to_vmem [thread:$0]  (!%p4620_p5), %s5109_s3, 32, %s470_s27, [#allocation6]  }
  0x80   : > { %s4297_s21 = scalar_lea.vmem %s495_s25, 32  ;;  %p4305_p7 = scmp.lt.s32.totalorder %s495_s25, %s495_s25 }
  0x81   : > { %p4298_p13 = scmp.ne.s32.totalorder %s495_s25, %s4297_s21  ;;  %p4306_p8 = scmp.lt.s32.totalorder %s4297_s21, %s4297_s21 }
  0x83   : > { %p4300_p1 = pnand %p4298_p13, %p4630_p6  ;;  %p4307_p9 = por %p4306_p8, %p4305_p7 }
  0x85   : > { %p4301_p4 = pneg %p4300_p1 }
  0x87   : > { %p4308_p10 = pnand %p4307_p9, %p4301_p4 }
  0x89   : > { %4311 = shalt.err (!%p4308_p10)
}
  0x8a   : > { %3960 = dma.hbm_to_vmem [thread:$0]  (!%p4620_p5), %s5112_s6, 32, %s495_s25, [#allocation9]  }
  0x8b   : > { %s4496_s18 = smov [#allocation13]   ;;  %s4497_s20 = smov [#allocation16]  }
  0x8c   : > { %s516_s30 = sshll.u32 %s4496_s18, 4  ;;  %s538_s1 = sshll.u32 %s4497_s20, 4  ;;  %s517_s30 = int_to_ptr.vmem [resolvable:$true] %s516_s30  ;;  %s539_s1 = int_to_ptr.vmem [resolvable:$true] %s538_s1 }
  0x8d   : > { %s4323_s27 = scalar_lea.vmem %s517_s30, 32  ;;  %p4331_p12 = scmp.lt.s32.totalorder %s517_s30, %s517_s30 }
  0x8e   : > { %p4324_p2 = scmp.ne.s32.totalorder %s517_s30, %s4323_s27  ;;  %p4332_p0 = scmp.lt.s32.totalorder %s4323_s27, %s4323_s27 }
  0x90   : > { %p4326_p3 = pnand %p4324_p2, %p4630_p6  ;;  %p4333_p13 = por %p4332_p0, %p4331_p12 }
  0x92   : > { %p4327_p11 = pneg %p4326_p3 }
  0x94   : > { %p4334_p1 = pnand %p4333_p13, %p4327_p11 }
  0x96   : > { %4337 = shalt.err (!%p4334_p1)
}
  0x97   : > { %3966 = dma.hbm_to_vmem [thread:$0]  (!%p4620_p5), %s5114_s8, 32, %s517_s30, [#allocation12]  }
  0x98   : > { %s4349_s25 = scalar_lea.vmem %s539_s1, 32  ;;  %p4357_p9 = scmp.lt.s32.totalorder %s539_s1, %s539_s1 }
  0x99   : > { %p4350_p4 = scmp.ne.s32.totalorder %s539_s1, %s4349_s25  ;;  %p4358_p10 = scmp.lt.s32.totalorder %s4349_s25, %s4349_s25 }
  0x9b   : > { %p4352_p7 = pnand %p4350_p4, %p4630_p6  ;;  %p4359_p2 = por %p4358_p10, %p4357_p9 }
  0x9d   : > { %p4353_p8 = pneg %p4352_p7 }
  0x9f   : > { %p4360_p3 = pnand %p4359_p2, %p4353_p8 }
  0xa1   : > { %4363 = shalt.err (!%p4360_p3)
}
  0xa2   : > { %3972 = dma.hbm_to_vmem [thread:$0]  (!%p4620_p5), %s5116_s10, 32, %s539_s1, [#allocation15]  }
  0xa3   : > { %s4498_s2 = smov [#allocation19]   ;;  %s4499_s18 = smov [#allocation22]  }
  0xa4   : > { %s560_s22 = sshll.u32 %s4498_s2, 4  ;;  %s582_s30 = sshll.u32 %s4499_s18, 4  ;;  %s561_s22 = int_to_ptr.vmem [resolvable:$true] %s560_s22  ;;  %s583_s30 = int_to_ptr.vmem [resolvable:$true] %s582_s30 }
  0xa5   : > { %s4375_s20 = scalar_lea.vmem %s561_s22, 32  ;;  %p4383_p13 = scmp.lt.s32.totalorder %s561_s22, %s561_s22 }
  0xa6   : > { %p4376_p11 = scmp.ne.s32.totalorder %s561_s22, %s4375_s20  ;;  %p4384_p1 = scmp.lt.s32.totalorder %s4375_s20, %s4375_s20 }
  0xa8   : > { %p4378_p12 = pnand %p4376_p11, %p4630_p6  ;;  %p4385_p4 = por %p4384_p1, %p4383_p13 }
  0xaa   : > { %p4379_p0 = pneg %p4378_p12 }
  0xac   : > { %p4386_p7 = pnand %p4385_p4, %p4379_p0 }
  0xae   : > { %4389 = shalt.err (!%p4386_p7)
}
  0xaf   : > { %3978 = dma.hbm_to_vmem [thread:$0]  (!%p4620_p5), %s5118_s12, 32, %s561_s22, [#allocation18]  }
  0xb0   : > { %s4401_s1 = scalar_lea.vmem %s583_s30, 32  ;;  %p4409_p2 = scmp.lt.s32.totalorder %s583_s30, %s583_s30 }
  0xb1   : > { %p4402_p8 = scmp.ne.s32.totalorder %s583_s30, %s4401_s1  ;;  %p4410_p3 = scmp.lt.s32.totalorder %s4401_s1, %s4401_s1 }
  0xb3   : > { %p4404_p9 = pnand %p4402_p8, %p4630_p6  ;;  %p4411_p11 = por %p4410_p3, %p4409_p2 }
  0xb5   : > { %p4405_p10 = pneg %p4404_p9 }
  0xb7   : > { %p4412_p12 = pnand %p4411_p11, %p4405_p10 }
  0xb9   : > { %4415 = shalt.err (!%p4412_p12)
}
  0xba   : > { %3984 = dma.hbm_to_vmem [thread:$0]  (!%p4620_p5), %s5120_s14, 32, %s583_s30, [#allocation21]  }
  0xbb   : > { %s4500_s4 = smov [#allocation25]  }
  0xbc   : > { %s604_s21 = sshll.u32 %s4500_s4, 4  ;;  %s605_s21 = int_to_ptr.vmem [resolvable:$true] %s604_s21 }
  0xbd   : > { %s4427_s2 = scalar_lea.vmem %s605_s21, 16  ;;  %s4434_s22 = scalar_lea.vmem %s605_s21, 32 }
  0xbe   : > { %p4428_p0 = scmp.ne.s32.totalorder %s605_s21, %s4427_s2  ;;  %p4435_p4 = scmp.lt.s32.totalorder %s605_s21, %s605_s21 }
  0xbf   : > { %p4436_p7 = scmp.lt.s32.totalorder %s4434_s22, %s4427_s2 }
  0xc0   : > { %p4430_p13 = pnand %p4428_p0, %p4630_p6 }
  0xc1   : > { %p4437_p8 = por %p4436_p7, %p4435_p4 }
  0xc2   : > { %p4431_p1 = pneg %p4430_p13 }
  0xc4   : > { %p4438_p9 = pnand %p4437_p8, %p4431_p1 }
  0xc6   : > { %4441 = shalt.err (!%p4438_p9)
}
  0xc7   : > { %3990 = dma.hbm_to_vmem [thread:$0]  (!%p4620_p5), %s5122_s16, 16, %s605_s21, [#allocation24]  }
  0xc8   : > { %p5137_p10 = scmp.ne.s32.totalorder %s5132_s0, 0 }
  0xc9   : > { %p5138_p2 = scmp.ne.s32.totalorder (!%p5137_p10), %s5131_s29, 0 }
  0xca   : > { %626 = sbr.rel (%p5137_p10) target bundleno = 2687 (0xa7f), region = 88 }
  0xcf   : > { %4447 = dma.done.wait (%p5138_p2), [#allocation4], 12288  }
  0xd0   : > { %4449 = vsyncadd (%p5138_p2), [#allocation4], 4294955008 }
  0xd1   : > { %4451 = dma.done.wait (%p5138_p2), [#allocation6], 86048  }
  0xd2   : > { %4453 = vsyncadd (%p5138_p2), [#allocation6], 4294881248 }
  0xd3   : > { %4455 = dma.done.wait (%p5138_p2), [#allocation9], 64  }
  0xd4   : > { %4457 = vsyncadd (%p5138_p2), [#allocation9], 4294967232 }
  0xd5   : > { %4459 = dma.done.wait (%p5138_p2), [#allocation12], 64  }
  0xd6   : > { %4461 = vsyncadd (%p5138_p2), [#allocation12], 4294967232 }
  0xd7   : > { %4463 = dma.done.wait (%p5138_p2), [#allocation15], 64  }
  0xd8   : > { %4465 = vsyncadd (%p5138_p2), [#allocation15], 4294967232 }
  0xd9   : > { %4467 = dma.done.wait (%p5138_p2), [#allocation18], 64  }
  0xda   : > { %4469 = vsyncadd (%p5138_p2), [#allocation18], 4294967232 }
  0xdb   : > { %4471 = dma.done.wait (%p5138_p2), [#allocation21], 64  }
  0xdc   : > { %4473 = vsyncadd (%p5138_p2), [#allocation21], 4294967232 }
  0xdd   : > { %4475 = dma.done.wait (%p5138_p2), [#allocation24], 48  }
  0xde   : > { %4477 = vsyncadd (%p5138_p2), [#allocation24], 4294967248  ;;  %v4501_v1 = vmov 0.0   ;;  %v845_v2 = vld [vmem:[#allocation3 + $0x2d8] sm:$0xff]  ;;  %v844_v3 = vld [vmem:[#allocation3 + $0x2d0] sm:$0xff]  ;;  %s5139_s29 = sadd.s32 4294967295, %s4480_s26  }
  0xdf   : > { %914 = vmatprep.mubr.f32.mxu0 %v4501_v1  ;;  %1027 = vmatprep.mubr.f32.mxu1 %v4501_v1  ;;  %v839_v4 = vld [vmem:[#allocation3 + $0x2a8] sm:$0xff]  ;;  %v838_v5 = vld [vmem:[#allocation3 + $0x2a0] sm:$0xff]  ;;  %v833_v6 = vld [vmem:[#allocation3 + $0x278] sm:$0xff]  ;;  %s4788_s0 = sshll.u32 %s5139_s29, 3  ;;  %s5140_s27 = sld [smem:[#allocation34_spill]] }
  0xe0   : > { %850 = vmatprep.subr.mxu0 %v845_v2  ;;  %v832_v7 = vld [vmem:[#allocation3 + $0x270] sm:$0xff]  ;;  %v827_v8 = vld [vmem:[#allocation3 + $0x248] sm:$0xff]  ;;  %v826_v9 = vld [vmem:[#allocation3 + $0x240] sm:$0xff]  ;;  %p735_p5 = scmp.lt.s32.totalorder %s4788_s0, 15 }
  0xe1   : > { %851 = vmatpush1.msra.mxu0 %v844_v3  ;;  %v821_v10 = vld [vmem:[#allocation3 + $0x218] sm:$0xff]  ;;  %v820_v11 = vld [vmem:[#allocation3 + $0x210] sm:$0xff]  ;;  %v815_v12 = vld [vmem:[#allocation3 + $0x1e8] sm:$0xff] }
  0xe2   : > { %852 = vmatprep.subr.mxu0 %v839_v4  ;;  %v814_v13 = vld [vmem:[#allocation3 + $0x1e0] sm:$0xff]  ;;  %v809_v14 = vld [vmem:[#allocation3 + $0x1b8] sm:$0xff]  ;;  %v808_v15 = vld [vmem:[#allocation3 + $0x1b0] sm:$0xff]  ;;  %s5142_s0 = smov (!%p735_p5, %s4788_s0), 15 }
  0xe3   : > { %853 = vmatpush1.msra.mxu0 %v838_v5  ;;  %v803_v16 = vld [vmem:[#allocation3 + $0x188] sm:$0xff]  ;;  %v802_v17 = vld [vmem:[#allocation3 + $0x180] sm:$0xff]  ;;  %v797_v20 = vld [vmem:[#allocation3 + $0x158] sm:$0xff]  ;;  %s3822_s19 = sshll.u32 %s5142_s0, 3 }
  0xe4   : > { %854 = vmatprep.subr.mxu0 %v833_v6  ;;  %v847_v18 = vld [vmem:[#allocation3 + $0x2e8] sm:$0xff]  ;;  %v846_v19 = vld [vmem:[#allocation3 + $0x2e0] sm:$0xff]  ;;  %v841_v21 = vld [vmem:[#allocation3 + $0x2b8] sm:$0xff]  ;;  %s5085_s25 = scalar_lea.vmem %s5123_s17, %s3822_s19 }
  0xe5   : > { %855 = vmatpush1.msra.mxu0 %v832_v7  ;;  %963 = vmatprep.subr.mxu1 %v847_v18  ;;  %v840_v22 = vld [vmem:[#allocation3 + $0x2b0] sm:$0xff]  ;;  %v835_v24 = vld [vmem:[#allocation3 + $0x288] sm:$0xff]  ;;  %v834_v26 = vld [vmem:[#allocation3 + $0x280] sm:$0xff]  ;;  %s4802_s28 = scalar_lea.vmem %s5140_s27, %s3822_s19 }
  0xe6   : > { %856 = vmatprep.subr.mxu0 %v827_v8  ;;  %v796_v23 = vld [vmem:[#allocation3 + $0x150] sm:$0xff]  ;;  %964 = vmatpush1.msra.mxu1 %v846_v19  ;;  %v791_v25 = vld [vmem:[#allocation3 + $0x128] sm:$0xff]  ;;  %v790_v27 = vld [vmem:[#allocation3 + $0x120] sm:$0xff] }
  0xe7   : > { %857 = vmatpush1.msra.mxu0 %v826_v9  ;;  %965 = vmatprep.subr.mxu1 %v841_v21  ;;  %v829_v28 = vld [vmem:[#allocation3 + $0x258] sm:$0xff]  ;;  %v828_v30 = vld [vmem:[#allocation3 + $0x250] sm:$0xff]  ;;  %v823_v32 = vld [vmem:[#allocation3 + $0x228] sm:$0xff] }
  0xe8   : > { %858 = vmatprep.subr.mxu0 %v821_v10  ;;  %966 = vmatpush1.msra.mxu1 %v840_v22  ;;  %v785_v29 = vld [vmem:[#allocation3 + $0xf8] sm:$0xff]  ;;  %v784_v31 = vld [vmem:[#allocation3 + $0xf0] sm:$0xff]  ;;  %v779_v33 = vld [vmem:[#allocation3 + $0xc8] sm:$0xff] }
  0xe9   : > { %859 = vmatpush1.msra.mxu0 %v820_v11  ;;  %967 = vmatprep.subr.mxu1 %v835_v24  ;;  %v822_v34 = vld [vmem:[#allocation3 + $0x220] sm:$0xff]  ;;  %v817_v36 = vld [vmem:[#allocation3 + $0x1f8] sm:$0xff]  ;;  %v816_v38 = vld [vmem:[#allocation3 + $0x1f0] sm:$0xff] }
  0xea   : > { %860 = vmatprep.subr.mxu0 %v815_v12  ;;  %968 = vmatpush1.msra.mxu1 %v834_v26  ;;  %v778_v35 = vld [vmem:[#allocation3 + $0xc0] sm:$0xff]  ;;  %v773_v37 = vld [vmem:[#allocation3 + $0x98] sm:$0xff]  ;;  %v772_v39 = vld [vmem:[#allocation3 + $0x90] sm:$0xff] }
  0xeb   : > { %861 = vmatpush1.msra.mxu0 %v814_v13  ;;  %969 = vmatprep.subr.mxu1 %v829_v28  ;;  %v811_v40 = vld [vmem:[#allocation3 + $0x1c8] sm:$0xff]  ;;  %v810_v42 = vld [vmem:[#allocation3 + $0x1c0] sm:$0xff]  ;;  %v805_v44 = vld [vmem:[#allocation3 + $0x198] sm:$0xff] }
  0xec   : > { %862 = vmatprep.subr.mxu0 %v809_v14  ;;  %970 = vmatpush1.msra.mxu1 %v828_v30  ;;  %v767_v41 = vld [vmem:[#allocation3 + $0x68] sm:$0xff]  ;;  %v766_v43 = vld [vmem:[#allocation3 + $0x60] sm:$0xff]  ;;  %v761_v45 = vld [vmem:[#allocation3 + $0x38] sm:$0xff] }
  0xed   : > { %863 = vmatpush1.msra.mxu0 %v808_v15  ;;  %971 = vmatprep.subr.mxu1 %v823_v32  ;;  %v804_v46 = vld [vmem:[#allocation3 + $0x190] sm:$0xff]  ;;  %v799_v48 = vld [vmem:[#allocation3 + $0x168] sm:$0xff]  ;;  %v798_v50 = vld [vmem:[#allocation3 + $0x160] sm:$0xff] }
  0xee   : > { %864 = vmatprep.subr.mxu0 %v803_v16  ;;  %972 = vmatpush1.msra.mxu1 %v822_v34  ;;  %v760_v47 = vld [vmem:[#allocation3 + $0x30] sm:$0xff]  ;;  %v755_v49 = vld [vmem:[#allocation3 + $0x8] sm:$0xff]  ;;  %v754_v51 = vld [vmem:[#allocation3] sm:$0xff] }
  0xef   : > { %865 = vmatpush1.msra.mxu0 %v802_v17  ;;  %973 = vmatprep.subr.mxu1 %v817_v36  ;;  %v793_v52 = vld [vmem:[#allocation3 + $0x138] sm:$0xff]  ;;  %v792_v54 = vld [vmem:[#allocation3 + $0x130] sm:$0xff]  ;;  %v787_v55 = vld [vmem:[#allocation3 + $0x108] sm:$0xff] }
  0xf0   : > { %866 = vmatprep.subr.mxu0 %v797_v20  ;;  %974 = vmatpush1.msra.mxu1 %v816_v38  ;;  %v4805_v53 = vld [vmem:[%s4802_s28] sm:$0xff]  ;;  %v4810_v58 = vld [vmem:[%s4802_s28 + $0x8] sm:$0xff]  ;;  %v780_v59 = vld [vmem:[#allocation3 + $0xd0] sm:$0xff] }
  0xf1   : > { %867 = vmatpush1.msra.mxu0 %v796_v23  ;;  %975 = vmatprep.subr.mxu1 %v811_v40  ;;  %v786_v56 = vld [vmem:[#allocation3 + $0x100] sm:$0xff]  ;;  %v781_v57 = vld [vmem:[#allocation3 + $0xd8] sm:$0xff]  ;;  %v775_v60 = vld [vmem:[#allocation3 + $0xa8] sm:$0xff] }
  0xf2   : > { %868 = vmatprep.subr.mxu0 %v791_v25  ;;  %976 = vmatpush1.msra.mxu1 %v810_v42  ;;  %v774_v61 = vld [vmem:[#allocation3 + $0xa0] sm:$0xff]  ;;  %v769_v62 = vld [vmem:[#allocation3 + $0x78] sm:$0xff]  ;;  %v4815_v63 = vld [vmem:[%s4802_s28 + $0x10] sm:$0xff] }
  0xf3   : > { %869 = vmatpush1.msra.mxu0 %v790_v27  ;;  %977 = vmatprep.subr.mxu1 %v805_v44  ;;  %v768_v0 = vld [vmem:[#allocation3 + $0x70] sm:$0xff]  ;;  %v763_v2 = vld [vmem:[#allocation3 + $0x48] sm:$0xff]  ;;  %v762_v3 = vld [vmem:[#allocation3 + $0x40] sm:$0xff] }
  0xf4   : > { %870 = vmatprep.subr.mxu0 %v785_v29  ;;  %978 = vmatpush1.msra.mxu1 %v804_v46  ;;  %v757_v4 = vld [vmem:[#allocation3 + $0x18] sm:$0xff]  ;;  %v756_v6 = vld [vmem:[#allocation3 + $0x10] sm:$0xff]  ;;  %v1264_v7 = vld [vmem:[#allocation5 + $0x9e0] sm:$0xff] }
  0xf5   : > { %871 = vmatpush1.msra.mxu0 %v784_v31  ;;  %979 = vmatprep.subr.mxu1 %v799_v48  ;;  %v4820_v5 = vld [vmem:[%s4802_s28 + $0x18] sm:$0xff]  ;;  %v4825_v9 = vld [vmem:[%s4802_s28 + $0x20] sm:$0xff]  ;;  %v1259_v13 = vld [vmem:[#allocation5 + $0x888] sm:$0xff] }
  0xf6   : > { %872 = vmatprep.subr.mxu0 %v779_v33  ;;  %980 = vmatpush1.msra.mxu1 %v798_v50  ;;  %v1263_v8 = vld [vmem:[#allocation5 + $0x9d8] sm:$0xff]  ;;  %v1261_v11 = vld [vmem:[#allocation5 + $0x930] sm:$0xff]  ;;  %v4832_v14 = vld [vmem:[%s4802_s28 + $0x28] sm:$0xff] }
  0xf7   : > { %873 = vmatpush1.msra.mxu0 %v778_v35  ;;  %981 = vmatprep.subr.mxu1 %v793_v52  ;;  %v1262_v10 = vld [vmem:[#allocation5 + $0x938] sm:$0xff]  ;;  %v1260_v12 = vld [vmem:[#allocation5 + $0x890] sm:$0xff]  ;;  %v1258_v15 = vld [vmem:[#allocation5 + $0x7e8] sm:$0xff] }
  0xf8   : > { %874 = vmatprep.subr.mxu0 %v773_v37  ;;  %982 = vmatpush1.msra.mxu1 %v792_v54  ;;  %v1257_v16 = vld [vmem:[#allocation5 + $0x7e0] sm:$0xff]  ;;  %v1255_v18 = vld [vmem:[#allocation5 + $0x738] sm:$0xff]  ;;  %v4839_v19 = vld [vmem:[%s4802_s28 + $0x30] sm:$0xff] }
  0xf9   : > { %875 = vmatpush1.msra.mxu0 %v772_v39  ;;  %983 = vmatprep.subr.mxu1 %v787_v55  ;;  %v1256_v17 = vld [vmem:[#allocation5 + $0x740] sm:$0xff]  ;;  %v1254_v20 = vld [vmem:[#allocation5 + $0x698] sm:$0xff]  ;;  %v1253_v21 = vld [vmem:[#allocation5 + $0x690] sm:$0xff] }
  0xfa   : > { %876 = vmatprep.subr.mxu0 %v767_v41  ;;  %984 = vmatpush1.msra.mxu1 %v786_v56  ;;  %v1252_v22 = vld [vmem:[#allocation5 + $0x5f0] sm:$0xff]  ;;  %v1251_v23 = vld [vmem:[#allocation5 + $0x5e8] sm:$0xff]  ;;  %v1249_v26 = vld [vmem:[#allocation5 + $0x540] sm:$0xff] }
  0xfb   : > { %877 = vmatpush1.msra.mxu0 %v766_v43  ;;  %985 = vmatprep.subr.mxu1 %v781_v57  ;;  %v4846_v24 = vld [vmem:[%s4802_s28 + $0x38] sm:$0xff]  ;;  %v1250_v25 = vld [vmem:[#allocation5 + $0x548] sm:$0xff]  ;;  %v1248_v27 = vld [vmem:[#allocation5 + $0x4a0] sm:$0xff] }
  0xfc   : > { %878 = vmatprep.subr.mxu0 %v761_v45  ;;  %986 = vmatpush1.msra.mxu1 %v780_v59  ;;  %v1247_v28 = vld [vmem:[#allocation5 + $0x498] sm:$0xff]  ;;  %v1245_v30 = vld [vmem:[#allocation5 + $0x3f0] sm:$0xff]  ;;  %v1243_v32 = vld [vmem:[#allocation5 + $0x348] sm:$0xff] }
  0xfd   : > { %879 = vmatpush1.msra.mxu0 %v760_v47  ;;  %987 = vmatprep.subr.mxu1 %v775_v60  ;;  %v1246_v29 = vld [vmem:[#allocation5 + $0x3f8] sm:$0xff]  ;;  %v1244_v31 = vld [vmem:[#allocation5 + $0x350] sm:$0xff]  ;;  %v1242_v33 = vld [vmem:[#allocation5 + $0x2a8] sm:$0xff] }
  0xfe   : > { %880 = vmatprep.subr.mxu0 %v755_v49  ;;  %988 = vmatpush1.msra.mxu1 %v774_v61  ;;  %v1241_v34 = vld [vmem:[#allocation5 + $0x2a0] sm:$0xff]  ;;  %v1239_v36 = vld [vmem:[#allocation5 + $0x1f8] sm:$0xff]  ;;  %v1237_v38 = vld [vmem:[#allocation5 + $0x150] sm:$0xff] }
  0xff   : > { %881 = vmatpush1.msra.mxu0 %v754_v51  ;;  %989 = vmatprep.subr.mxu1 %v769_v62  ;;  %v1240_v35 = vld [vmem:[#allocation5 + $0x200] sm:$0xff]  ;;  %v1238_v37 = vld [vmem:[#allocation5 + $0x158] sm:$0xff]  ;;  %v1236_v39 = vld [vmem:[#allocation5 + $0xb0] sm:$0xff] }
 0x100   : > { %915 = vmatmul.mubr.f32.vlgmr.msra.gmra.mxu0 %v4805_v53  ;;  %990 = vmatpush1.msra.mxu1 %v768_v0  ;;  %v1235_v40 = vld [vmem:[#allocation5 + $0xa8] sm:$0xff]  ;;  %v1233_v42 = vld [vmem:[#allocation5] sm:$0xff]  ;;  %v1295_v44 = vld [vmem:[#allocation5 + $0x1458] sm:$0xff] }
 0x101   : > { %920 = vmatprep.mubr.f32.mxu0 %v4501_v1  ;;  %991 = vmatprep.subr.mxu1 %v763_v2  ;;  %v1234_v41 = vld [vmem:[#allocation5 + $0x8] sm:$0xff]  ;;  %v1296_v43 = vld [vmem:[#allocation5 + $0x1460] sm:$0xff]  ;;  %v1294_v45 = vld [vmem:[#allocation5 + $0x13b8] sm:$0xff] }
 0x102   : > { %992 = vmatpush1.msra.mxu1 %v762_v3  ;;  %v1293_v46 = vld [vmem:[#allocation5 + $0x13b0] sm:$0xff]  ;;  %v1291_v48 = vld [vmem:[#allocation5 + $0x1308] sm:$0xff]  ;;  %v1289_v50 = vld [vmem:[#allocation5 + $0x1260] sm:$0xff] }
 0x103   : > { %993 = vmatprep.subr.mxu1 %v757_v4  ;;  %v1292_v47 = vld [vmem:[#allocation5 + $0x1310] sm:$0xff]  ;;  %v1290_v49 = vld [vmem:[#allocation5 + $0x1268] sm:$0xff]  ;;  %v1288_v51 = vld [vmem:[#allocation5 + $0x11c0] sm:$0xff] }
 0x104   : > { %921 = vmatmul.mubr.f32.gmra.mxu0 %v4810_v58  ;;  %994 = vmatpush1.msra.mxu1 %v756_v6  ;;  %v1287_v52 = vld [vmem:[#allocation5 + $0x11b8] sm:$0xff]  ;;  %v1285_v55 = vld [vmem:[#allocation5 + $0x1110] sm:$0xff]  ;;  %v1283_v57 = vld [vmem:[#allocation5 + $0x1068] sm:$0xff] }
 0x105   : > { %926 = vmatprep.mubr.f32.mxu0 %v4501_v1  ;;  %1028 = vmatmul.mubr.f32.vlgmr.msra.gmra.mxu1 %v4805_v53  ;;  %v1286_v54 = vld [vmem:[#allocation5 + $0x1118] sm:$0xff]  ;;  %v1284_v56 = vld [vmem:[#allocation5 + $0x1070] sm:$0xff]  ;;  %v1282_v59 = vld [vmem:[#allocation5 + $0xfc8] sm:$0xff] }
 0x106   : > { %1309 = vmatprep.subr.mxu1 %v1264_v7  ;;  %1033 = vmatprep.mubr.f32.mxu1 %v4501_v1  ;;  %v1281_v60 = vld [vmem:[#allocation5 + $0xfc0] sm:$0xff]  ;;  %v1279_v62 = vld [vmem:[#allocation5 + $0xf18] sm:$0xff]  ;;  %v1277_v2 = vld [vmem:[#allocation5 + $0xe70] sm:$0xff] }
 0x107   : > { %1310 = vmatpush1.msra.mxu1 %v1263_v8  ;;  %v1280_v61 = vld [vmem:[#allocation5 + $0xf20] sm:$0xff]  ;;  %v1278_v0 = vld [vmem:[#allocation5 + $0xe78] sm:$0xff]  ;;  %v1276_v3 = vld [vmem:[#allocation5 + $0xdd0] sm:$0xff] }
 0x108   : > { %927 = vmatmul.mubr.f32.gmra.mxu0 %v4815_v63  ;;  %1311 = vmatprep.subr.mxu1 %v1262_v10  ;;  %v1275_v4 = vld [vmem:[#allocation5 + $0xdc8] sm:$0xff]  ;;  %v1273_v7 = vld [vmem:[#allocation5 + $0xd20] sm:$0xff]  ;;  %v1271_v10 = vld [vmem:[#allocation5 + $0xc78] sm:$0xff] }
 0x109   : > { %932 = vmatprep.mubr.f32.mxu0 %v4501_v1  ;;  %1312 = vmatpush1.msra.mxu1 %v1261_v11  ;;  %v1274_v6 = vld [vmem:[#allocation5 + $0xd28] sm:$0xff]  ;;  %v1272_v8 = vld [vmem:[#allocation5 + $0xc80] sm:$0xff]  ;;  %v1270_v11 = vld [vmem:[#allocation5 + $0xbd8] sm:$0xff] }
 0x10a   : > { %1313 = vmatprep.subr.mxu1 %v1260_v12  ;;  %1034 = vmatmul.mubr.f32.gmra.mxu1 %v4810_v58  ;;  %v1269_v12 = vld [vmem:[#allocation5 + $0xbd0] sm:$0xff] }
 0x10b   : > { %1314 = vmatpush1.msra.mxu1 %v1259_v13  ;;  %1039 = vmatprep.mubr.f32.mxu1 %v4501_v1  ;;  %v1268_v13 = vld [vmem:[#allocation5 + $0xb30] sm:$0xff] }
 0x10c   : > { %933 = vmatmul.mubr.f32.gmra.mxu0 %v4820_v5  ;;  %1315 = vmatprep.subr.mxu1 %v1258_v15  ;;  %v1267_v15 = vld [vmem:[#allocation5 + $0xb28] sm:$0xff] }
 0x10d   : > { %938 = vmatprep.mubr.f32.mxu0 %v4501_v1  ;;  %1316 = vmatpush1.msra.mxu1 %v1257_v16  ;;  %v1266_v16 = vld [vmem:[#allocation5 + $0xa88] sm:$0xff] }
 0x10e   : > { %1317 = vmatprep.subr.mxu1 %v1256_v17  ;;  %1040 = vmatmul.mubr.f32.gmra.mxu1 %v4815_v63  ;;  %v1265_v17 = vld [vmem:[#allocation5 + $0xa80] sm:$0xff] }
 0x10f   : > { %1318 = vmatpush1.msra.mxu1 %v1255_v18  ;;  %1045 = vmatprep.mubr.f32.mxu1 %v4501_v1  ;;  %v849_v18 = vld [vmem:[#allocation3 + $0x2f8] sm:$0xff] }
 0x110   : > { %939 = vmatmul.mubr.f32.gmra.mxu0 %v4825_v9  ;;  %1319 = vmatprep.subr.mxu1 %v1254_v20  ;;  %v848_v20 = vld [vmem:[#allocation3 + $0x2f0] sm:$0xff] }
 0x111   : > { %944 = vmatprep.mubr.f32.mxu0 %v4501_v1  ;;  %1320 = vmatpush1.msra.mxu1 %v1253_v21  ;;  %v843_v21 = vld [vmem:[#allocation3 + $0x2c8] sm:$0xff] }
 0x112   : > { %1321 = vmatprep.subr.mxu1 %v1252_v22  ;;  %1046 = vmatmul.mubr.f32.gmra.mxu1 %v4820_v5  ;;  %v842_v22 = vld [vmem:[#allocation3 + $0x2c0] sm:$0xff] }
 0x113   : > { %1322 = vmatpush1.msra.mxu1 %v1251_v23  ;;  %1051 = vmatprep.mubr.f32.mxu1 %v4501_v1  ;;  %v837_v23 = vld [vmem:[#allocation3 + $0x298] sm:$0xff] }
 0x114   : > { %945 = vmatmul.mubr.f32.gmra.mxu0 %v4832_v14  ;;  %1323 = vmatprep.subr.mxu1 %v1250_v25  ;;  %v836_v25 = vld [vmem:[#allocation3 + $0x290] sm:$0xff] }
 0x115   : > { %950 = vmatprep.mubr.f32.mxu0 %v4501_v1  ;;  %1324 = vmatpush1.msra.mxu1 %v1249_v26  ;;  %v831_v26 = vld [vmem:[#allocation3 + $0x268] sm:$0xff] }
 0x116   : > { %1325 = vmatprep.subr.mxu1 %v1248_v27  ;;  %1052 = vmatmul.mubr.f32.gmra.mxu1 %v4825_v9  ;;  %v830_v27 = vld [vmem:[#allocation3 + $0x260] sm:$0xff] }
 0x117   : > { %1326 = vmatpush1.msra.mxu1 %v1247_v28  ;;  %1057 = vmatprep.mubr.f32.mxu1 %v4501_v1  ;;  %v825_v28 = vld [vmem:[#allocation3 + $0x238] sm:$0xff] }
 0x118   : > { %951 = vmatmul.mubr.f32.gmra.mxu0 %v4839_v19  ;;  %1327 = vmatprep.subr.mxu1 %v1246_v29  ;;  %v824_v29 = vld [vmem:[#allocation3 + $0x230] sm:$0xff] }
 0x119   : > { %956 = vmatprep.mubr.f32.mxu0 %v4501_v1  ;;  %1328 = vmatpush1.msra.mxu1 %v1245_v30  ;;  %v819_v30 = vld [vmem:[#allocation3 + $0x208] sm:$0xff] }
 0x11a   : > { %1329 = vmatprep.subr.mxu1 %v1244_v31  ;;  %1058 = vmatmul.mubr.f32.gmra.mxu1 %v4832_v14  ;;  %v818_v31 = vld [vmem:[#allocation3 + $0x200] sm:$0xff] }
 0x11b   : > { %1330 = vmatpush1.msra.mxu1 %v1243_v32  ;;  %1063 = vmatprep.mubr.f32.mxu1 %v4501_v1  ;;  %v813_v32 = vld [vmem:[#allocation3 + $0x1d8] sm:$0xff] }
 0x11c   : > { %957 = vmatmul.mubr.f32.gmra.mxu0 %v4846_v24  ;;  %1331 = vmatprep.subr.mxu1 %v1242_v33  ;;  %v812_v33 = vld [vmem:[#allocation3 + $0x1d0] sm:$0xff] }
 0x11d   : > { %1140 = vmatprep.mubr.f32.mxu0 %v4501_v1  ;;  %1332 = vmatpush1.msra.mxu1 %v1241_v34  ;;  %v807_v34 = vld [vmem:[#allocation3 + $0x1a8] sm:$0xff] }
 0x11e   : > { %1333 = vmatprep.subr.mxu1 %v1240_v35  ;;  %1064 = vmatmul.mubr.f32.gmra.mxu1 %v4839_v19  ;;  %v806_v35 = vld [vmem:[#allocation3 + $0x1a0] sm:$0xff] }
 0x11f   : > { %1334 = vmatpush1.msra.mxu1 %v1239_v36  ;;  %1069 = vmatprep.mubr.f32.mxu1 %v4501_v1  ;;  %v801_v36 = vld [vmem:[#allocation3 + $0x178] sm:$0xff] }
 0x120   : > { %1335 = vmatprep.subr.mxu1 %v1238_v37  ;;  %1076 = vmatprep.subr.mxu0 %v849_v18  ;;  %v800_v37 = vld [vmem:[#allocation3 + $0x170] sm:$0xff]  ;;  %v1441_v18 = vld [vmem:[#allocation5 + $0xc0] sm:$0xff] }
 0x121   : > { %1336 = vmatpush1.msra.mxu1 %v1237_v38  ;;  %1077 = vmatpush1.msra.mxu0 %v848_v20  ;;  %v795_v38 = vld [vmem:[#allocation3 + $0x148] sm:$0xff]  ;;  %v1440_v20 = vld [vmem:[#allocation5 + $0xb8] sm:$0xff] }
 0x122   : > { %1337 = vmatprep.subr.mxu1 %v1236_v39  ;;  %1070 = vmatmul.mubr.f32.gmra.mxu1 %v4846_v24  ;;  %v794_v39 = vld [vmem:[#allocation3 + $0x140] sm:$0xff] }
 0x123   : > { %1338 = vmatpush1.msra.mxu1 %v1235_v40  ;;  %1078 = vmatprep.subr.mxu0 %v843_v21  ;;  %v789_v40 = vld [vmem:[#allocation3 + $0x118] sm:$0xff]  ;;  %v1438_v21 = vld [vmem:[#allocation5 + $0x10] sm:$0xff] }
 0x124   : > { %1339 = vmatprep.subr.mxu1 %v1234_v41  ;;  %1079 = vmatpush1.msra.mxu0 %v842_v22  ;;  %v788_v41 = vld [vmem:[#allocation3 + $0x110] sm:$0xff] }
 0x125   : > { %1340 = vmatpush1.msra.mxu1 %v1233_v42  ;;  %1080 = vmatprep.subr.mxu0 %v837_v23  ;;  %v783_v42 = vld [vmem:[#allocation3 + $0xe8] sm:$0xff]  ;;  %v1501_v22 = vld [vmem:[#allocation5 + $0x1470] sm:$0xff] }
 0x126   : > { %1341 = vmatprep.subr.mxu1 %v1296_v43  ;;  %1081 = vmatpush1.msra.mxu0 %v836_v25  ;;  %v782_v43 = vld [vmem:[#allocation3 + $0xe0] sm:$0xff]  ;;  %v1500_v23 = vld [vmem:[#allocation5 + $0x1468] sm:$0xff] }
 0x127   : > { %1342 = vmatpush2.msra.mxu1 %v1295_v44  ;;  %1082 = vmatprep.subr.mxu0 %v831_v26  ;;  %v777_v44 = vld [vmem:[#allocation3 + $0xb8] sm:$0xff]  ;;  %v1499_v25 = vld [vmem:[#allocation5 + $0x13c8] sm:$0xff]  ;;  %v1497_v26 = vld [vmem:[#allocation5 + $0x1320] sm:$0xff] }
 0x128   : > { %1343 = vmatprep.subr.mxu1 %v1294_v45  ;;  %1083 = vmatpush1.msra.mxu0 %v830_v27  ;;  %v776_v45 = vld [vmem:[#allocation3 + $0xb0] sm:$0xff]  ;;  %v1495_v27 = vld [vmem:[#allocation5 + $0x1278] sm:$0xff] }
 0x129   : > { %1344 = vmatpush2.msra.mxu1 %v1293_v46  ;;  %1084 = vmatprep.subr.mxu0 %v825_v28  ;;  %v771_v46 = vld [vmem:[#allocation3 + $0x88] sm:$0xff]  ;;  %v1494_v28 = vld [vmem:[#allocation5 + $0x1270] sm:$0xff] }
 0x12a   : > { %1345 = vmatprep.subr.mxu1 %v1292_v47  ;;  %1085 = vmatpush1.msra.mxu0 %v824_v29  ;;  %v770_v47 = vld [vmem:[#allocation3 + $0x80] sm:$0xff]  ;;  %v1493_v29 = vld [vmem:[#allocation5 + $0x11d0] sm:$0xff] }
 0x12b   : > { %1346 = vmatpush2.msra.mxu1 %v1291_v48  ;;  %1086 = vmatprep.subr.mxu0 %v819_v30  ;;  %v765_v48 = vld [vmem:[#allocation3 + $0x58] sm:$0xff]  ;;  %v1491_v30 = vld [vmem:[#allocation5 + $0x1128] sm:$0xff] }
 0x12c   : > { %1347 = vmatprep.subr.mxu1 %v1290_v49  ;;  %1087 = vmatpush1.msra.mxu0 %v818_v31  ;;  %v764_v49 = vld [vmem:[#allocation3 + $0x50] sm:$0xff]  ;;  %v1490_v31 = vld [vmem:[#allocation5 + $0x1120] sm:$0xff] }
 0x12d   : > { %1348 = vmatpush2.msra.mxu1 %v1289_v50  ;;  %1088 = vmatprep.subr.mxu0 %v813_v32  ;;  %v759_v50 = vld [vmem:[#allocation3 + $0x28] sm:$0xff]  ;;  %v1489_v32 = vld [vmem:[#allocation5 + $0x1080] sm:$0xff] }
 0x12e   : > { %1349 = vmatprep.subr.mxu1 %v1288_v51  ;;  %1089 = vmatpush1.msra.mxu0 %v812_v33  ;;  %v758_v51 = vld [vmem:[#allocation3 + $0x20] sm:$0xff]  ;;  %v1488_v33 = vld [vmem:[#allocation5 + $0x1078] sm:$0xff] }
 0x12f   : > { %1350 = vmatpush2.msra.mxu1 %v1287_v52  ;;  %1090 = vmatprep.subr.mxu0 %v807_v34  ;;  %v1469_v52 = vld [vmem:[#allocation5 + $0x9f0] sm:$0xff]  ;;  %v1487_v34 = vld [vmem:[#allocation5 + $0xfd8] sm:$0xff] }
 0x130   : > { %1351 = vmatprep.subr.mxu1 %v1286_v54  ;;  %1091 = vmatpush1.msra.mxu0 %v806_v35  ;;  %v1468_v54 = vld [vmem:[#allocation5 + $0x9e8] sm:$0xff]  ;;  %v1486_v35 = vld [vmem:[#allocation5 + $0xfd0] sm:$0xff] }
 0x131   : > { %1352 = vmatpush2.msra.mxu1 %v1285_v55  ;;  %1092 = vmatprep.subr.mxu0 %v801_v36  ;;  %v1467_v55 = vld [vmem:[#allocation5 + $0x948] sm:$0xff]  ;;  %v1191_v36 = vlaneseq }
 0x132   : > { %1353 = vmatprep.subr.mxu1 %v1284_v56  ;;  %1093 = vmatpush1.msra.mxu0 %v800_v37  ;;  %v1466_v56 = vld [vmem:[#allocation5 + $0x940] sm:$0xff]  ;;  %v1485_v37 = vld [vmem:[#allocation5 + $0xf30] sm:$0xff] }
 0x133   : > { %1354 = vmatpush2.msra.mxu1 %v1283_v57  ;;  %1094 = vmatprep.subr.mxu0 %v795_v38  ;;  %v1465_v57 = vld [vmem:[#allocation5 + $0x8a0] sm:$0xff]  ;;  %v1484_v38 = vld [vmem:[#allocation5 + $0xf28] sm:$0xff] }
 0x134   : > { %1355 = vmatprep.subr.mxu1 %v1282_v59  ;;  %1095 = vmatpush1.msra.mxu0 %v794_v39  ;;  %v1464_v59 = vld [vmem:[#allocation5 + $0x898] sm:$0xff]  ;;  %v1483_v39 = vld [vmem:[#allocation5 + $0xe88] sm:$0xff] }
 0x135   : > { %1356 = vmatpush2.msra.mxu1 %v1281_v60  ;;  %1096 = vmatprep.subr.mxu0 %v789_v40  ;;  %v1463_v60 = vld [vmem:[#allocation5 + $0x7f8] sm:$0xff]  ;;  %v1482_v40 = vld [vmem:[#allocation5 + $0xe80] sm:$0xff] }
 0x136   : > { %1357 = vmatprep.subr.mxu1 %v1280_v61  ;;  %1097 = vmatpush1.msra.mxu0 %v788_v41  ;;  %v1462_v61 = vld [vmem:[#allocation5 + $0x7f0] sm:$0xff]  ;;  %v1192_v41 = vshrl.u32 %v1191_v36, 7 }
 0x137   : > { %1358 = vmatpush2.msra.mxu1 %v1279_v62  ;;  %1098 = vmatprep.subr.mxu0 %v783_v42  ;;  %v1461_v62 = vld [vmem:[#allocation5 + $0x750] sm:$0xff]  ;;  %v1481_v42 = vld [vmem:[#allocation5 + $0xde0] sm:$0xff] }
 0x138   : > { %1359 = vmatprep.subr.mxu1 %v1278_v0  ;;  %1099 = vmatpush1.msra.mxu0 %v782_v43  ;;  %v1459_v0 = vld [vmem:[#allocation5 + $0x6a8] sm:$0xff]  ;;  %v1480_v43 = vld [vmem:[#allocation5 + $0xdd8] sm:$0xff] }
 0x139   : > { %1360 = vmatpush2.msra.mxu1 %v1277_v2  ;;  %1100 = vmatprep.subr.mxu0 %v777_v44  ;;  %v1458_v2 = vld [vmem:[#allocation5 + $0x6a0] sm:$0xff]  ;;  %v1479_v44 = vld [vmem:[#allocation5 + $0xd38] sm:$0xff] }
 0x13a   : > { %1361 = vmatprep.subr.mxu1 %v1276_v3  ;;  %1101 = vmatpush1.msra.mxu0 %v776_v45  ;;  %v1457_v3 = vld [vmem:[#allocation5 + $0x600] sm:$0xff]  ;;  %v1478_v45 = vld [vmem:[#allocation5 + $0xd30] sm:$0xff] }
 0x13b   : > { %1362 = vmatpush2.msra.mxu1 %v1275_v4  ;;  %1102 = vmatprep.subr.mxu0 %v771_v46  ;;  %v1456_v4 = vld [vmem:[#allocation5 + $0x5f8] sm:$0xff]  ;;  %v4875_v46 = vsub.s32 0, %v1192_v41 }
 0x13c   : > { %1363 = vmatprep.subr.mxu1 %v1274_v6  ;;  %1103 = vmatpush1.msra.mxu0 %v770_v47  ;;  %v1454_v6 = vld [vmem:[#allocation5 + $0x550] sm:$0xff]  ;;  %v1189_v47 = vld [vmem:[#allocation8] sm:$0x3] }
 0x13d   : > { %1364 = vmatpush2.msra.mxu1 %v1273_v7  ;;  %1104 = vmatprep.subr.mxu0 %v765_v48  ;;  %v1453_v7 = vld [vmem:[#allocation5 + $0x4b0] sm:$0xff]  ;;  %v4877_v48 = vsub.s32 1, %v1192_v41  ;;  %v1472_v41 = vld [vmem:[#allocation5 + $0xb38] sm:$0xff] }
 0x13e   : > { %1365 = vmatprep.subr.mxu1 %v1272_v8  ;;  %1105 = vmatpush1.msra.mxu0 %v764_v49  ;;  %v1452_v8 = vld [vmem:[#allocation5 + $0x4a8] sm:$0xff]  ;;  %v1194_v49 = vrot.slane %v1189_v47, %v4875_v46 }
 0x13f   : > { %1366 = vmatpush2.msra.mxu1 %v1271_v10  ;;  %1106 = vmatprep.subr.mxu0 %v759_v50  ;;  %v1450_v10 = vld [vmem:[#allocation5 + $0x400] sm:$0xff]  ;;  %v1198_v50 = vrot.slane %v1189_v47, %v4877_v48  ;;  %v1672_v47 = vld [vmem:[#allocation5 + $0x958] sm:$0xff] }
 0x140   : > { %1367 = vmatprep.subr.mxu1 %v1270_v11  ;;  %1107 = vmatpush1.msra.mxu0 %v758_v51  ;;  %v1449_v11 = vld [vmem:[#allocation5 + $0x360] sm:$0xff] }
 0x141   : > { %1368 = vmatpush2.msra.mxu1 %v1269_v12  ;;  %1141 = vmatmul.mubr.f32.vlgmr.msra.gmra.mxu0 %v4805_v53  ;;  %v1460_v53 = vld [vmem:[#allocation5 + $0x748] sm:$0xff]  ;;  %v1448_v12 = vld [vmem:[#allocation5 + $0x358] sm:$0xff] }
 0x142   : > { %1369 = vmatprep.subr.mxu1 %v1268_v13  ;;  %1514 = vmatprep.subr.mxu0 %v1469_v52  ;;  %v1446_v13 = vld [vmem:[#allocation5 + $0x2b0] sm:$0xff] }
 0x143   : > { %1370 = vmatpush2.msra.mxu1 %v1267_v15  ;;  %1515 = vmatpush1.msra.mxu0 %v1468_v54  ;;  %v1445_v15 = vld [vmem:[#allocation5 + $0x210] sm:$0xff] }
 0x144   : > { %1371 = vmatprep.subr.mxu1 %v1266_v16  ;;  %1146 = vmatprep.mubr.f32.mxu0 %v4501_v1  ;;  %v1444_v16 = vld [vmem:[#allocation5 + $0x208] sm:$0xff] }
 0x145   : > { %1372 = vmatpush2.msra.mxu1 %v1265_v17  ;;  %1516 = vmatprep.subr.mxu0 %v1467_v55  ;;  %v1442_v17 = vld [vmem:[#allocation5 + $0x160] sm:$0xff] }
 0x146   : > { %1517 = vmatpush1.msra.mxu0 %v1466_v56 }
 0x147   : > { %1518 = vmatprep.subr.mxu0 %v1465_v57  ;;  %1147 = vmatmul.mubr.f32.gmra.mxu0 %v4810_v58  ;;  %v1455_v58 = vld [vmem:[#allocation5 + $0x558] sm:$0xff] }
 0x148   : > { %1519 = vmatpush1.msra.mxu0 %v1464_v59  ;;  %1152 = vmatprep.mubr.f32.mxu0 %v4501_v1 }
 0x149   : > { %1520 = vmatprep.subr.mxu0 %v1463_v60 }
 0x14a   : > { %1521 = vmatpush1.msra.mxu0 %v1462_v61 }
 0x14b   : > { %1522 = vmatprep.subr.mxu0 %v1461_v62  ;;  %1153 = vmatmul.mubr.f32.gmra.mxu0 %v4815_v63  ;;  %v1451_v63 = vld [vmem:[#allocation5 + $0x408] sm:$0xff] }
 0x14c   : > { %1523 = vmatpush1.msra.mxu0 %v1460_v53  ;;  %1158 = vmatprep.mubr.f32.mxu0 %v4501_v1 }
 0x14d   : > { %1524 = vmatprep.subr.mxu0 %v1459_v0 }
 0x14e   : > { %1525 = vmatpush1.msra.mxu0 %v1458_v2 }
 0x14f   : > { %1526 = vmatprep.subr.mxu0 %v1457_v3  ;;  %1159 = vmatmul.mubr.f32.gmra.mxu0 %v4820_v5  ;;  %v1447_v5 = vld [vmem:[#allocation5 + $0x2b8] sm:$0xff] }
 0x150   : > { %1527 = vmatpush1.msra.mxu0 %v1456_v4  ;;  %1164 = vmatprep.mubr.f32.mxu0 %v4501_v1 }
 0x151   : > { %1528 = vmatprep.subr.mxu0 %v1455_v58 }
 0x152   : > { %1529 = vmatpush1.msra.mxu0 %v1454_v6 }
 0x153   : > { %1530 = vmatprep.subr.mxu0 %v1453_v7  ;;  %1165 = vmatmul.mubr.f32.gmra.mxu0 %v4825_v9  ;;  %v1443_v9 = vld [vmem:[#allocation5 + $0x168] sm:$0xff] }
 0x154   : > { %1531 = vmatpush1.msra.mxu0 %v1452_v8  ;;  %1170 = vmatprep.mubr.f32.mxu0 %v4501_v1 }
 0x155   : > { %1532 = vmatprep.subr.mxu0 %v1451_v63 }
 0x156   : > { %1533 = vmatpush1.msra.mxu0 %v1450_v10 }
 0x157   : > { %1534 = vmatprep.subr.mxu0 %v1449_v11  ;;  %1171 = vmatmul.mubr.f32.gmra.mxu0 %v4832_v14  ;;  %v1439_v14 = vld [vmem:[#allocation5 + $0x18] sm:$0xff] }
 0x158   : > { %1535 = vmatpush1.msra.mxu0 %v1448_v12  ;;  %1176 = vmatprep.mubr.f32.mxu0 %v4501_v1 }
 0x159   : > { %1536 = vmatprep.subr.mxu0 %v1447_v5 }
 0x15a   : > { %1537 = vmatpush1.msra.mxu0 %v1446_v13 }
 0x15b   : > { %1538 = vmatprep.subr.mxu0 %v1445_v15  ;;  %1177 = vmatmul.mubr.f32.gmra.mxu0 %v4839_v19  ;;  %v1498_v19 = vld [vmem:[#allocation5 + $0x13c0] sm:$0xff] }
 0x15c   : > { %1539 = vmatpush1.msra.mxu0 %v1444_v16  ;;  %1182 = vmatprep.mubr.f32.mxu0 %v4501_v1  ;;  %v1496_v1 = vld [vmem:[#allocation5 + $0x1318] sm:$0xff] }
 0x15d   : > { %1540 = vmatprep.subr.mxu0 %v1443_v9 }
 0x15e   : > { %1541 = vmatpush1.msra.mxu0 %v1442_v17 }
 0x15f   : > { %1542 = vmatprep.subr.mxu0 %v1441_v18  ;;  %1183 = vmatmul.mubr.f32.gmra.mxu0 %v4846_v24  ;;  %v1492_v24 = vld [vmem:[#allocation5 + $0x11c8] sm:$0xff] }
 0x160   : > { %1543 = vmatpush1.msra.mxu0 %v1440_v20 }
 0x161   : > { %1544 = vmatprep.subr.mxu0 %v1439_v14 }
 0x162   : > { %1545 = vmatpush1.msra.mxu0 %v1438_v21 }
 0x163   : > { %1546 = vmatprep.subr.mxu0 %v1501_v22 }
 0x164   : > { %1547 = vmatpush2.msra.mxu0 %v1500_v23 }
 0x165   : > { %1548 = vmatprep.subr.mxu0 %v1499_v25 }
 0x166   : > { %1549 = vmatpush2.msra.mxu0 %v1498_v19 }
 0x167   : > { %1550 = vmatprep.subr.mxu0 %v1497_v26 }
 0x168   : > { %1551 = vmatpush2.msra.mxu0 %v1496_v1 }
 0x169   : > { %1552 = vmatprep.subr.mxu0 %v1495_v27 }
 0x16a   : > { %1553 = vmatpush2.msra.mxu0 %v1494_v28 }
 0x16b   : > { %1554 = vmatprep.subr.mxu0 %v1493_v29 }
 0x16c   : > { %1555 = vmatpush2.msra.mxu0 %v1492_v24 }
 0x16d   : > { %1556 = vmatprep.subr.mxu0 %v1491_v30 }
 0x16e   : > { %1557 = vmatpush2.msra.mxu0 %v1490_v31 }
 0x16f   : > { %1558 = vmatprep.subr.mxu0 %v1489_v32 }
 0x170   : > { %1559 = vmatpush2.msra.mxu0 %v1488_v33 }
 0x171   : > { %1560 = vmatprep.subr.mxu0 %v1487_v34 }
 0x172   : > { %1561 = vmatpush2.msra.mxu0 %v1486_v35  ;;  %v1477_v35 = vld [vmem:[#allocation5 + $0xc90] sm:$0xff] }
 0x173   : > { %1562 = vmatprep.subr.mxu0 %v1485_v37  ;;  %v1476_v37 = vld [vmem:[#allocation5 + $0xc88] sm:$0xff] }
 0x174   : > { %1563 = vmatpush2.msra.mxu0 %v1484_v38  ;;  %v1475_v38 = vld [vmem:[#allocation5 + $0xbe8] sm:$0xff] }
 0x175   : > { %1564 = vmatprep.subr.mxu0 %v1483_v39  ;;  %v1474_v39 = vld [vmem:[#allocation5 + $0xbe0] sm:$0xff] }
 0x176   : > { %1565 = vmatpush2.msra.mxu0 %v1482_v40  ;;  %v1473_v40 = vld [vmem:[#allocation5 + $0xb40] sm:$0xff] }
 0x177   : > { %1566 = vmatprep.subr.mxu0 %v1481_v42  ;;  %v1471_v42 = vld [vmem:[#allocation5 + $0xa98] sm:$0xff] }
 0x178   : > { %1567 = vmatpush2.msra.mxu0 %v1480_v43  ;;  %v1470_v43 = vld [vmem:[#allocation5 + $0xa90] sm:$0xff] }
 0x179   : > { %1568 = vmatprep.subr.mxu0 %v1479_v44  ;;  %v1674_v44 = vld [vmem:[#allocation5 + $0xa00] sm:$0xff] }
 0x17a   : > { %1569 = vmatpush2.msra.mxu0 %v1478_v45  ;;  %v1673_v45 = vld [vmem:[#allocation5 + $0x9f8] sm:$0xff]  ;;  %1719 = vmatprep.subr.mxu1 %v1674_v44  ;;  %v1683_v44 = vld [vmem:[#allocation5 + $0xd40] sm:$0xff] }
 0x17b   : > { %1570 = vmatprep.subr.mxu0 %v1477_v35  ;;  %v1690_v35 = vld [vmem:[#allocation5 + $0xf40] sm:$0xff] }
 0x17c   : > { %1571 = vmatpush2.msra.mxu0 %v1476_v37  ;;  %v1689_v37 = vld [vmem:[#allocation5 + $0xf38] sm:$0xff] }
 0x17d   : > { %1572 = vmatprep.subr.mxu0 %v1475_v38  ;;  %v1688_v38 = vld [vmem:[#allocation5 + $0xe98] sm:$0xff] }
 0x17e   : > { %1573 = vmatpush2.msra.mxu0 %v1474_v39  ;;  %v1687_v39 = vld [vmem:[#allocation5 + $0xe90] sm:$0xff] }
 0x17f   : > { %1574 = vmatprep.subr.mxu0 %v1473_v40 }
 0x180   : > { %1575 = vmatpush2.msra.mxu0 %v1472_v41  ;;  %v1686_v41 = vld [vmem:[#allocation5 + $0xdf0] sm:$0xff] }
 0x181   : > { %1576 = vmatprep.subr.mxu0 %v1471_v42  ;;  %v1685_v42 = vld [vmem:[#allocation5 + $0xde8] sm:$0xff] }
 0x182   : > { %1577 = vmatpush2.msra.mxu0 %v1470_v43  ;;  %v1684_v43 = vld [vmem:[#allocation5 + $0xd48] sm:$0xff] }
 0x1c0   : > { %v916_v51 = vpop.f32.mrf.mxu0 }
 0x1c1   : > { %v1201_v52 = vadd.f32 %v1194_v49, %v916_v51  ;;  %v1669_v51 = vld [vmem:[#allocation5 + $0x8a8] sm:$0xff] }
 0x1c2   : > { %v918_v54 = vpop.f32.mrf.mxu0 }
 0x1c3   : > { %v1202_v55 = vadd.f32 %v1198_v50, %v918_v54  ;;  %v1217_v59 = vmax.f32 %v1201_v52, 0.0  ;;  %v1668_v52 = vld [vmem:[#allocation5 + $0x808] sm:$0xff]  ;;  %v1667_v54 = vld [vmem:[#allocation5 + $0x800] sm:$0xff] }
 0x1c4   : > { %v922_v56 = vpop.f32.mrf.mxu0 }
 0x1c5   : > { %v1218_v57 = vmax.f32 %v1202_v55, 0.0  ;;  %v1203_v60 = vadd.f32 %v1194_v49, %v922_v56  ;;  %v1666_v55 = vld [vmem:[#allocation5 + $0x760] sm:$0xff]  ;;  %v1665_v56 = vld [vmem:[#allocation5 + $0x758] sm:$0xff] }
 0x1c6   : > { %v924_v61 = vpop.f32.mrf.mxu0 }
 0x1c7   : > { %v1204_v62 = vadd.f32 %v1198_v50, %v924_v61  ;;  %1373 = vmatprep.mubr.f32.mxu1 %v1218_v57  ;;  %v1219_v2 = vmax.f32 %v1203_v60, 0.0  ;;  %v1664_v57 = vld [vmem:[#allocation5 + $0x6b8] sm:$0xff]  ;;  %v1662_v60 = vld [vmem:[#allocation5 + $0x610] sm:$0xff]  ;;  %v1661_v61 = vld [vmem:[#allocation5 + $0x608] sm:$0xff] }
 0x1c8   : > { %v928_v53 = vpop.f32.mrf.mxu0  ;;  %1374 = vmatmul.mubr.f32.vlgmr.msra.gmra.mxu1 %v1217_v59  ;;  %v1663_v59 = vld [vmem:[#allocation5 + $0x6b0] sm:$0xff] }
 0x1c9   : > { %v1220_v0 = vmax.f32 %v1204_v62, 0.0  ;;  %v1205_v3 = vadd.f32 %v1194_v49, %v928_v53  ;;  %1720 = vmatpush1.msra.mxu1 %v1673_v45  ;;  %v1660_v62 = vld [vmem:[#allocation5 + $0x568] sm:$0xff]  ;;  %v1659_v53 = vld [vmem:[#allocation5 + $0x560] sm:$0xff] }
 0x1ca   : > { %v930_v4 = vpop.f32.mrf.mxu0  ;;  %1721 = vmatprep.subr.mxu1 %v1672_v47 }
 0x1cb   : > { %v1206_v58 = vadd.f32 %v1198_v50, %v930_v4  ;;  %1379 = vmatprep.mubr.f32.mxu1 %v1220_v0  ;;  %v1221_v8 = vmax.f32 %v1205_v3, 0.0  ;;  %v1658_v0 = vld [vmem:[#allocation5 + $0x4c0] sm:$0xff]  ;;  %v1656_v3 = vld [vmem:[#allocation5 + $0x418] sm:$0xff]  ;;  %v1655_v4 = vld [vmem:[#allocation5 + $0x410] sm:$0xff] }
 0x1cc   : > { %v934_v6 = vpop.f32.mrf.mxu0  ;;  %1380 = vmatmul.mubr.f32.gmra.mxu1 %v1219_v2  ;;  %v1657_v2 = vld [vmem:[#allocation5 + $0x4b8] sm:$0xff] }
 0x1cd   : > { %v1222_v7 = vmax.f32 %v1206_v58, 0.0  ;;  %v1207_v63 = vadd.f32 %v1194_v49, %v934_v6  ;;  %v1654_v58 = vld [vmem:[#allocation5 + $0x370] sm:$0xff]  ;;  %v1653_v6 = vld [vmem:[#allocation5 + $0x368] sm:$0xff] }
 0x1ce   : > { %v936_v10 = vpop.f32.mrf.mxu0 }
 0x1cf   : > { %v1208_v11 = vadd.f32 %v1198_v50, %v936_v10  ;;  %1385 = vmatprep.mubr.f32.mxu1 %v1222_v7  ;;  %v1223_v13 = vmax.f32 %v1207_v63, 0.0  ;;  %v1652_v7 = vld [vmem:[#allocation5 + $0x2c8] sm:$0xff]  ;;  %v1650_v63 = vld [vmem:[#allocation5 + $0x220] sm:$0xff]  ;;  %v1649_v10 = vld [vmem:[#allocation5 + $0x218] sm:$0xff] }
 0x1d0   : > { %v940_v12 = vpop.f32.mrf.mxu0  ;;  %1386 = vmatmul.mubr.f32.gmra.mxu1 %v1221_v8  ;;  %v1651_v8 = vld [vmem:[#allocation5 + $0x2c0] sm:$0xff] }
 0x1d1   : > { %v1224_v5 = vmax.f32 %v1208_v11, 0.0  ;;  %v1209_v15 = vadd.f32 %v1194_v49, %v940_v12  ;;  %v1648_v11 = vld [vmem:[#allocation5 + $0x178] sm:$0xff]  ;;  %v1647_v12 = vld [vmem:[#allocation5 + $0x170] sm:$0xff] }
 0x1d2   : > { %v942_v16 = vpop.f32.mrf.mxu0 }
 0x1d3   : > { %v1210_v9 = vadd.f32 %v1198_v50, %v942_v16  ;;  %1391 = vmatprep.mubr.f32.mxu1 %v1224_v5  ;;  %v1225_v20 = vmax.f32 %v1209_v15, 0.0  ;;  %v1646_v5 = vld [vmem:[#allocation5 + $0xd0] sm:$0xff]  ;;  %v1644_v15 = vld [vmem:[#allocation5 + $0x28] sm:$0xff]  ;;  %v1643_v16 = vld [vmem:[#allocation5 + $0x20] sm:$0xff] }
 0x1d4   : > { %v946_v17 = vpop.f32.mrf.mxu0  ;;  %1392 = vmatmul.mubr.f32.gmra.mxu1 %v1223_v13  ;;  %v1645_v13 = vld [vmem:[#allocation5 + $0xc8] sm:$0xff] }
 0x1d5   : > { %v1226_v18 = vmax.f32 %v1210_v9, 0.0  ;;  %v1211_v14 = vadd.f32 %v1194_v49, %v946_v17  ;;  %v1706_v9 = vld [vmem:[#allocation5 + $0x1480] sm:$0xff]  ;;  %v1705_v17 = vld [vmem:[#allocation5 + $0x1478] sm:$0xff] }
 0x1d6   : > { %v948_v21 = vpop.f32.mrf.mxu0 }
 0x1d7   : > { %v1212_v22 = vadd.f32 %v1198_v50, %v948_v21  ;;  %1397 = vmatprep.mubr.f32.mxu1 %v1226_v18  ;;  %v1227_v19 = vmax.f32 %v1211_v14, 0.0  ;;  %v4881_v18 = vpop.f32.mrf.mxu1  ;;  %v1703_v14 = vld [vmem:[#allocation5 + $0x13d0] sm:$0xff] }
 0x1d8   : > { %v952_v23 = vpop.f32.mrf.mxu0  ;;  %1398 = vmatmul.mubr.f32.gmra.mxu1 %v1225_v20  ;;  %v1704_v20 = vld [vmem:[#allocation5 + $0x13d8] sm:$0xff]  ;;  %v1702_v21 = vld [vmem:[#allocation5 + $0x1330] sm:$0xff] }
 0x1d9   : > { %v1228_v25 = vmax.f32 %v1212_v22, 0.0  ;;  %v1213_v26 = vadd.f32 %v1194_v49, %v952_v23  ;;  %v1701_v22 = vld [vmem:[#allocation5 + $0x1328] sm:$0xff]  ;;  %v4883_v23 = vpop.f32.mrf.mxu1 }
 0x1da   : > { %v954_v1 = vpop.f32.mrf.mxu0 }
 0x1db   : > { %v1214_v27 = vadd.f32 %v1198_v50, %v954_v1  ;;  %1403 = vmatprep.mubr.f32.mxu1 %v1228_v25  ;;  %v1229_v24 = vmax.f32 %v1213_v26, 0.0  ;;  %v1700_v25 = vld [vmem:[#allocation5 + $0x1288] sm:$0xff]  ;;  %v4885_v26 = vpop.f32.mrf.mxu1  ;;  %v1698_v1 = vld [vmem:[#allocation5 + $0x11e0] sm:$0xff] }
 0x1dc   : > { %v958_v28 = vpop.f32.mrf.mxu0  ;;  %1404 = vmatmul.mubr.f32.gmra.mxu1 %v1227_v19  ;;  %v1699_v19 = vld [vmem:[#allocation5 + $0x1280] sm:$0xff] }
 0x1dd   : > { %v1230_v29 = vmax.f32 %v1214_v27, 0.0  ;;  %v1215_v30 = vadd.f32 %v1194_v49, %v958_v28  ;;  %v1671_v49 = vld [vmem:[#allocation5 + $0x950] sm:$0xff]  ;;  %v1697_v27 = vld [vmem:[#allocation5 + $0x11d8] sm:$0xff] }
 0x1de   : > { %v960_v31 = vpop.f32.mrf.mxu0  ;;  %1722 = vmatpush1.msra.mxu1 %v1671_v49  ;;  %v1696_v28 = vld [vmem:[#allocation5 + $0x1138] sm:$0xff] }
 0x1df   : > { %v1216_v32 = vadd.f32 %v1198_v50, %v960_v31  ;;  %1409 = vmatprep.mubr.f32.mxu1 %v1230_v29  ;;  %v1231_v34 = vmax.f32 %v1215_v30, 0.0  ;;  %v1670_v50 = vld [vmem:[#allocation5 + $0x8b0] sm:$0xff]  ;;  %v1693_v31 = vld [vmem:[#allocation5 + $0x1088] sm:$0xff] }
 0x1e0   : > { %1410 = vmatmul.mubr.f32.gmra.mxu1 %v1229_v24  ;;  %1723 = vmatprep.subr.mxu1 %v1670_v50  ;;  %v1695_v29 = vld [vmem:[#allocation5 + $0x1130] sm:$0xff]  ;;  %v4887_v24 = vpop.f32.mrf.mxu1 }
 0x1e1   : > { %v1232_v33 = vmax.f32 %v1216_v32, 0.0  ;;  %1724 = vmatpush1.msra.mxu1 %v1669_v51  ;;  %v1694_v30 = vld [vmem:[#allocation5 + $0x1090] sm:$0xff]  ;;  %v1692_v32 = vld [vmem:[#allocation5 + $0xfe8] sm:$0xff] }
 0x1e2   : > { %1725 = vmatprep.subr.mxu1 %v1668_v52 }
 0x1e3   : > { %1415 = vmatprep.mubr.f32.mxu1 %v1232_v33  ;;  %1726 = vmatpush1.msra.mxu1 %v1667_v54  ;;  %v1691_v33 = vld [vmem:[#allocation5 + $0xfe0] sm:$0xff] }
 0x1e4   : > { %1416 = vmatmul.mubr.f32.gmra.mxu1 %v1231_v34  ;;  %1727 = vmatprep.subr.mxu1 %v1666_v55  ;;  %v4889_v34 = vpop.f32.mrf.mxu1 }
 0x1e5   : > { %1728 = vmatpush1.msra.mxu1 %v1665_v56 }
 0x1e6   : > { %1729 = vmatprep.subr.mxu1 %v1664_v57  ;;  %v4891_v40 = vpop.f32.mrf.mxu1  ;;  %v1297_v57 = vld [vmem:[#allocation10] sm:$0x3] }
 0x1e7   : > { %1730 = vmatpush1.msra.mxu1 %v1663_v59 }
 0x1e8   : > { %1731 = vmatprep.subr.mxu1 %v1662_v60  ;;  %v4893_v45 = vpop.f32.mrf.mxu1  ;;  %v1302_v60 = vrot.slane %v1297_v57, %v4875_v46 }
 0x1e9   : > { %1732 = vmatpush1.msra.mxu1 %v1661_v61  ;;  %v1306_v61 = vrot.slane %v1297_v57, %v4877_v48 }
 0x1ea   : > { %1733 = vmatprep.subr.mxu1 %v1660_v62  ;;  %v4895_v47 = vpop.f32.mrf.mxu1 }
 0x1eb   : > { %1734 = vmatpush1.msra.mxu1 %v1659_v53 }
 0x1ec   : > { %1735 = vmatprep.subr.mxu1 %v1658_v0  ;;  %v4897_v49 = vpop.f32.mrf.mxu1 }
 0x1ed   : > { %1736 = vmatpush1.msra.mxu1 %v1657_v2 }
 0x1ee   : > { %1737 = vmatprep.subr.mxu1 %v1656_v3  ;;  %v4899_v50 = vpop.f32.mrf.mxu1 }
 0x1ef   : > { %1738 = vmatpush1.msra.mxu1 %v1655_v4 }
 0x1f0   : > { %1739 = vmatprep.subr.mxu1 %v1654_v58  ;;  %v4901_v51 = vpop.f32.mrf.mxu1 }
 0x1f1   : > { %1740 = vmatpush1.msra.mxu1 %v1653_v6 }
 0x1f2   : > { %1741 = vmatprep.subr.mxu1 %v1652_v7  ;;  %v4903_v52 = vpop.f32.mrf.mxu1 }
 0x1f3   : > { %1742 = vmatpush1.msra.mxu1 %v1651_v8 }
 0x1f4   : > { %1743 = vmatprep.subr.mxu1 %v1650_v63  ;;  %v4905_v54 = vpop.f32.mrf.mxu1 }
 0x1f5   : > { %1744 = vmatpush1.msra.mxu1 %v1649_v10 }
 0x1f6   : > { %1745 = vmatprep.subr.mxu1 %v1648_v11  ;;  %v4907_v55 = vpop.f32.mrf.mxu1 }
 0x1f7   : > { %1746 = vmatpush1.msra.mxu1 %v1647_v12 }
 0x1f8   : > { %1747 = vmatprep.subr.mxu1 %v1646_v5  ;;  %v4909_v56 = vpop.f32.mrf.mxu1 }
 0x1f9   : > { %1748 = vmatpush1.msra.mxu1 %v1645_v13 }
 0x1fa   : > { %1749 = vmatprep.subr.mxu1 %v1644_v15  ;;  %v4911_v59 = vpop.f32.mrf.mxu1 }
 0x1fb   : > { %1750 = vmatpush1.msra.mxu1 %v1643_v16 }
 0x1fc   : > { %1751 = vmatprep.subr.mxu1 %v1706_v9 }
 0x1fd   : > { %1752 = vmatpush2.msra.mxu1 %v1705_v17 }
 0x1fe   : > { %1753 = vmatprep.subr.mxu1 %v1704_v20 }
 0x1ff   : > { %1754 = vmatpush2.msra.mxu1 %v1703_v14 }
 0x200   : > { %1755 = vmatprep.subr.mxu1 %v1702_v21 }
 0x201   : > { %1756 = vmatpush2.msra.mxu1 %v1701_v22 }
 0x202   : > { %1757 = vmatprep.subr.mxu1 %v1700_v25 }
 0x203   : > { %1758 = vmatpush2.msra.mxu1 %v1699_v19 }
 0x204   : > { %1759 = vmatprep.subr.mxu1 %v1698_v1 }
 0x205   : > { %1760 = vmatpush2.msra.mxu1 %v1697_v27 }
 0x206   : > { %1761 = vmatprep.subr.mxu1 %v1696_v28 }
 0x207   : > { %1762 = vmatpush2.msra.mxu1 %v1695_v29 }
 0x208   : > { %1763 = vmatprep.subr.mxu1 %v1694_v30 }
 0x209   : > { %1764 = vmatpush2.msra.mxu1 %v1693_v31 }
 0x20a   : > { %1765 = vmatprep.subr.mxu1 %v1692_v32 }
 0x20b   : > { %1766 = vmatpush2.msra.mxu1 %v1691_v33 }
 0x20c   : > { %1767 = vmatprep.subr.mxu1 %v1690_v35 }
 0x20d   : > { %1768 = vmatpush2.msra.mxu1 %v1689_v37 }
 0x20e   : > { %1769 = vmatprep.subr.mxu1 %v1688_v38 }
 0x20f   : > { %1770 = vmatpush2.msra.mxu1 %v1687_v39 }
 0x210   : > { %1771 = vmatprep.subr.mxu1 %v1686_v41 }
 0x211   : > { %1772 = vmatpush2.msra.mxu1 %v1685_v42 }
 0x212   : > { %1773 = vmatprep.subr.mxu1 %v1684_v43 }
 0x213   : > { %1774 = vmatpush2.msra.mxu1 %v1683_v44 }
 0x288   : > { %v1375_v62 = vpop.f32.mrf.mxu1 }
 0x289   : > { %v1376_v53 = vadd.f32 %v1375_v62, %v1302_v60 }
 0x28a   : > { %v1377_v0 = vpop.f32.mrf.mxu1 }
 0x28b   : > { %v1378_v2 = vadd.f32 %v1377_v0, %v1306_v61  ;;  %v1422_v58 = vmax.f32 %v1376_v53, 0.0 }
 0x28c   : > { %v1381_v3 = vpop.f32.mrf.mxu1 }
 0x28d   : > { %v1423_v4 = vmax.f32 %v1378_v2, 0.0  ;;  %v1382_v6 = vadd.f32 %v1381_v3, %v1302_v60 }
 0x28e   : > { %v1383_v7 = vpop.f32.mrf.mxu1 }
 0x28f   : > { %v1384_v8 = vadd.f32 %v1383_v7, %v1306_v61  ;;  %1578 = vmatprep.mubr.f32.mxu0 %v1423_v4  ;;  %v1424_v11 = vmax.f32 %v1382_v6, 0.0  ;;  %v1682_v4 = vld [vmem:[#allocation5 + $0xca0] sm:$0xff]  ;;  %v1680_v6 = vld [vmem:[#allocation5 + $0xbf8] sm:$0xff]  ;;  %v1679_v7 = vld [vmem:[#allocation5 + $0xbf0] sm:$0xff] }
 0x290   : > { %v1387_v63 = vpop.f32.mrf.mxu1  ;;  %1579 = vmatmul.mubr.f32.vlgmr.msra.gmra.mxu0 %v1422_v58  ;;  %1775 = vmatprep.subr.mxu1 %v1682_v4  ;;  %v1681_v58 = vld [vmem:[#allocation5 + $0xc98] sm:$0xff]  ;;  %v1907_v4 = vld [vmem:[#allocation5 + $0x1340] sm:$0xff] }
 0x291   : > { %v1425_v10 = vmax.f32 %v1384_v8, 0.0  ;;  %v1388_v12 = vadd.f32 %v1387_v63, %v1302_v60  ;;  %1776 = vmatpush2.msra.mxu1 %v1681_v58  ;;  %v1678_v8 = vld [vmem:[#allocation5 + $0xb50] sm:$0xff]  ;;  %v1677_v63 = vld [vmem:[#allocation5 + $0xb48] sm:$0xff]  ;;  %v1906_v58 = vld [vmem:[#allocation5 + $0x1338] sm:$0xff] }
 0x292   : > { %v1389_v5 = vpop.f32.mrf.mxu1  ;;  %1777 = vmatprep.subr.mxu1 %v1680_v6 }
 0x293   : > { %v1390_v13 = vadd.f32 %v1389_v5, %v1306_v61  ;;  %1584 = vmatprep.mubr.f32.mxu0 %v1425_v10  ;;  %v1426_v9 = vmax.f32 %v1388_v12, 0.0  ;;  %1778 = vmatpush2.msra.mxu1 %v1679_v7  ;;  %v1879_v10 = vld [vmem:[#allocation5 + $0xa10] sm:$0xff]  ;;  %v1877_v12 = vld [vmem:[#allocation5 + $0x968] sm:$0xff]  ;;  %v1876_v5 = vld [vmem:[#allocation5 + $0x960] sm:$0xff] }
 0x294   : > { %v1393_v15 = vpop.f32.mrf.mxu1  ;;  %1585 = vmatmul.mubr.f32.gmra.mxu0 %v1424_v11  ;;  %1779 = vmatprep.subr.mxu1 %v1678_v8  ;;  %v1878_v11 = vld [vmem:[#allocation5 + $0xa08] sm:$0xff]  ;;  %v1905_v7 = vld [vmem:[#allocation5 + $0x1298] sm:$0xff]  ;;  %v1904_v8 = vld [vmem:[#allocation5 + $0x1290] sm:$0xff] }
 0x295   : > { %v1427_v16 = vmax.f32 %v1390_v13, 0.0  ;;  %v1394_v17 = vadd.f32 %v1393_v15, %v1302_v60  ;;  %1780 = vmatpush2.msra.mxu1 %v1677_v63  ;;  %1924 = vmatprep.subr.mxu0 %v1879_v10  ;;  %v1875_v13 = vld [vmem:[#allocation5 + $0x8c0] sm:$0xff]  ;;  %v1874_v15 = vld [vmem:[#allocation5 + $0x8b8] sm:$0xff]  ;;  %v1901_v10 = vld [vmem:[#allocation5 + $0x1148] sm:$0xff] }
 0x296   : > { %v1395_v20 = vpop.f32.mrf.mxu1  ;;  %1925 = vmatpush1.msra.mxu0 %v1878_v11  ;;  %v1900_v11 = vld [vmem:[#allocation5 + $0x1140] sm:$0xff] }
 0x297   : > { %v1396_v14 = vadd.f32 %v1395_v20, %v1306_v61  ;;  %1590 = vmatprep.mubr.f32.mxu0 %v1427_v16  ;;  %v1428_v25 = vmax.f32 %v1394_v17, 0.0  ;;  %1926 = vmatprep.subr.mxu0 %v1877_v12  ;;  %v1873_v16 = vld [vmem:[#allocation5 + $0x818] sm:$0xff]  ;;  %v1871_v17 = vld [vmem:[#allocation5 + $0x770] sm:$0xff]  ;;  %v1870_v20 = vld [vmem:[#allocation5 + $0x768] sm:$0xff] }
 0x298   : > { %v1399_v21 = vpop.f32.mrf.mxu1  ;;  %1591 = vmatmul.mubr.f32.gmra.mxu0 %v1426_v9  ;;  %v1872_v9 = vld [vmem:[#allocation5 + $0x810] sm:$0xff] }
 0x299   : > { %v1429_v22 = vmax.f32 %v1396_v14, 0.0  ;;  %v1400_v19 = vadd.f32 %v1399_v21, %v1302_v60  ;;  %1927 = vmatpush1.msra.mxu0 %v1876_v5  ;;  %v1869_v14 = vld [vmem:[#allocation5 + $0x6c8] sm:$0xff]  ;;  %v1868_v21 = vld [vmem:[#allocation5 + $0x6c0] sm:$0xff] }
 0x29a   : > { %v1401_v1 = vpop.f32.mrf.mxu1  ;;  %1928 = vmatprep.subr.mxu0 %v1875_v13  ;;  %v1899_v5 = vld [vmem:[#allocation5 + $0x10a0] sm:$0xff]  ;;  %v1898_v13 = vld [vmem:[#allocation5 + $0x1098] sm:$0xff] }
 0x29b   : > { %v1402_v27 = vadd.f32 %v1401_v1, %v1306_v61  ;;  %1596 = vmatprep.mubr.f32.mxu0 %v1429_v22  ;;  %v1430_v30 = vmax.f32 %v1400_v19, 0.0  ;;  %1929 = vmatpush1.msra.mxu0 %v1874_v15  ;;  %v1867_v22 = vld [vmem:[#allocation5 + $0x620] sm:$0xff]  ;;  %v1865_v19 = vld [vmem:[#allocation5 + $0x578] sm:$0xff]  ;;  %v1864_v1 = vld [vmem:[#allocation5 + $0x570] sm:$0xff] }
 0x29c   : > { %v1405_v28 = vpop.f32.mrf.mxu1  ;;  %1597 = vmatmul.mubr.f32.gmra.mxu0 %v1428_v25  ;;  %1930 = vmatprep.subr.mxu0 %v1873_v16  ;;  %v1866_v25 = vld [vmem:[#allocation5 + $0x618] sm:$0xff]  ;;  %v1896_v16 = vld [vmem:[#allocation5 + $0xff0] sm:$0xff] }
 0x29d   : > { %v1431_v29 = vmax.f32 %v1402_v27, 0.0  ;;  %v1406_v31 = vadd.f32 %v1405_v28, %v1302_v60  ;;  %1931 = vmatpush1.msra.mxu0 %v1872_v9  ;;  %v1863_v27 = vld [vmem:[#allocation5 + $0x4d0] sm:$0xff]  ;;  %v1862_v28 = vld [vmem:[#allocation5 + $0x4c8] sm:$0xff]  ;;  %v1897_v15 = vld [vmem:[#allocation5 + $0xff8] sm:$0xff] }
 0x29e   : > { %v1407_v32 = vpop.f32.mrf.mxu1  ;;  %1932 = vmatprep.subr.mxu0 %v1871_v17  ;;  %v1895_v17 = vld [vmem:[#allocation5 + $0xf50] sm:$0xff] }
 0x29f   : > { %v1408_v33 = vadd.f32 %v1407_v32, %v1306_v61  ;;  %1602 = vmatprep.mubr.f32.mxu0 %v1431_v29  ;;  %v1432_v38 = vmax.f32 %v1406_v31, 0.0  ;;  %1933 = vmatpush1.msra.mxu0 %v1870_v20  ;;  %v1861_v29 = vld [vmem:[#allocation5 + $0x428] sm:$0xff]  ;;  %v1859_v31 = vld [vmem:[#allocation5 + $0x380] sm:$0xff]  ;;  %v1858_v32 = vld [vmem:[#allocation5 + $0x378] sm:$0xff] }
 0x2a0   : > { %v1411_v35 = vpop.f32.mrf.mxu1  ;;  %1603 = vmatmul.mubr.f32.gmra.mxu0 %v1430_v30  ;;  %1934 = vmatprep.subr.mxu0 %v1869_v14  ;;  %v1860_v30 = vld [vmem:[#allocation5 + $0x420] sm:$0xff]  ;;  %v1894_v20 = vld [vmem:[#allocation5 + $0xf48] sm:$0xff] }
 0x2a1   : > { %v1433_v37 = vmax.f32 %v1408_v33, 0.0  ;;  %v1412_v39 = vadd.f32 %v1411_v35, %v1302_v60  ;;  %1935 = vmatpush1.msra.mxu0 %v1868_v21  ;;  %v1857_v33 = vld [vmem:[#allocation5 + $0x2d8] sm:$0xff]  ;;  %v1856_v35 = vld [vmem:[#allocation5 + $0x2d0] sm:$0xff]  ;;  %v1893_v14 = vld [vmem:[#allocation5 + $0xea8] sm:$0xff] }
 0x2a2   : > { %v1413_v41 = vpop.f32.mrf.mxu1  ;;  %1936 = vmatprep.subr.mxu0 %v1867_v22  ;;  %v1892_v21 = vld [vmem:[#allocation5 + $0xea0] sm:$0xff] }
 0x2a3   : > { %v1414_v42 = vadd.f32 %v1413_v41, %v1306_v61  ;;  %1608 = vmatprep.mubr.f32.mxu0 %v1433_v37  ;;  %v1434_v57 = vmax.f32 %v1412_v39, 0.0  ;;  %1937 = vmatpush1.msra.mxu0 %v1866_v25  ;;  %v1855_v37 = vld [vmem:[#allocation5 + $0x230] sm:$0xff]  ;;  %v1853_v39 = vld [vmem:[#allocation5 + $0x188] sm:$0xff]  ;;  %v1852_v41 = vld [vmem:[#allocation5 + $0x180] sm:$0xff] }
 0x2a4   : > { %v1417_v43 = vpop.f32.mrf.mxu1  ;;  %1609 = vmatmul.mubr.f32.gmra.mxu0 %v1432_v38  ;;  %1938 = vmatprep.subr.mxu0 %v1865_v19  ;;  %v1854_v38 = vld [vmem:[#allocation5 + $0x228] sm:$0xff]  ;;  %v1891_v25 = vld [vmem:[#allocation5 + $0xe00] sm:$0xff]  ;;  %v1890_v19 = vld [vmem:[#allocation5 + $0xdf8] sm:$0xff] }
 0x2a5   : > { %v1435_v44 = vmax.f32 %v1414_v42, 0.0  ;;  %v1418_v62 = vadd.f32 %v1417_v43, %v1302_v60  ;;  %v1676_v60 = vld [vmem:[#allocation5 + $0xaa8] sm:$0xff]  ;;  %1939 = vmatpush1.msra.mxu0 %v1864_v1  ;;  %v1851_v42 = vld [vmem:[#allocation5 + $0xe0] sm:$0xff]  ;;  %v1850_v43 = vld [vmem:[#allocation5 + $0xd8] sm:$0xff] }
 0x2a6   : > { %v1419_v53 = vpop.f32.mrf.mxu1  ;;  %1781 = vmatprep.subr.mxu1 %v1676_v60  ;;  %1940 = vmatprep.subr.mxu0 %v1863_v27  ;;  %v1903_v60 = vld [vmem:[#allocation5 + $0x11f0] sm:$0xff]  ;;  %v1889_v1 = vld [vmem:[#allocation5 + $0xd58] sm:$0xff] }
 0x2a7   : > { %v1420_v0 = vadd.f32 %v1419_v53, %v1306_v61  ;;  %1614 = vmatprep.mubr.f32.mxu0 %v1435_v44  ;;  %v1436_v3 = vmax.f32 %v1418_v62, 0.0  ;;  %v1675_v61 = vld [vmem:[#allocation5 + $0xaa0] sm:$0xff]  ;;  %1941 = vmatpush1.msra.mxu0 %v1862_v28  ;;  %v1849_v44 = vld [vmem:[#allocation5 + $0x38] sm:$0xff]  ;;  %v1911_v62 = vld [vmem:[#allocation5 + $0x1490] sm:$0xff] }
 0x2a8   : > { %1615 = vmatmul.mubr.f32.gmra.mxu0 %v1434_v57  ;;  %1782 = vmatpush2.msra.mxu1 %v1675_v61  ;;  %v1848_v57 = vld [vmem:[#allocation5 + $0x30] sm:$0xff]  ;;  %v1910_v53 = vld [vmem:[#allocation5 + $0x1488] sm:$0xff] }
 0x2a9   : > { %v1437_v2 = vmax.f32 %v1420_v0, 0.0  ;;  %1942 = vmatprep.subr.mxu0 %v1861_v29  ;;  %v4915_v0 = vpop.f32.mrf.mxu0  ;;  %v1902_v61 = vld [vmem:[#allocation5 + $0x11e8] sm:$0xff]  ;;  %v1888_v27 = vld [vmem:[#allocation5 + $0xd50] sm:$0xff] }
 0x2aa   : > { %1943 = vmatpush1.msra.mxu0 %v1860_v30 }
 0x2ab   : > { %1620 = vmatprep.mubr.f32.mxu0 %v1437_v2  ;;  %1944 = vmatprep.subr.mxu0 %v1859_v31  ;;  %v1909_v2 = vld [vmem:[#allocation5 + $0x13e8] sm:$0xff]  ;;  %v4917_v6 = vpop.f32.mrf.mxu0 }
 0x2ac   : > { %1621 = vmatmul.mubr.f32.gmra.mxu0 %v1436_v3  ;;  %v1908_v3 = vld [vmem:[#allocation5 + $0x13e0] sm:$0xff] }
 0x2ad   : > { %1945 = vmatpush1.msra.mxu0 %v1858_v32  ;;  %v4919_v63 = vpop.f32.mrf.mxu0 }
 0x2ae   : > { %1946 = vmatprep.subr.mxu0 %v1857_v33 }
 0x2af   : > { %1947 = vmatpush1.msra.mxu0 %v1856_v35  ;;  %v4921_v12 = vpop.f32.mrf.mxu0 }
 0x2b0   : > { %1948 = vmatprep.subr.mxu0 %v1855_v37 }
 0x2b1   : > { %1949 = vmatpush1.msra.mxu0 %v1854_v38  ;;  %v4923_v9 = vpop.f32.mrf.mxu0 }
 0x2b2   : > { %1950 = vmatprep.subr.mxu0 %v1853_v39  ;;  %v1502_v39 = vld [vmem:[#allocation11] sm:$0x3] }
 0x2b3   : > { %1951 = vmatpush1.msra.mxu0 %v1852_v41  ;;  %v4925_v22 = vpop.f32.mrf.mxu0 }
 0x2b4   : > { %1952 = vmatprep.subr.mxu0 %v1851_v42  ;;  %v1507_v42 = vrot.slane %v1502_v39, %v4875_v46 }
 0x2b5   : > { %1953 = vmatpush1.msra.mxu0 %v1850_v43  ;;  %v4927_v28 = vpop.f32.mrf.mxu0  ;;  %v1511_v43 = vrot.slane %v1502_v39, %v4877_v48 }
 0x2b6   : > { %1954 = vmatprep.subr.mxu0 %v1849_v44 }
 0x2b7   : > { %1955 = vmatpush1.msra.mxu0 %v1848_v57  ;;  %v4929_v29 = vpop.f32.mrf.mxu0 }
 0x2b8   : > { %1956 = vmatprep.subr.mxu0 %v1911_v62 }
 0x2b9   : > { %1957 = vmatpush2.msra.mxu0 %v1910_v53  ;;  %v4931_v30 = vpop.f32.mrf.mxu0 }
 0x2ba   : > { %1958 = vmatprep.subr.mxu0 %v1909_v2 }
 0x2bb   : > { %1959 = vmatpush2.msra.mxu0 %v1908_v3  ;;  %v4933_v31 = vpop.f32.mrf.mxu0 }
 0x2bc   : > { %1960 = vmatprep.subr.mxu0 %v1907_v4 }
 0x2bd   : > { %1961 = vmatpush2.msra.mxu0 %v1906_v58  ;;  %v4935_v32 = vpop.f32.mrf.mxu0 }
 0x2be   : > { %1962 = vmatprep.subr.mxu0 %v1905_v7 }
 0x2bf   : > { %1963 = vmatpush2.msra.mxu0 %v1904_v8  ;;  %v4937_v33 = vpop.f32.mrf.mxu0 }
 0x2c0   : > { %1964 = vmatprep.subr.mxu0 %v1903_v60 }
 0x2c1   : > { %1965 = vmatpush2.msra.mxu0 %v1902_v61  ;;  %v4939_v35 = vpop.f32.mrf.mxu0 }
 0x2c2   : > { %1966 = vmatprep.subr.mxu0 %v1901_v10 }
 0x2c3   : > { %1967 = vmatpush2.msra.mxu0 %v1900_v11  ;;  %v4941_v37 = vpop.f32.mrf.mxu0 }
 0x2c4   : > { %1968 = vmatprep.subr.mxu0 %v1899_v5 }
 0x2c5   : > { %1969 = vmatpush2.msra.mxu0 %v1898_v13  ;;  %v4943_v38 = vpop.f32.mrf.mxu0 }
 0x2c6   : > { %1970 = vmatprep.subr.mxu0 %v1897_v15 }
 0x2c7   : > { %1971 = vmatpush2.msra.mxu0 %v1896_v16  ;;  %v4945_v41 = vpop.f32.mrf.mxu0 }
 0x2c8   : > { %1972 = vmatprep.subr.mxu0 %v1895_v17 }
 0x2c9   : > { %1973 = vmatpush2.msra.mxu0 %v1894_v20 }
 0x2ca   : > { %1974 = vmatprep.subr.mxu0 %v1893_v14 }
 0x2cb   : > { %1975 = vmatpush2.msra.mxu0 %v1892_v21 }
 0x2cc   : > { %1976 = vmatprep.subr.mxu0 %v1891_v25 }
 0x2cd   : > { %1977 = vmatpush2.msra.mxu0 %v1890_v19 }
 0x2ce   : > { %1978 = vmatprep.subr.mxu0 %v1889_v1 }
 0x2cf   : > { %1979 = vmatpush2.msra.mxu0 %v1888_v27 }
 0x350   : > { %v1580_v44 = vpop.f32.mrf.mxu0 }
 0x351   : > { %v1581_v57 = vadd.f32 %v1580_v44, %v1507_v42 }
 0x352   : > { %v1582_v62 = vpop.f32.mrf.mxu0 }
 0x353   : > { %v1583_v53 = vadd.f32 %v1582_v62, %v1511_v43  ;;  %v1627_v4 = vmax.f32 %v1581_v57, 0.0 }
 0x354   : > { %v1586_v2 = vpop.f32.mrf.mxu0 }
 0x355   : > { %v1628_v3 = vmax.f32 %v1583_v53, 0.0  ;;  %v1587_v58 = vadd.f32 %v1586_v2, %v1507_v42 }
 0x356   : > { %v1588_v7 = vpop.f32.mrf.mxu0 }
 0x357   : > { %v1589_v8 = vadd.f32 %v1588_v7, %v1511_v43  ;;  %1783 = vmatprep.mubr.f32.mxu1 %v1628_v3  ;;  %v1629_v10 = vmax.f32 %v1587_v58, 0.0 }
 0x358   : > { %v1592_v60 = vpop.f32.mrf.mxu0  ;;  %1784 = vmatmul.mubr.f32.vlgmr.msra.gmra.mxu1 %v1627_v4 }
 0x359   : > { %v1630_v61 = vmax.f32 %v1589_v8, 0.0  ;;  %v1593_v11 = vadd.f32 %v1592_v60, %v1507_v42 }
 0x35a   : > { %v1594_v5 = vpop.f32.mrf.mxu0 }
 0x35b   : > { %v1595_v13 = vadd.f32 %v1594_v5, %v1511_v43  ;;  %1789 = vmatprep.mubr.f32.mxu1 %v1630_v61  ;;  %v1631_v17 = vmax.f32 %v1593_v11, 0.0 }
 0x35c   : > { %v1598_v15 = vpop.f32.mrf.mxu0  ;;  %1790 = vmatmul.mubr.f32.gmra.mxu1 %v1629_v10 }
 0x35d   : > { %v1632_v16 = vmax.f32 %v1595_v13, 0.0  ;;  %v1599_v20 = vadd.f32 %v1598_v15, %v1507_v42 }
 0x35e   : > { %v1600_v14 = vpop.f32.mrf.mxu0 }
 0x35f   : > { %v1601_v21 = vadd.f32 %v1600_v14, %v1511_v43  ;;  %1795 = vmatprep.mubr.f32.mxu1 %v1632_v16  ;;  %v1633_v1 = vmax.f32 %v1599_v20, 0.0 }
 0x360   : > { %v1604_v25 = vpop.f32.mrf.mxu0  ;;  %1796 = vmatmul.mubr.f32.gmra.mxu1 %v1631_v17 }
 0x361   : > { %v1634_v19 = vmax.f32 %v1601_v21, 0.0  ;;  %v1605_v27 = vadd.f32 %v1604_v25, %v1507_v42  ;;  %v1887_v21 = vld [vmem:[#allocation5 + $0xcb0] sm:$0xff]  ;;  %v1886_v25 = vld [vmem:[#allocation5 + $0xca8] sm:$0xff] }
 0x362   : > { %v1606_v39 = vpop.f32.mrf.mxu0  ;;  %1980 = vmatprep.subr.mxu0 %v1887_v21  ;;  %v2063_v21 = vld [vmem:[#allocation5 + $0x388] sm:$0xff] }
 0x363   : > { %v1607_v44 = vadd.f32 %v1606_v39, %v1511_v43  ;;  %1801 = vmatprep.mubr.f32.mxu1 %v1634_v19  ;;  %v1635_v53 = vmax.f32 %v1605_v27, 0.0  ;;  %1981 = vmatpush2.msra.mxu0 %v1886_v25  ;;  %v1885_v19 = vld [vmem:[#allocation5 + $0xc08] sm:$0xff]  ;;  %v1883_v27 = vld [vmem:[#allocation5 + $0xb60] sm:$0xff]  ;;  %v1882_v39 = vld [vmem:[#allocation5 + $0xb58] sm:$0xff] }
 0x364   : > { %v1610_v57 = vpop.f32.mrf.mxu0  ;;  %1802 = vmatmul.mubr.f32.gmra.mxu1 %v1633_v1  ;;  %1982 = vmatprep.subr.mxu0 %v1885_v19  ;;  %v1884_v1 = vld [vmem:[#allocation5 + $0xc00] sm:$0xff]  ;;  %v2062_v25 = vld [vmem:[#allocation5 + $0x2e8] sm:$0xff] }
 0x365   : > { %v1636_v62 = vmax.f32 %v1607_v44, 0.0  ;;  %v1611_v2 = vadd.f32 %v1610_v57, %v1507_v42  ;;  %1983 = vmatpush2.msra.mxu0 %v1884_v1  ;;  %v2084_v44 = vld [vmem:[#allocation5 + $0xa20] sm:$0xff]  ;;  %v2083_v57 = vld [vmem:[#allocation5 + $0xa18] sm:$0xff] }
 0x366   : > { %v1612_v3 = vpop.f32.mrf.mxu0  ;;  %1984 = vmatprep.subr.mxu0 %v1883_v27  ;;  %2117 = vmatprep.subr.mxu1 %v2084_v44  ;;  %v2061_v19 = vld [vmem:[#allocation5 + $0x2e0] sm:$0xff]  ;;  %v2059_v27 = vld [vmem:[#allocation5 + $0x238] sm:$0xff]  ;;  %v2055_v44 = vld [vmem:[#allocation5 + $0xe8] sm:$0xff] }
 0x367   : > { %v1613_v4 = vadd.f32 %v1612_v3, %v1511_v43  ;;  %1807 = vmatprep.mubr.f32.mxu1 %v1636_v62  ;;  %v1637_v8 = vmax.f32 %v1611_v2, 0.0  ;;  %1985 = vmatpush2.msra.mxu0 %v1882_v39  ;;  %v2082_v62 = vld [vmem:[#allocation5 + $0x978] sm:$0xff]  ;;  %v2080_v2 = vld [vmem:[#allocation5 + $0x8d0] sm:$0xff]  ;;  %v2079_v3 = vld [vmem:[#allocation5 + $0x8c8] sm:$0xff] }
 0x368   : > { %v1616_v58 = vpop.f32.mrf.mxu0  ;;  %1808 = vmatmul.mubr.f32.gmra.mxu1 %v1635_v53  ;;  %v2081_v53 = vld [vmem:[#allocation5 + $0x970] sm:$0xff]  ;;  %v2060_v1 = vld [vmem:[#allocation5 + $0x240] sm:$0xff]  ;;  %v2058_v39 = vld [vmem:[#allocation5 + $0x198] sm:$0xff] }
 0x369   : > { %v1638_v7 = vmax.f32 %v1613_v4, 0.0  ;;  %v1617_v60 = vadd.f32 %v1616_v58, %v1507_v42  ;;  %2118 = vmatpush1.msra.mxu1 %v2083_v57  ;;  %v2078_v4 = vld [vmem:[#allocation5 + $0x828] sm:$0xff]  ;;  %v2077_v58 = vld [vmem:[#allocation5 + $0x820] sm:$0xff] }
 0x36a   : > { %v1618_v61 = vpop.f32.mrf.mxu0  ;;  %2119 = vmatprep.subr.mxu1 %v2082_v62  ;;  %v2054_v57 = vld [vmem:[#allocation5 + $0x48] sm:$0xff]  ;;  %v2053_v62 = vld [vmem:[#allocation5 + $0x40] sm:$0xff] }
 0x36b   : > { %v1619_v10 = vadd.f32 %v1618_v61, %v1511_v43  ;;  %1813 = vmatprep.mubr.f32.mxu1 %v1638_v7  ;;  %v1639_v13 = vmax.f32 %v1617_v60, 0.0  ;;  %2120 = vmatpush1.msra.mxu1 %v2081_v53  ;;  %v2076_v7 = vld [vmem:[#allocation5 + $0x780] sm:$0xff]  ;;  %v2074_v60 = vld [vmem:[#allocation5 + $0x6d8] sm:$0xff]  ;;  %v2073_v61 = vld [vmem:[#allocation5 + $0x6d0] sm:$0xff] }
 0x36c   : > { %v1622_v11 = vpop.f32.mrf.mxu0  ;;  %1814 = vmatmul.mubr.f32.gmra.mxu1 %v1637_v8  ;;  %2121 = vmatprep.subr.mxu1 %v2080_v2  ;;  %v2075_v8 = vld [vmem:[#allocation5 + $0x778] sm:$0xff]  ;;  %v2116_v53 = vld [vmem:[#allocation5 + $0x14a0] sm:$0xff] }
 0x36d   : > { %v1640_v5 = vmax.f32 %v1619_v10, 0.0  ;;  %v1623_v15 = vadd.f32 %v1622_v11, %v1507_v42  ;;  %v1881_v42 = vld [vmem:[#allocation5 + $0xab8] sm:$0xff]  ;;  %2122 = vmatpush1.msra.mxu1 %v2079_v3  ;;  %v2072_v10 = vld [vmem:[#allocation5 + $0x630] sm:$0xff]  ;;  %v2071_v11 = vld [vmem:[#allocation5 + $0x628] sm:$0xff] }
 0x36e   : > { %v1624_v16 = vpop.f32.mrf.mxu0  ;;  %1986 = vmatprep.subr.mxu0 %v1881_v42  ;;  %2123 = vmatprep.subr.mxu1 %v2078_v4  ;;  %v2057_v42 = vld [vmem:[#allocation5 + $0x190] sm:$0xff]  ;;  %v2115_v2 = vld [vmem:[#allocation5 + $0x1498] sm:$0xff] }
 0x36f   : > { %v1625_v17 = vadd.f32 %v1624_v16, %v1511_v43  ;;  %1819 = vmatprep.mubr.f32.mxu1 %v1640_v5  ;;  %v1641_v14 = vmax.f32 %v1623_v15, 0.0  ;;  %v1880_v43 = vld [vmem:[#allocation5 + $0xab0] sm:$0xff]  ;;  %2124 = vmatpush1.msra.mxu1 %v2077_v58  ;;  %v2070_v5 = vld [vmem:[#allocation5 + $0x588] sm:$0xff]  ;;  %v2068_v15 = vld [vmem:[#allocation5 + $0x4e0] sm:$0xff] }
 0x370   : > { %1820 = vmatmul.mubr.f32.gmra.mxu1 %v1639_v13  ;;  %1987 = vmatpush2.msra.mxu0 %v1880_v43  ;;  %v2069_v13 = vld [vmem:[#allocation5 + $0x580] sm:$0xff]  ;;  %v2067_v16 = vld [vmem:[#allocation5 + $0x4d8] sm:$0xff]  ;;  %v2056_v43 = vld [vmem:[#allocation5 + $0xf0] sm:$0xff] }
 0x371   : > { %v1642_v20 = vmax.f32 %v1625_v17, 0.0  ;;  %2125 = vmatprep.subr.mxu1 %v2076_v7  ;;  %v2066_v17 = vld [vmem:[#allocation5 + $0x438] sm:$0xff]  ;;  %v2113_v4 = vld [vmem:[#allocation5 + $0x13f0] sm:$0xff]  ;;  %v2111_v7 = vld [vmem:[#allocation5 + $0x1348] sm:$0xff] }
 0x372   : > { %2126 = vmatpush1.msra.mxu1 %v2075_v8  ;;  %v2114_v3 = vld [vmem:[#allocation5 + $0x13f8] sm:$0xff]  ;;  %v2112_v58 = vld [vmem:[#allocation5 + $0x1350] sm:$0xff]  ;;  %v2110_v8 = vld [vmem:[#allocation5 + $0x12a8] sm:$0xff] }
 0x373   : > { %1825 = vmatprep.mubr.f32.mxu1 %v1642_v20  ;;  %2127 = vmatprep.subr.mxu1 %v2074_v60  ;;  %v2065_v20 = vld [vmem:[#allocation5 + $0x430] sm:$0xff]  ;;  %v2109_v60 = vld [vmem:[#allocation5 + $0x12a0] sm:$0xff] }
 0x374   : > { %1826 = vmatmul.mubr.f32.gmra.mxu1 %v1641_v14  ;;  %v2064_v14 = vld [vmem:[#allocation5 + $0x390] sm:$0xff] }
 0x375   : > { %2128 = vmatpush1.msra.mxu1 %v2073_v61  ;;  %v2108_v61 = vld [vmem:[#allocation5 + $0x1200] sm:$0xff] }
 0x376   : > { %2129 = vmatprep.subr.mxu1 %v2072_v10  ;;  %v2107_v10 = vld [vmem:[#allocation5 + $0x11f8] sm:$0xff] }
 0x377   : > { %2130 = vmatpush1.msra.mxu1 %v2071_v11  ;;  %v2106_v11 = vld [vmem:[#allocation5 + $0x1158] sm:$0xff] }
 0x378   : > { %2131 = vmatprep.subr.mxu1 %v2070_v5  ;;  %v2105_v5 = vld [vmem:[#allocation5 + $0x1150] sm:$0xff] }
 0x379   : > { %2132 = vmatpush1.msra.mxu1 %v2069_v13  ;;  %v2104_v13 = vld [vmem:[#allocation5 + $0x10b0] sm:$0xff] }
 0x37a   : > { %2133 = vmatprep.subr.mxu1 %v2068_v15  ;;  %v2103_v15 = vld [vmem:[#allocation5 + $0x10a8] sm:$0xff] }
 0x37b   : > { %2134 = vmatpush1.msra.mxu1 %v2067_v16  ;;  %v2102_v16 = vld [vmem:[#allocation5 + $0x1008] sm:$0xff] }
 0x37c   : > { %2135 = vmatprep.subr.mxu1 %v2066_v17  ;;  %v2101_v17 = vld [vmem:[#allocation5 + $0x1000] sm:$0xff] }
 0x37d   : > { %2136 = vmatpush1.msra.mxu1 %v2065_v20  ;;  %v2100_v20 = vld [vmem:[#allocation5 + $0xf60] sm:$0xff] }
 0x37e   : > { %2137 = vmatprep.subr.mxu1 %v2064_v14  ;;  %v2099_v14 = vld [vmem:[#allocation5 + $0xf58] sm:$0xff] }
 0x37f   : > { %2138 = vmatpush1.msra.mxu1 %v2063_v21  ;;  %v2098_v21 = vld [vmem:[#allocation5 + $0xeb8] sm:$0xff] }
 0x380   : > { %2139 = vmatprep.subr.mxu1 %v2062_v25  ;;  %v2097_v25 = vld [vmem:[#allocation5 + $0xeb0] sm:$0xff] }
 0x381   : > { %2140 = vmatpush1.msra.mxu1 %v2061_v19  ;;  %v2096_v19 = vld [vmem:[#allocation5 + $0xe10] sm:$0xff] }
 0x382   : > { %2141 = vmatprep.subr.mxu1 %v2060_v1  ;;  %v2095_v1 = vld [vmem:[#allocation5 + $0xe08] sm:$0xff] }
 0x383   : > { %2142 = vmatpush1.msra.mxu1 %v2059_v27  ;;  %v2094_v27 = vld [vmem:[#allocation5 + $0xd68] sm:$0xff] }
 0x384   : > { %2143 = vmatprep.subr.mxu1 %v2058_v39  ;;  %v2093_v39 = vld [vmem:[#allocation5 + $0xd60] sm:$0xff] }
 0x385   : > { %2144 = vmatpush1.msra.mxu1 %v2057_v42  ;;  %v1707_v42 = vld [vmem:[#allocation13] sm:$0x3] }
 0x386   : > { %2145 = vmatprep.subr.mxu1 %v2056_v43  ;;  %v1712_v43 = vrot.slane %v1707_v42, %v4875_v46 }
 0x387   : > { %2146 = vmatpush1.msra.mxu1 %v2055_v44  ;;  %v1716_v44 = vrot.slane %v1707_v42, %v4877_v48 }
 0x388   : > { %2147 = vmatprep.subr.mxu1 %v2054_v57 }
 0x389   : > { %2148 = vmatpush1.msra.mxu1 %v2053_v62 }
 0x38a   : > { %2149 = vmatprep.subr.mxu1 %v2116_v53 }
 0x38b   : > { %2150 = vmatpush2.msra.mxu1 %v2115_v2 }
 0x38c   : > { %2151 = vmatprep.subr.mxu1 %v2114_v3 }
 0x38d   : > { %2152 = vmatpush2.msra.mxu1 %v2113_v4 }
 0x38e   : > { %2153 = vmatprep.subr.mxu1 %v2112_v58 }
 0x38f   : > { %2154 = vmatpush2.msra.mxu1 %v2111_v7 }
 0x390   : > { %2155 = vmatprep.subr.mxu1 %v2110_v8 }
 0x391   : > { %2156 = vmatpush2.msra.mxu1 %v2109_v60 }
 0x392   : > { %2157 = vmatprep.subr.mxu1 %v2108_v61 }
 0x393   : > { %2158 = vmatpush2.msra.mxu1 %v2107_v10 }
 0x394   : > { %2159 = vmatprep.subr.mxu1 %v2106_v11 }
 0x395   : > { %2160 = vmatpush2.msra.mxu1 %v2105_v5 }
 0x396   : > { %2161 = vmatprep.subr.mxu1 %v2104_v13 }
 0x397   : > { %2162 = vmatpush2.msra.mxu1 %v2103_v15 }
 0x398   : > { %2163 = vmatprep.subr.mxu1 %v2102_v16 }
 0x399   : > { %2164 = vmatpush2.msra.mxu1 %v2101_v17 }
 0x39a   : > { %2165 = vmatprep.subr.mxu1 %v2100_v20 }
 0x39b   : > { %2166 = vmatpush2.msra.mxu1 %v2099_v14 }
 0x39c   : > { %2167 = vmatprep.subr.mxu1 %v2098_v21 }
 0x39d   : > { %2168 = vmatpush2.msra.mxu1 %v2097_v25 }
 0x39e   : > { %2169 = vmatprep.subr.mxu1 %v2096_v19 }
 0x39f   : > { %2170 = vmatpush2.msra.mxu1 %v2095_v1 }
 0x3a0   : > { %2171 = vmatprep.subr.mxu1 %v2094_v27 }
 0x3a1   : > { %2172 = vmatpush2.msra.mxu1 %v2093_v39 }
 0x418   : > { %v1785_v57 = vpop.f32.mrf.mxu1 }
 0x419   : > { %v1786_v62 = vadd.f32 %v1785_v57, %v1712_v43 }
 0x41a   : > { %v1787_v53 = vpop.f32.mrf.mxu1 }
 0x41b   : > { %v1788_v2 = vadd.f32 %v1787_v53, %v1716_v44  ;;  %v1832_v58 = vmax.f32 %v1786_v62, 0.0 }
 0x41c   : > { %v1791_v3 = vpop.f32.mrf.mxu1 }
 0x41d   : > { %v1833_v4 = vmax.f32 %v1788_v2, 0.0  ;;  %v1792_v7 = vadd.f32 %v1791_v3, %v1712_v43 }
 0x41e   : > { %v1793_v8 = vpop.f32.mrf.mxu1 }
 0x41f   : > { %v1794_v60 = vadd.f32 %v1793_v8, %v1716_v44  ;;  %1988 = vmatprep.mubr.f32.mxu0 %v1833_v4  ;;  %v1834_v11 = vmax.f32 %v1792_v7, 0.0 }
 0x420   : > { %v1797_v61 = vpop.f32.mrf.mxu1  ;;  %1989 = vmatmul.mubr.f32.vlgmr.msra.gmra.mxu0 %v1832_v58 }
 0x421   : > { %v1835_v10 = vmax.f32 %v1794_v60, 0.0  ;;  %v1798_v5 = vadd.f32 %v1797_v61, %v1712_v43 }
 0x422   : > { %v1799_v13 = vpop.f32.mrf.mxu1 }
 0x423   : > { %v1800_v15 = vadd.f32 %v1799_v13, %v1716_v44  ;;  %1994 = vmatprep.mubr.f32.mxu0 %v1835_v10  ;;  %v1836_v20 = vmax.f32 %v1798_v5, 0.0 }
 0x424   : > { %v1803_v16 = vpop.f32.mrf.mxu1  ;;  %1995 = vmatmul.mubr.f32.gmra.mxu0 %v1834_v11 }
 0x425   : > { %v1837_v17 = vmax.f32 %v1800_v15, 0.0  ;;  %v1804_v14 = vadd.f32 %v1803_v16, %v1712_v43 }
 0x426   : > { %v1805_v21 = vpop.f32.mrf.mxu1 }
 0x427   : > { %v1806_v25 = vadd.f32 %v1805_v21, %v1716_v44  ;;  %2000 = vmatprep.mubr.f32.mxu0 %v1837_v17  ;;  %v1838_v27 = vmax.f32 %v1804_v14, 0.0 }
 0x428   : > { %v1809_v19 = vpop.f32.mrf.mxu1  ;;  %2001 = vmatmul.mubr.f32.gmra.mxu0 %v1836_v20 }
 0x429   : > { %v1839_v1 = vmax.f32 %v1806_v25, 0.0  ;;  %v1810_v39 = vadd.f32 %v1809_v19, %v1712_v43  ;;  %v2092_v25 = vld [vmem:[#allocation5 + $0xcc0] sm:$0xff]  ;;  %v2091_v19 = vld [vmem:[#allocation5 + $0xcb8] sm:$0xff] }
 0x42a   : > { %v1811_v42 = vpop.f32.mrf.mxu1  ;;  %2173 = vmatprep.subr.mxu1 %v2092_v25  ;;  %v2300_v25 = vld [vmem:[#allocation5 + $0x398] sm:$0xff] }
 0x42b   : > { %v1812_v57 = vadd.f32 %v1811_v42, %v1716_v44  ;;  %2006 = vmatprep.mubr.f32.mxu0 %v1839_v1  ;;  %v1840_v2 = vmax.f32 %v1810_v39, 0.0  ;;  %2174 = vmatpush2.msra.mxu1 %v2091_v19  ;;  %v2090_v1 = vld [vmem:[#allocation5 + $0xc18] sm:$0xff]  ;;  %v2088_v39 = vld [vmem:[#allocation5 + $0xb70] sm:$0xff]  ;;  %v2087_v42 = vld [vmem:[#allocation5 + $0xb68] sm:$0xff] }
 0x42c   : > { %v1815_v62 = vpop.f32.mrf.mxu1  ;;  %2007 = vmatmul.mubr.f32.gmra.mxu0 %v1838_v27  ;;  %2175 = vmatprep.subr.mxu1 %v2090_v1  ;;  %v2089_v27 = vld [vmem:[#allocation5 + $0xc10] sm:$0xff]  ;;  %v2299_v19 = vld [vmem:[#allocation5 + $0x2f8] sm:$0xff] }
 0x42d   : > { %v1841_v53 = vmax.f32 %v1812_v57, 0.0  ;;  %v1816_v3 = vadd.f32 %v1815_v62, %v1712_v43  ;;  %2176 = vmatpush2.msra.mxu1 %v2089_v27  ;;  %v2321_v57 = vld [vmem:[#allocation5 + $0xa30] sm:$0xff]  ;;  %v2320_v62 = vld [vmem:[#allocation5 + $0xa28] sm:$0xff] }
 0x42e   : > { %v1817_v4 = vpop.f32.mrf.mxu1  ;;  %2177 = vmatprep.subr.mxu1 %v2088_v39  ;;  %2366 = vmatprep.subr.mxu0 %v2321_v57  ;;  %v2298_v1 = vld [vmem:[#allocation5 + $0x2f0] sm:$0xff]  ;;  %v2296_v39 = vld [vmem:[#allocation5 + $0x248] sm:$0xff]  ;;  %v2292_v57 = vld [vmem:[#allocation5 + $0xf8] sm:$0xff] }
 0x42f   : > { %v1818_v58 = vadd.f32 %v1817_v4, %v1716_v44  ;;  %2012 = vmatprep.mubr.f32.mxu0 %v1841_v53  ;;  %v1842_v60 = vmax.f32 %v1816_v3, 0.0  ;;  %2178 = vmatpush2.msra.mxu1 %v2087_v42  ;;  %v2319_v53 = vld [vmem:[#allocation5 + $0x988] sm:$0xff]  ;;  %v2317_v3 = vld [vmem:[#allocation5 + $0x8e0] sm:$0xff]  ;;  %v2316_v4 = vld [vmem:[#allocation5 + $0x8d8] sm:$0xff] }
 0x430   : > { %v1821_v7 = vpop.f32.mrf.mxu1  ;;  %2013 = vmatmul.mubr.f32.gmra.mxu0 %v1840_v2  ;;  %v2318_v2 = vld [vmem:[#allocation5 + $0x980] sm:$0xff]  ;;  %v2297_v27 = vld [vmem:[#allocation5 + $0x250] sm:$0xff]  ;;  %v2295_v42 = vld [vmem:[#allocation5 + $0x1a8] sm:$0xff] }
 0x431   : > { %v1843_v8 = vmax.f32 %v1818_v58, 0.0  ;;  %v1822_v61 = vadd.f32 %v1821_v7, %v1712_v43  ;;  %2367 = vmatpush1.msra.mxu0 %v2320_v62  ;;  %v2315_v58 = vld [vmem:[#allocation5 + $0x838] sm:$0xff]  ;;  %v2314_v7 = vld [vmem:[#allocation5 + $0x830] sm:$0xff] }
 0x432   : > { %v1823_v10 = vpop.f32.mrf.mxu1  ;;  %2368 = vmatprep.subr.mxu0 %v2319_v53  ;;  %v2291_v62 = vld [vmem:[#allocation5 + $0x58] sm:$0xff]  ;;  %v2290_v53 = vld [vmem:[#allocation5 + $0x50] sm:$0xff] }
 0x433   : > { %v1824_v11 = vadd.f32 %v1823_v10, %v1716_v44  ;;  %2018 = vmatprep.mubr.f32.mxu0 %v1843_v8  ;;  %v1844_v15 = vmax.f32 %v1822_v61, 0.0  ;;  %2369 = vmatpush1.msra.mxu0 %v2318_v2  ;;  %v2313_v8 = vld [vmem:[#allocation5 + $0x790] sm:$0xff]  ;;  %v2311_v61 = vld [vmem:[#allocation5 + $0x6e8] sm:$0xff]  ;;  %v2310_v10 = vld [vmem:[#allocation5 + $0x6e0] sm:$0xff] }
 0x434   : > { %v1827_v5 = vpop.f32.mrf.mxu1  ;;  %2019 = vmatmul.mubr.f32.gmra.mxu0 %v1842_v60  ;;  %2370 = vmatprep.subr.mxu0 %v2317_v3  ;;  %v2312_v60 = vld [vmem:[#allocation5 + $0x788] sm:$0xff]  ;;  %v2353_v2 = vld [vmem:[#allocation5 + $0x14b0] sm:$0xff] }
 0x435   : > { %v1845_v13 = vmax.f32 %v1824_v11, 0.0  ;;  %v1828_v16 = vadd.f32 %v1827_v5, %v1712_v43  ;;  %v2086_v43 = vld [vmem:[#allocation5 + $0xac8] sm:$0xff]  ;;  %2371 = vmatpush1.msra.mxu0 %v2316_v4  ;;  %v2309_v11 = vld [vmem:[#allocation5 + $0x640] sm:$0xff]  ;;  %v2308_v5 = vld [vmem:[#allocation5 + $0x638] sm:$0xff] }
 0x436   : > { %v1829_v17 = vpop.f32.mrf.mxu1  ;;  %2179 = vmatprep.subr.mxu1 %v2086_v43  ;;  %2372 = vmatprep.subr.mxu0 %v2315_v58  ;;  %v2294_v43 = vld [vmem:[#allocation5 + $0x1a0] sm:$0xff]  ;;  %v2352_v3 = vld [vmem:[#allocation5 + $0x14a8] sm:$0xff] }
 0x437   : > { %v1830_v20 = vadd.f32 %v1829_v17, %v1716_v44  ;;  %2024 = vmatprep.mubr.f32.mxu0 %v1845_v13  ;;  %v1846_v21 = vmax.f32 %v1828_v16, 0.0  ;;  %v2085_v44 = vld [vmem:[#allocation5 + $0xac0] sm:$0xff]  ;;  %2373 = vmatpush1.msra.mxu0 %v2314_v7  ;;  %v2307_v13 = vld [vmem:[#allocation5 + $0x598] sm:$0xff]  ;;  %v2305_v16 = vld [vmem:[#allocation5 + $0x4f0] sm:$0xff] }
 0x438   : > { %2025 = vmatmul.mubr.f32.gmra.mxu0 %v1844_v15  ;;  %2180 = vmatpush2.msra.mxu1 %v2085_v44  ;;  %v2306_v15 = vld [vmem:[#allocation5 + $0x590] sm:$0xff]  ;;  %v2304_v17 = vld [vmem:[#allocation5 + $0x4e8] sm:$0xff]  ;;  %v2293_v44 = vld [vmem:[#allocation5 + $0x100] sm:$0xff] }
 0x439   : > { %v1847_v14 = vmax.f32 %v1830_v20, 0.0  ;;  %2374 = vmatprep.subr.mxu0 %v2313_v8  ;;  %v2303_v20 = vld [vmem:[#allocation5 + $0x448] sm:$0xff]  ;;  %v2350_v58 = vld [vmem:[#allocation5 + $0x1400] sm:$0xff]  ;;  %v2348_v8 = vld [vmem:[#allocation5 + $0x1358] sm:$0xff] }
 0x43a   : > { %2375 = vmatpush1.msra.mxu0 %v2312_v60  ;;  %v2351_v4 = vld [vmem:[#allocation5 + $0x1408] sm:$0xff]  ;;  %v2349_v7 = vld [vmem:[#allocation5 + $0x1360] sm:$0xff]  ;;  %v2347_v60 = vld [vmem:[#allocation5 + $0x12b8] sm:$0xff] }
 0x43b   : > { %2030 = vmatprep.mubr.f32.mxu0 %v1847_v14  ;;  %2376 = vmatprep.subr.mxu0 %v2311_v61  ;;  %v2302_v14 = vld [vmem:[#allocation5 + $0x440] sm:$0xff]  ;;  %v2346_v61 = vld [vmem:[#allocation5 + $0x12b0] sm:$0xff] }
 0x43c   : > { %2031 = vmatmul.mubr.f32.gmra.mxu0 %v1846_v21  ;;  %v2301_v21 = vld [vmem:[#allocation5 + $0x3a0] sm:$0xff] }
 0x43d   : > { %2377 = vmatpush1.msra.mxu0 %v2310_v10  ;;  %v2345_v10 = vld [vmem:[#allocation5 + $0x1210] sm:$0xff] }
 0x43e   : > { %2378 = vmatprep.subr.mxu0 %v2309_v11  ;;  %v2344_v11 = vld [vmem:[#allocation5 + $0x1208] sm:$0xff] }
 0x43f   : > { %2379 = vmatpush1.msra.mxu0 %v2308_v5  ;;  %v2343_v5 = vld [vmem:[#allocation5 + $0x1168] sm:$0xff] }
 0x440   : > { %2380 = vmatprep.subr.mxu0 %v2307_v13  ;;  %v2342_v13 = vld [vmem:[#allocation5 + $0x1160] sm:$0xff] }
 0x441   : > { %2381 = vmatpush1.msra.mxu0 %v2306_v15  ;;  %v2341_v15 = vld [vmem:[#allocation5 + $0x10c0] sm:$0xff] }
 0x442   : > { %2382 = vmatprep.subr.mxu0 %v2305_v16  ;;  %v2340_v16 = vld [vmem:[#allocation5 + $0x10b8] sm:$0xff] }
 0x443   : > { %2383 = vmatpush1.msra.mxu0 %v2304_v17  ;;  %v2339_v17 = vld [vmem:[#allocation5 + $0x1018] sm:$0xff] }
 0x444   : > { %2384 = vmatprep.subr.mxu0 %v2303_v20  ;;  %v2338_v20 = vld [vmem:[#allocation5 + $0x1010] sm:$0xff] }
 0x445   : > { %2385 = vmatpush1.msra.mxu0 %v2302_v14  ;;  %v2337_v14 = vld [vmem:[#allocation5 + $0xf70] sm:$0xff] }
 0x446   : > { %2386 = vmatprep.subr.mxu0 %v2301_v21  ;;  %v2336_v21 = vld [vmem:[#allocation5 + $0xf68] sm:$0xff] }
 0x447   : > { %2387 = vmatpush1.msra.mxu0 %v2300_v25  ;;  %v2335_v25 = vld [vmem:[#allocation5 + $0xec8] sm:$0xff] }
 0x448   : > { %2388 = vmatprep.subr.mxu0 %v2299_v19  ;;  %v2334_v19 = vld [vmem:[#allocation5 + $0xec0] sm:$0xff] }
 0x449   : > { %2389 = vmatpush1.msra.mxu0 %v2298_v1  ;;  %v2333_v1 = vld [vmem:[#allocation5 + $0xe20] sm:$0xff] }
 0x44a   : > { %2390 = vmatprep.subr.mxu0 %v2297_v27  ;;  %v2332_v27 = vld [vmem:[#allocation5 + $0xe18] sm:$0xff] }
 0x44b   : > { %2391 = vmatpush1.msra.mxu0 %v2296_v39  ;;  %v1912_v39 = vld [vmem:[#allocation14] sm:$0x3] }
 0x44c   : > { %2392 = vmatprep.subr.mxu0 %v2295_v42  ;;  %v1917_v42 = vrot.slane %v1912_v39, %v4875_v46 }
 0x44d   : > { %2393 = vmatpush1.msra.mxu0 %v2294_v43  ;;  %v1921_v43 = vrot.slane %v1912_v39, %v4877_v48 }
 0x44e   : > { %2394 = vmatprep.subr.mxu0 %v2293_v44 }
 0x44f   : > { %2395 = vmatpush1.msra.mxu0 %v2292_v57 }
 0x450   : > { %2396 = vmatprep.subr.mxu0 %v2291_v62 }
 0x451   : > { %2397 = vmatpush1.msra.mxu0 %v2290_v53 }
 0x452   : > { %2398 = vmatprep.subr.mxu0 %v2353_v2 }
 0x453   : > { %2399 = vmatpush2.msra.mxu0 %v2352_v3 }
 0x454   : > { %2400 = vmatprep.subr.mxu0 %v2351_v4 }
 0x455   : > { %2401 = vmatpush2.msra.mxu0 %v2350_v58 }
 0x456   : > { %2402 = vmatprep.subr.mxu0 %v2349_v7 }
 0x457   : > { %2403 = vmatpush2.msra.mxu0 %v2348_v8 }
 0x458   : > { %2404 = vmatprep.subr.mxu0 %v2347_v60 }
 0x459   : > { %2405 = vmatpush2.msra.mxu0 %v2346_v61 }
 0x45a   : > { %2406 = vmatprep.subr.mxu0 %v2345_v10 }
 0x45b   : > { %2407 = vmatpush2.msra.mxu0 %v2344_v11 }
 0x45c   : > { %2408 = vmatprep.subr.mxu0 %v2343_v5 }
 0x45d   : > { %2409 = vmatpush2.msra.mxu0 %v2342_v13 }
 0x45e   : > { %2410 = vmatprep.subr.mxu0 %v2341_v15 }
 0x45f   : > { %2411 = vmatpush2.msra.mxu0 %v2340_v16 }
 0x460   : > { %2412 = vmatprep.subr.mxu0 %v2339_v17 }
 0x461   : > { %2413 = vmatpush2.msra.mxu0 %v2338_v20 }
 0x462   : > { %2414 = vmatprep.subr.mxu0 %v2337_v14 }
 0x463   : > { %2415 = vmatpush2.msra.mxu0 %v2336_v21 }
 0x464   : > { %2416 = vmatprep.subr.mxu0 %v2335_v25 }
 0x465   : > { %2417 = vmatpush2.msra.mxu0 %v2334_v19 }
 0x466   : > { %2418 = vmatprep.subr.mxu0 %v2333_v1 }
 0x467   : > { %2419 = vmatpush2.msra.mxu0 %v2332_v27 }
 0x4e0   : > { %v1990_v44 = vpop.f32.mrf.mxu0 }
 0x4e1   : > { %v1991_v57 = vadd.f32 %v1990_v44, %v1917_v42 }
 0x4e2   : > { %v1992_v62 = vpop.f32.mrf.mxu0 }
 0x4e3   : > { %v1993_v53 = vadd.f32 %v1992_v62, %v1921_v43  ;;  %v2037_v4 = vmax.f32 %v1991_v57, 0.0 }
 0x4e4   : > { %v1996_v2 = vpop.f32.mrf.mxu0 }
 0x4e5   : > { %v2038_v3 = vmax.f32 %v1993_v53, 0.0  ;;  %v1997_v58 = vadd.f32 %v1996_v2, %v1917_v42 }
 0x4e6   : > { %v1998_v7 = vpop.f32.mrf.mxu0 }
 0x4e7   : > { %v1999_v8 = vadd.f32 %v1998_v7, %v1921_v43  ;;  %2181 = vmatprep.mubr.f32.mxu1 %v2038_v3  ;;  %v2039_v10 = vmax.f32 %v1997_v58, 0.0 }
 0x4e8   : > { %v2002_v60 = vpop.f32.mrf.mxu0  ;;  %2182 = vmatmul.mubr.f32.vlgmr.msra.gmra.mxu1 %v2037_v4 }
 0x4e9   : > { %v2040_v61 = vmax.f32 %v1999_v8, 0.0  ;;  %v2003_v11 = vadd.f32 %v2002_v60, %v1917_v42 }
 0x4ea   : > { %v2004_v5 = vpop.f32.mrf.mxu0 }
 0x4eb   : > { %v2005_v13 = vadd.f32 %v2004_v5, %v1921_v43  ;;  %2187 = vmatprep.mubr.f32.mxu1 %v2040_v61  ;;  %v2041_v17 = vmax.f32 %v2003_v11, 0.0 }
 0x4ec   : > { %v2008_v15 = vpop.f32.mrf.mxu0  ;;  %2188 = vmatmul.mubr.f32.gmra.mxu1 %v2039_v10 }
 0x4ed   : > { %v2042_v16 = vmax.f32 %v2005_v13, 0.0  ;;  %v2009_v20 = vadd.f32 %v2008_v15, %v1917_v42 }
 0x4ee   : > { %v2010_v14 = vpop.f32.mrf.mxu0 }
 0x4ef   : > { %v2011_v21 = vadd.f32 %v2010_v14, %v1921_v43  ;;  %2193 = vmatprep.mubr.f32.mxu1 %v2042_v16  ;;  %v2043_v1 = vmax.f32 %v2009_v20, 0.0 }
 0x4f0   : > { %v2014_v25 = vpop.f32.mrf.mxu0  ;;  %2194 = vmatmul.mubr.f32.gmra.mxu1 %v2041_v17 }
 0x4f1   : > { %v2044_v19 = vmax.f32 %v2011_v21, 0.0  ;;  %v2015_v27 = vadd.f32 %v2014_v25, %v1917_v42  ;;  %v2331_v21 = vld [vmem:[#allocation5 + $0xd78] sm:$0xff]  ;;  %v2330_v25 = vld [vmem:[#allocation5 + $0xd70] sm:$0xff] }
 0x4f2   : > { %v2016_v39 = vpop.f32.mrf.mxu0  ;;  %2420 = vmatprep.subr.mxu0 %v2331_v21  ;;  %v2507_v21 = vld [vmem:[#allocation5 + $0x450] sm:$0xff] }
 0x4f3   : > { %v2017_v44 = vadd.f32 %v2016_v39, %v1921_v43  ;;  %2199 = vmatprep.mubr.f32.mxu1 %v2044_v19  ;;  %v2045_v53 = vmax.f32 %v2015_v27, 0.0  ;;  %2421 = vmatpush2.msra.mxu0 %v2330_v25  ;;  %v2329_v19 = vld [vmem:[#allocation5 + $0xcd0] sm:$0xff]  ;;  %v2327_v27 = vld [vmem:[#allocation5 + $0xc28] sm:$0xff]  ;;  %v2326_v39 = vld [vmem:[#allocation5 + $0xc20] sm:$0xff] }
 0x4f4   : > { %v2020_v57 = vpop.f32.mrf.mxu0  ;;  %2200 = vmatmul.mubr.f32.gmra.mxu1 %v2043_v1  ;;  %2422 = vmatprep.subr.mxu0 %v2329_v19  ;;  %v2328_v1 = vld [vmem:[#allocation5 + $0xcc8] sm:$0xff]  ;;  %v2506_v25 = vld [vmem:[#allocation5 + $0x3b0] sm:$0xff] }
 0x4f5   : > { %v2046_v62 = vmax.f32 %v2017_v44, 0.0  ;;  %v2021_v2 = vadd.f32 %v2020_v57, %v1917_v42  ;;  %2423 = vmatpush2.msra.mxu0 %v2328_v1  ;;  %v2323_v44 = vld [vmem:[#allocation5 + $0xad8] sm:$0xff]  ;;  %v2322_v57 = vld [vmem:[#allocation5 + $0xad0] sm:$0xff]  ;;  %v2505_v19 = vld [vmem:[#allocation5 + $0x3a8] sm:$0xff] }
 0x4f6   : > { %v2022_v3 = vpop.f32.mrf.mxu0  ;;  %2424 = vmatprep.subr.mxu0 %v2327_v27  ;;  %v2504_v1 = vld [vmem:[#allocation5 + $0x308] sm:$0xff]  ;;  %v2503_v27 = vld [vmem:[#allocation5 + $0x300] sm:$0xff] }
 0x4f7   : > { %v2023_v4 = vadd.f32 %v2022_v3, %v1921_v43  ;;  %2205 = vmatprep.mubr.f32.mxu1 %v2046_v62  ;;  %v2047_v8 = vmax.f32 %v2021_v2, 0.0  ;;  %2425 = vmatpush2.msra.mxu0 %v2326_v39  ;;  %v2526_v62 = vld [vmem:[#allocation5 + $0xa40] sm:$0xff]  ;;  %v2524_v2 = vld [vmem:[#allocation5 + $0x998] sm:$0xff]  ;;  %v2523_v3 = vld [vmem:[#allocation5 + $0x990] sm:$0xff] }
 0x4f8   : > { %v2026_v58 = vpop.f32.mrf.mxu0  ;;  %2206 = vmatmul.mubr.f32.gmra.mxu1 %v2045_v53  ;;  %v2525_v53 = vld [vmem:[#allocation5 + $0xa38] sm:$0xff]  ;;  %2571 = vmatprep.subr.mxu1 %v2526_v62  ;;  %v2502_v39 = vld [vmem:[#allocation5 + $0x260] sm:$0xff]  ;;  %v2497_v62 = vld [vmem:[#allocation5 + $0x108] sm:$0xff] }
 0x4f9   : > { %v2048_v7 = vmax.f32 %v2023_v4, 0.0  ;;  %v2027_v60 = vadd.f32 %v2026_v58, %v1917_v42  ;;  %2572 = vmatpush1.msra.mxu1 %v2525_v53  ;;  %v2522_v4 = vld [vmem:[#allocation5 + $0x8f0] sm:$0xff]  ;;  %v2521_v58 = vld [vmem:[#allocation5 + $0x8e8] sm:$0xff] }
 0x4fa   : > { %v2028_v61 = vpop.f32.mrf.mxu0  ;;  %2573 = vmatprep.subr.mxu1 %v2524_v2  ;;  %v2496_v53 = vld [vmem:[#allocation5 + $0x68] sm:$0xff]  ;;  %v2495_v2 = vld [vmem:[#allocation5 + $0x60] sm:$0xff] }
 0x4fb   : > { %v2029_v10 = vadd.f32 %v2028_v61, %v1921_v43  ;;  %2211 = vmatprep.mubr.f32.mxu1 %v2048_v7  ;;  %v2049_v13 = vmax.f32 %v2027_v60, 0.0  ;;  %2574 = vmatpush1.msra.mxu1 %v2523_v3  ;;  %v2520_v7 = vld [vmem:[#allocation5 + $0x848] sm:$0xff]  ;;  %v2518_v60 = vld [vmem:[#allocation5 + $0x7a0] sm:$0xff]  ;;  %v2517_v61 = vld [vmem:[#allocation5 + $0x798] sm:$0xff] }
 0x4fc   : > { %v2032_v11 = vpop.f32.mrf.mxu0  ;;  %2212 = vmatmul.mubr.f32.gmra.mxu1 %v2047_v8  ;;  %2575 = vmatprep.subr.mxu1 %v2522_v4  ;;  %v2519_v8 = vld [vmem:[#allocation5 + $0x840] sm:$0xff]  ;;  %v2557_v4 = vld [vmem:[#allocation5 + $0x14b8] sm:$0xff] }
 0x4fd   : > { %v2050_v5 = vmax.f32 %v2029_v10, 0.0  ;;  %v2033_v15 = vadd.f32 %v2032_v11, %v1917_v42  ;;  %v2325_v42 = vld [vmem:[#allocation5 + $0xb80] sm:$0xff]  ;;  %2576 = vmatpush1.msra.mxu1 %v2521_v58  ;;  %v2516_v10 = vld [vmem:[#allocation5 + $0x6f8] sm:$0xff]  ;;  %v2515_v11 = vld [vmem:[#allocation5 + $0x6f0] sm:$0xff] }
 0x4fe   : > { %v2034_v16 = vpop.f32.mrf.mxu0  ;;  %2426 = vmatprep.subr.mxu0 %v2325_v42  ;;  %2577 = vmatprep.subr.mxu1 %v2520_v7  ;;  %v2501_v42 = vld [vmem:[#allocation5 + $0x258] sm:$0xff]  ;;  %v2558_v3 = vld [vmem:[#allocation5 + $0x14c0] sm:$0xff]  ;;  %v2555_v7 = vld [vmem:[#allocation5 + $0x1410] sm:$0xff] }
 0x4ff   : > { %v2035_v17 = vadd.f32 %v2034_v16, %v1921_v43  ;;  %2217 = vmatprep.mubr.f32.mxu1 %v2050_v5  ;;  %v2051_v14 = vmax.f32 %v2033_v15, 0.0  ;;  %v2324_v43 = vld [vmem:[#allocation5 + $0xb78] sm:$0xff]  ;;  %2578 = vmatpush1.msra.mxu1 %v2519_v8  ;;  %v2514_v5 = vld [vmem:[#allocation5 + $0x650] sm:$0xff]  ;;  %v2512_v15 = vld [vmem:[#allocation5 + $0x5a8] sm:$0xff] }
 0x500   : > { %2218 = vmatmul.mubr.f32.gmra.mxu1 %v2049_v13  ;;  %2427 = vmatpush2.msra.mxu0 %v2324_v43  ;;  %v2513_v13 = vld [vmem:[#allocation5 + $0x648] sm:$0xff]  ;;  %v2511_v16 = vld [vmem:[#allocation5 + $0x5a0] sm:$0xff]  ;;  %v2500_v43 = vld [vmem:[#allocation5 + $0x1b8] sm:$0xff] }
 0x501   : > { %v2052_v20 = vmax.f32 %v2035_v17, 0.0  ;;  %2428 = vmatprep.subr.mxu0 %v2323_v44  ;;  %2579 = vmatprep.subr.mxu1 %v2518_v60  ;;  %v2510_v17 = vld [vmem:[#allocation5 + $0x500] sm:$0xff]  ;;  %v2499_v44 = vld [vmem:[#allocation5 + $0x1b0] sm:$0xff]  ;;  %v2556_v58 = vld [vmem:[#allocation5 + $0x1418] sm:$0xff] }
 0x502   : > { %2429 = vmatpush2.msra.mxu0 %v2322_v57  ;;  %2580 = vmatpush1.msra.mxu1 %v2517_v61  ;;  %v2498_v57 = vld [vmem:[#allocation5 + $0x110] sm:$0xff]  ;;  %v2553_v60 = vld [vmem:[#allocation5 + $0x1368] sm:$0xff] }
 0x503   : > { %2223 = vmatprep.mubr.f32.mxu1 %v2052_v20  ;;  %2581 = vmatprep.subr.mxu1 %v2516_v10  ;;  %v2509_v20 = vld [vmem:[#allocation5 + $0x4f8] sm:$0xff]  ;;  %v2554_v8 = vld [vmem:[#allocation5 + $0x1370] sm:$0xff]  ;;  %v2552_v61 = vld [vmem:[#allocation5 + $0x12c8] sm:$0xff] }
 0x504   : > { %2224 = vmatmul.mubr.f32.gmra.mxu1 %v2051_v14  ;;  %v2508_v14 = vld [vmem:[#allocation5 + $0x458] sm:$0xff]  ;;  %v2551_v10 = vld [vmem:[#allocation5 + $0x12c0] sm:$0xff] }
 0x505   : > { %2582 = vmatpush1.msra.mxu1 %v2515_v11  ;;  %v2550_v11 = vld [vmem:[#allocation5 + $0x1220] sm:$0xff] }
 0x506   : > { %2583 = vmatprep.subr.mxu1 %v2514_v5  ;;  %v2549_v5 = vld [vmem:[#allocation5 + $0x1218] sm:$0xff] }
 0x507   : > { %2584 = vmatpush1.msra.mxu1 %v2513_v13  ;;  %v2548_v13 = vld [vmem:[#allocation5 + $0x1178] sm:$0xff] }
 0x508   : > { %2585 = vmatprep.subr.mxu1 %v2512_v15  ;;  %v2547_v15 = vld [vmem:[#allocation5 + $0x1170] sm:$0xff] }
 0x509   : > { %2586 = vmatpush1.msra.mxu1 %v2511_v16  ;;  %v2546_v16 = vld [vmem:[#allocation5 + $0x10d0] sm:$0xff] }
 0x50a   : > { %2587 = vmatprep.subr.mxu1 %v2510_v17  ;;  %v2545_v17 = vld [vmem:[#allocation5 + $0x10c8] sm:$0xff] }
 0x50b   : > { %2588 = vmatpush1.msra.mxu1 %v2509_v20  ;;  %v2544_v20 = vld [vmem:[#allocation5 + $0x1028] sm:$0xff] }
 0x50c   : > { %2589 = vmatprep.subr.mxu1 %v2508_v14  ;;  %v2543_v14 = vld [vmem:[#allocation5 + $0x1020] sm:$0xff] }
 0x50d   : > { %2590 = vmatpush1.msra.mxu1 %v2507_v21  ;;  %v2542_v21 = vld [vmem:[#allocation5 + $0xf80] sm:$0xff] }
 0x50e   : > { %2591 = vmatprep.subr.mxu1 %v2506_v25  ;;  %v2541_v25 = vld [vmem:[#allocation5 + $0xf78] sm:$0xff] }
 0x50f   : > { %2592 = vmatpush1.msra.mxu1 %v2505_v19  ;;  %v2540_v19 = vld [vmem:[#allocation5 + $0xed8] sm:$0xff] }
 0x510   : > { %2593 = vmatprep.subr.mxu1 %v2504_v1  ;;  %v2539_v1 = vld [vmem:[#allocation5 + $0xed0] sm:$0xff] }
 0x511   : > { %2594 = vmatpush1.msra.mxu1 %v2503_v27  ;;  %v2538_v27 = vld [vmem:[#allocation5 + $0xe30] sm:$0xff] }
 0x512   : > { %2595 = vmatprep.subr.mxu1 %v2502_v39  ;;  %v2537_v39 = vld [vmem:[#allocation5 + $0xe28] sm:$0xff] }
 0x513   : > { %2596 = vmatpush1.msra.mxu1 %v2501_v42  ;;  %v2536_v42 = vld [vmem:[#allocation5 + $0xd88] sm:$0xff] }
 0x514   : > { %2597 = vmatprep.subr.mxu1 %v2500_v43  ;;  %v2535_v43 = vld [vmem:[#allocation5 + $0xd80] sm:$0xff] }
 0x515   : > { %2598 = vmatpush1.msra.mxu1 %v2499_v44  ;;  %v2246_v44 = vld [vmem:[#allocation16] sm:$0x3] }
 0x516   : > { %2599 = vmatprep.subr.mxu1 %v2498_v57 }
 0x517   : > { %2600 = vmatpush1.msra.mxu1 %v2497_v62  ;;  %v4954_v62 = vrot.slane %v2246_v44, %v4875_v46 }
 0x518   : > { %2601 = vmatprep.subr.mxu1 %v2496_v53 }
 0x519   : > { %2602 = vmatpush1.msra.mxu1 %v2495_v2  ;;  %v4958_v2 = vrot.slane %v2246_v44, %v4877_v48 }
 0x51a   : > { %2603 = vmatprep.subr.mxu1 %v2558_v3 }
 0x51b   : > { %2604 = vmatpush2.msra.mxu1 %v2557_v4 }
 0x51c   : > { %2605 = vmatprep.subr.mxu1 %v2556_v58 }
 0x51d   : > { %2606 = vmatpush2.msra.mxu1 %v2555_v7 }
 0x51e   : > { %2607 = vmatprep.subr.mxu1 %v2554_v8 }
 0x51f   : > { %2608 = vmatpush2.msra.mxu1 %v2553_v60 }
 0x520   : > { %2609 = vmatprep.subr.mxu1 %v2552_v61 }
 0x521   : > { %2610 = vmatpush2.msra.mxu1 %v2551_v10 }
 0x522   : > { %2611 = vmatprep.subr.mxu1 %v2550_v11 }
 0x523   : > { %2612 = vmatpush2.msra.mxu1 %v2549_v5 }
 0x524   : > { %2613 = vmatprep.subr.mxu1 %v2548_v13 }
 0x525   : > { %2614 = vmatpush2.msra.mxu1 %v2547_v15 }
 0x526   : > { %2615 = vmatprep.subr.mxu1 %v2546_v16 }
 0x527   : > { %2616 = vmatpush2.msra.mxu1 %v2545_v17 }
 0x528   : > { %2617 = vmatprep.subr.mxu1 %v2544_v20 }
 0x529   : > { %2618 = vmatpush2.msra.mxu1 %v2543_v14 }
 0x52a   : > { %2619 = vmatprep.subr.mxu1 %v2542_v21 }
 0x52b   : > { %2620 = vmatpush2.msra.mxu1 %v2541_v25 }
 0x52c   : > { %2621 = vmatprep.subr.mxu1 %v2540_v19 }
 0x52d   : > { %2622 = vmatpush2.msra.mxu1 %v2539_v1 }
 0x52e   : > { %2623 = vmatprep.subr.mxu1 %v2538_v27 }
 0x52f   : > { %2624 = vmatpush2.msra.mxu1 %v2537_v39 }
 0x530   : > { %2625 = vmatprep.subr.mxu1 %v2536_v42 }
 0x531   : > { %2626 = vmatpush2.msra.mxu1 %v2535_v43 }
 0x5a8   : > { %v2183_v57 = vpop.f32.mrf.mxu1 }
 0x5a9   : > { %v2230_v53 = vadd.f32 %v2183_v57, %v4881_v18 }
 0x5aa   : > { %v2185_v3 = vpop.f32.mrf.mxu1 }
 0x5ab   : > { %v2231_v4 = vadd.f32 %v2185_v3, %v4883_v23  ;;  %v2258_v58 = vadd.f32 %v4954_v62, %v2230_v53 }
 0x5ac   : > { %v2189_v7 = vpop.f32.mrf.mxu1 }
 0x5ad   : > { %v2259_v8 = vadd.f32 %v4958_v2, %v2231_v4  ;;  %v2232_v60 = vadd.f32 %v2189_v7, %v4885_v26  ;;  %v2274_v5 = vmax.f32 %v2258_v58, 0.0 }
 0x5ae   : > { %v2191_v61 = vpop.f32.mrf.mxu1 }
 0x5af   : > { %v2275_v10 = vmax.f32 %v2259_v8, 0.0  ;;  %v2233_v11 = vadd.f32 %v2191_v61, %v4887_v24  ;;  %v2260_v18 = vadd.f32 %v4954_v62, %v2232_v60 }
 0x5b0   : > { %v2195_v13 = vpop.f32.mrf.mxu1 }
 0x5b1   : > { %v2261_v15 = vadd.f32 %v4958_v2, %v2233_v11  ;;  %v2234_v16 = vadd.f32 %v2195_v13, %v4889_v34  ;;  %2430 = vmatprep.mubr.f32.mxu0 %v2275_v10  ;;  %v2276_v14 = vmax.f32 %v2260_v18, 0.0 }
 0x5b2   : > { %v2197_v23 = vpop.f32.mrf.mxu1  ;;  %2431 = vmatmul.mubr.f32.vlgmr.msra.gmra.mxu0 %v2274_v5 }
 0x5b3   : > { %v2277_v17 = vmax.f32 %v2261_v15, 0.0  ;;  %v2235_v20 = vadd.f32 %v2197_v23, %v4891_v40  ;;  %v2262_v26 = vadd.f32 %v4954_v62, %v2234_v16 }
 0x5b4   : > { %v2201_v21 = vpop.f32.mrf.mxu1 }
 0x5b5   : > { %v2263_v24 = vadd.f32 %v4958_v2, %v2235_v20  ;;  %v2236_v25 = vadd.f32 %v2201_v21, %v4893_v45  ;;  %2436 = vmatprep.mubr.f32.mxu0 %v2277_v17  ;;  %v2278_v27 = vmax.f32 %v2262_v26, 0.0 }
 0x5b6   : > { %v2203_v19 = vpop.f32.mrf.mxu1  ;;  %2437 = vmatmul.mubr.f32.gmra.mxu0 %v2276_v14 }
 0x5b7   : > { %v2279_v1 = vmax.f32 %v2263_v24, 0.0  ;;  %v2237_v34 = vadd.f32 %v2203_v19, %v4895_v47  ;;  %v2264_v39 = vadd.f32 %v4954_v62, %v2236_v25  ;;  %v2534_v25 = vld [vmem:[#allocation5 + $0xce0] sm:$0xff]  ;;  %v2532_v19 = vld [vmem:[#allocation5 + $0xc38] sm:$0xff] }
 0x5b8   : > { %v2207_v42 = vpop.f32.mrf.mxu1  ;;  %2627 = vmatprep.subr.mxu1 %v2534_v25  ;;  %v2758_v25 = vld [vmem:[#allocation5 + $0x1378] sm:$0xff] }
 0x5b9   : > { %v2265_v40 = vadd.f32 %v4958_v2, %v2237_v34  ;;  %v2238_v43 = vadd.f32 %v2207_v42, %v4897_v49  ;;  %2442 = vmatprep.mubr.f32.mxu0 %v2279_v1  ;;  %v2280_v53 = vmax.f32 %v2264_v39, 0.0  ;;  %v2531_v1 = vld [vmem:[#allocation5 + $0xc30] sm:$0xff]  ;;  %v2529_v34 = vld [vmem:[#allocation5 + $0xb88] sm:$0xff] }
 0x5ba   : > { %v2209_v44 = vpop.f32.mrf.mxu1  ;;  %2443 = vmatmul.mubr.f32.gmra.mxu0 %v2278_v27  ;;  %v2731_v27 = vld [vmem:[#allocation5 + $0xa50] sm:$0xff]  ;;  %v2730_v39 = vld [vmem:[#allocation5 + $0xa48] sm:$0xff] }
 0x5bb   : > { %v2281_v57 = vmax.f32 %v2265_v40, 0.0  ;;  %v2239_v45 = vadd.f32 %v2209_v44, %v4899_v50  ;;  %v2266_v3 = vadd.f32 %v4954_v62, %v2238_v43  ;;  %v2729_v42 = vld [vmem:[#allocation5 + $0x9a8] sm:$0xff]  ;;  %2776 = vmatprep.subr.mxu0 %v2731_v27  ;;  %v2728_v40 = vld [vmem:[#allocation5 + $0x9a0] sm:$0xff]  ;;  %v2726_v44 = vld [vmem:[#allocation5 + $0x8f8] sm:$0xff] }
 0x5bc   : > { %v2213_v4 = vpop.f32.mrf.mxu1  ;;  %2777 = vmatpush1.msra.mxu0 %v2730_v39  ;;  %v2727_v43 = vld [vmem:[#allocation5 + $0x900] sm:$0xff]  ;;  %v2750_v27 = vld [vmem:[#allocation5 + $0x10d8] sm:$0xff] }
 0x5bd   : > { %v2267_v47 = vadd.f32 %v4958_v2, %v2239_v45  ;;  %v2240_v58 = vadd.f32 %v2213_v4, %v4901_v51  ;;  %2448 = vmatprep.mubr.f32.mxu0 %v2281_v57  ;;  %v2282_v60 = vmax.f32 %v2266_v3, 0.0  ;;  %2778 = vmatprep.subr.mxu0 %v2729_v42  ;;  %v2725_v57 = vld [vmem:[#allocation5 + $0x858] sm:$0xff]  ;;  %v2724_v45 = vld [vmem:[#allocation5 + $0x850] sm:$0xff]  ;;  %v2722_v3 = vld [vmem:[#allocation5 + $0x7a8] sm:$0xff] }
 0x5be   : > { %v2215_v7 = vpop.f32.mrf.mxu1  ;;  %2449 = vmatmul.mubr.f32.gmra.mxu0 %v2280_v53  ;;  %v2723_v53 = vld [vmem:[#allocation5 + $0x7b0] sm:$0xff]  ;;  %v2721_v4 = vld [vmem:[#allocation5 + $0x708] sm:$0xff]  ;;  %v2749_v39 = vld [vmem:[#allocation5 + $0x1038] sm:$0xff] }
 0x5bf   : > { %v2283_v8 = vmax.f32 %v2267_v47, 0.0  ;;  %v2241_v49 = vadd.f32 %v2215_v7, %v4903_v52  ;;  %v2268_v61 = vadd.f32 %v4954_v62, %v2240_v58  ;;  %2779 = vmatpush1.msra.mxu0 %v2728_v40  ;;  %v2720_v47 = vld [vmem:[#allocation5 + $0x700] sm:$0xff]  ;;  %v2718_v7 = vld [vmem:[#allocation5 + $0x658] sm:$0xff]  ;;  %v2748_v42 = vld [vmem:[#allocation5 + $0x1030] sm:$0xff] }
 0x5c0   : > { %v2219_v10 = vpop.f32.mrf.mxu1  ;;  %2780 = vmatprep.subr.mxu0 %v2727_v43  ;;  %v2719_v58 = vld [vmem:[#allocation5 + $0x660] sm:$0xff]  ;;  %v2747_v40 = vld [vmem:[#allocation5 + $0xf90] sm:$0xff]  ;;  %v2746_v43 = vld [vmem:[#allocation5 + $0xf88] sm:$0xff] }
 0x5c1   : > { %v2269_v50 = vadd.f32 %v4958_v2, %v2241_v49  ;;  %v2242_v11 = vadd.f32 %v2219_v10, %v4905_v54  ;;  %2454 = vmatprep.mubr.f32.mxu0 %v2283_v8  ;;  %v2284_v13 = vmax.f32 %v2268_v61, 0.0  ;;  %2781 = vmatpush1.msra.mxu0 %v2726_v44  ;;  %v2717_v8 = vld [vmem:[#allocation5 + $0x5b8] sm:$0xff]  ;;  %v2716_v49 = vld [vmem:[#allocation5 + $0x5b0] sm:$0xff]  ;;  %v2714_v61 = vld [vmem:[#allocation5 + $0x508] sm:$0xff] }
 0x5c2   : > { %v2221_v5 = vpop.f32.mrf.mxu1  ;;  %2455 = vmatmul.mubr.f32.gmra.mxu0 %v2282_v60  ;;  %2782 = vmatprep.subr.mxu0 %v2725_v57  ;;  %v2715_v60 = vld [vmem:[#allocation5 + $0x510] sm:$0xff]  ;;  %v2713_v10 = vld [vmem:[#allocation5 + $0x468] sm:$0xff]  ;;  %v2744_v57 = vld [vmem:[#allocation5 + $0xee0] sm:$0xff] }
 0x5c3   : > { %v2285_v18 = vmax.f32 %v2269_v50, 0.0  ;;  %v2243_v51 = vadd.f32 %v2221_v5, %v4907_v55  ;;  %v2270_v15 = vadd.f32 %v4954_v62, %v2242_v11  ;;  %2783 = vmatpush1.msra.mxu0 %v2724_v45  ;;  %v2712_v50 = vld [vmem:[#allocation5 + $0x460] sm:$0xff]  ;;  %v2710_v5 = vld [vmem:[#allocation5 + $0x3b8] sm:$0xff]  ;;  %v2745_v44 = vld [vmem:[#allocation5 + $0xee8] sm:$0xff] }
 0x5c4   : > { %v2225_v16 = vpop.f32.mrf.mxu1  ;;  %2784 = vmatprep.subr.mxu0 %v2723_v53  ;;  %v2711_v11 = vld [vmem:[#allocation5 + $0x3c0] sm:$0xff]  ;;  %v2742_v53 = vld [vmem:[#allocation5 + $0xe38] sm:$0xff] }
 0x5c5   : > { %v2271_v52 = vadd.f32 %v4958_v2, %v2243_v51  ;;  %v2244_v23 = vadd.f32 %v2225_v16, %v4909_v56  ;;  %2460 = vmatprep.mubr.f32.mxu0 %v2285_v18  ;;  %v2286_v14 = vmax.f32 %v2270_v15, 0.0  ;;  %v2533_v56 = vld [vmem:[#allocation5 + $0xcd8] sm:$0xff]  ;;  %2785 = vmatpush1.msra.mxu0 %v2722_v3  ;;  %v2708_v51 = vld [vmem:[#allocation5 + $0x310] sm:$0xff]  ;;  %v2706_v15 = vld [vmem:[#allocation5 + $0x268] sm:$0xff] }
 0x5c6   : > { %v2227_v17 = vpop.f32.mrf.mxu1  ;;  %2461 = vmatmul.mubr.f32.gmra.mxu0 %v2284_v13  ;;  %2628 = vmatpush2.msra.mxu1 %v2533_v56  ;;  %v2709_v18 = vld [vmem:[#allocation5 + $0x318] sm:$0xff]  ;;  %v2707_v13 = vld [vmem:[#allocation5 + $0x270] sm:$0xff]  ;;  %v2705_v16 = vld [vmem:[#allocation5 + $0x1c8] sm:$0xff] }
 0x5c7   : > { %v2287_v20 = vmax.f32 %v2271_v52, 0.0  ;;  %v2245_v54 = vadd.f32 %v2227_v17, %v4911_v59  ;;  %v2272_v26 = vadd.f32 %v4954_v62, %v2244_v23  ;;  %2629 = vmatprep.subr.mxu1 %v2532_v19  ;;  %v2530_v59 = vld [vmem:[#allocation5 + $0xb90] sm:$0xff]  ;;  %v2528_v62 = vld [vmem:[#allocation5 + $0xae8] sm:$0xff]  ;;  %2786 = vmatprep.subr.mxu0 %v2721_v4  ;;  %v2704_v52 = vld [vmem:[#allocation5 + $0x1c0] sm:$0xff] }
 0x5c8   : > { %2630 = vmatpush2.msra.mxu1 %v2531_v1  ;;  %2787 = vmatpush1.msra.mxu0 %v2720_v47  ;;  %v2703_v23 = vld [vmem:[#allocation5 + $0x120] sm:$0xff]  ;;  %v2702_v17 = vld [vmem:[#allocation5 + $0x118] sm:$0xff]  ;;  %v2756_v19 = vld [vmem:[#allocation5 + $0x12d0] sm:$0xff] }
 0x5c9   : > { %v2273_v21 = vadd.f32 %v4958_v2, %v2245_v54  ;;  %2466 = vmatprep.mubr.f32.mxu0 %v2287_v20  ;;  %v2288_v24 = vmax.f32 %v2272_v26, 0.0  ;;  %2631 = vmatprep.subr.mxu1 %v2530_v59  ;;  %v2527_v2 = vld [vmem:[#allocation5 + $0xae0] sm:$0xff]  ;;  %v2701_v20 = vld [vmem:[#allocation5 + $0x78] sm:$0xff]  ;;  %v2700_v54 = vld [vmem:[#allocation5 + $0x70] sm:$0xff] }
 0x5ca   : > { %2467 = vmatmul.mubr.f32.gmra.mxu0 %v2286_v14  ;;  %2632 = vmatpush2.msra.mxu1 %v2529_v34  ;;  %v2763_v14 = vld [vmem:[#allocation5 + $0x14d0] sm:$0xff]  ;;  %v2762_v26 = vld [vmem:[#allocation5 + $0x14c8] sm:$0xff]  ;;  %v2757_v56 = vld [vmem:[#allocation5 + $0x12d8] sm:$0xff] }
 0x5cb   : > { %v2289_v55 = vmax.f32 %v2273_v21, 0.0  ;;  %2633 = vmatprep.subr.mxu1 %v2528_v62  ;;  %2788 = vmatprep.subr.mxu0 %v2719_v58  ;;  %v2761_v21 = vld [vmem:[#allocation5 + $0x1428] sm:$0xff]  ;;  %v2755_v1 = vld [vmem:[#allocation5 + $0x1230] sm:$0xff]  ;;  %v2752_v62 = vld [vmem:[#allocation5 + $0x1180] sm:$0xff] }
 0x5cc   : > { %2634 = vmatpush2.msra.mxu1 %v2527_v2  ;;  %2789 = vmatpush1.msra.mxu0 %v2718_v7  ;;  %v2754_v59 = vld [vmem:[#allocation5 + $0x1228] sm:$0xff]  ;;  %v2751_v2 = vld [vmem:[#allocation5 + $0x10e0] sm:$0xff]  ;;  %v2741_v3 = vld [vmem:[#allocation5 + $0xd98] sm:$0xff] }
 0x5cd   : > { %2472 = vmatprep.mubr.f32.mxu0 %v2289_v55  ;;  %2790 = vmatprep.subr.mxu0 %v2717_v8  ;;  %v2760_v55 = vld [vmem:[#allocation5 + $0x1420] sm:$0xff]  ;;  %v2753_v34 = vld [vmem:[#allocation5 + $0x1188] sm:$0xff]  ;;  %v2740_v4 = vld [vmem:[#allocation5 + $0xd90] sm:$0xff] }
 0x5ce   : > { %2473 = vmatmul.mubr.f32.gmra.mxu0 %v2288_v24  ;;  %v2759_v24 = vld [vmem:[#allocation5 + $0x1380] sm:$0xff]  ;;  %v2354_v47 = vld [vmem:[#allocation17] sm:$0x3] }
 0x5cf   : > { %2791 = vmatpush1.msra.mxu0 %v2716_v49  ;;  %v2743_v45 = vld [vmem:[#allocation5 + $0xe40] sm:$0xff]  ;;  %v2359_v58 = vrot.slane %v2354_v47, %v4875_v46  ;;  %v2363_v7 = vrot.slane %v2354_v47, %v4877_v48 }
 0x5d0   : > { %2792 = vmatprep.subr.mxu0 %v2715_v60 }
 0x5d1   : > { %2793 = vmatpush1.msra.mxu0 %v2714_v61 }
 0x5d2   : > { %2794 = vmatprep.subr.mxu0 %v2713_v10 }
 0x5d3   : > { %2795 = vmatpush1.msra.mxu0 %v2712_v50 }
 0x5d4   : > { %2796 = vmatprep.subr.mxu0 %v2711_v11 }
 0x5d5   : > { %2797 = vmatpush1.msra.mxu0 %v2710_v5 }
 0x5d6   : > { %2798 = vmatprep.subr.mxu0 %v2709_v18 }
 0x5d7   : > { %2799 = vmatpush1.msra.mxu0 %v2708_v51 }
 0x5d8   : > { %2800 = vmatprep.subr.mxu0 %v2707_v13 }
 0x5d9   : > { %2801 = vmatpush1.msra.mxu0 %v2706_v15 }
 0x5da   : > { %2802 = vmatprep.subr.mxu0 %v2705_v16 }
 0x5db   : > { %2803 = vmatpush1.msra.mxu0 %v2704_v52 }
 0x5dc   : > { %2804 = vmatprep.subr.mxu0 %v2703_v23 }
 0x5dd   : > { %2805 = vmatpush1.msra.mxu0 %v2702_v17 }
 0x5de   : > { %2806 = vmatprep.subr.mxu0 %v2701_v20 }
 0x5df   : > { %2807 = vmatpush1.msra.mxu0 %v2700_v54 }
 0x5e0   : > { %2808 = vmatprep.subr.mxu0 %v2763_v14 }
 0x5e1   : > { %2809 = vmatpush2.msra.mxu0 %v2762_v26 }
 0x5e2   : > { %2810 = vmatprep.subr.mxu0 %v2761_v21 }
 0x5e3   : > { %2811 = vmatpush2.msra.mxu0 %v2760_v55 }
 0x5e4   : > { %2812 = vmatprep.subr.mxu0 %v2759_v24 }
 0x5e5   : > { %2813 = vmatpush2.msra.mxu0 %v2758_v25 }
 0x5e6   : > { %2814 = vmatprep.subr.mxu0 %v2757_v56 }
 0x5e7   : > { %2815 = vmatpush2.msra.mxu0 %v2756_v19 }
 0x5e8   : > { %2816 = vmatprep.subr.mxu0 %v2755_v1 }
 0x5e9   : > { %2817 = vmatpush2.msra.mxu0 %v2754_v59 }
 0x5ea   : > { %2818 = vmatprep.subr.mxu0 %v2753_v34 }
 0x5eb   : > { %2819 = vmatpush2.msra.mxu0 %v2752_v62 }
 0x5ec   : > { %2820 = vmatprep.subr.mxu0 %v2751_v2 }
 0x5ed   : > { %2821 = vmatpush2.msra.mxu0 %v2750_v27 }
 0x5ee   : > { %2822 = vmatprep.subr.mxu0 %v2749_v39 }
 0x5ef   : > { %2823 = vmatpush2.msra.mxu0 %v2748_v42 }
 0x5f0   : > { %2824 = vmatprep.subr.mxu0 %v2747_v40 }
 0x5f1   : > { %2825 = vmatpush2.msra.mxu0 %v2746_v43 }
 0x5f2   : > { %2826 = vmatprep.subr.mxu0 %v2745_v44 }
 0x5f3   : > { %2827 = vmatpush2.msra.mxu0 %v2744_v57 }
 0x5f4   : > { %2828 = vmatprep.subr.mxu0 %v2743_v45 }
 0x5f5   : > { %2829 = vmatpush2.msra.mxu0 %v2742_v53 }
 0x5f6   : > { %2830 = vmatprep.subr.mxu0 %v2741_v3 }
 0x5f7   : > { %2831 = vmatpush2.msra.mxu0 %v2740_v4 }
 0x672   : > { %v2432_v8 = vpop.f32.mrf.mxu0 }
 0x673   : > { %v2433_v49 = vadd.f32 %v2432_v8, %v2359_v58 }
 0x674   : > { %v2434_v60 = vpop.f32.mrf.mxu0 }
 0x675   : > { %v2435_v61 = vadd.f32 %v2434_v60, %v2363_v7  ;;  %v2479_v11 = vmax.f32 %v2433_v49, 0.0 }
 0x676   : > { %v2438_v10 = vpop.f32.mrf.mxu0 }
 0x677   : > { %v2480_v50 = vmax.f32 %v2435_v61, 0.0  ;;  %v2439_v5 = vadd.f32 %v2438_v10, %v2359_v58 }
 0x678   : > { %v2440_v18 = vpop.f32.mrf.mxu0 }
 0x679   : > { %v2441_v51 = vadd.f32 %v2440_v18, %v2363_v7  ;;  %2635 = vmatprep.mubr.f32.mxu1 %v2480_v50  ;;  %v2481_v16 = vmax.f32 %v2439_v5, 0.0  ;;  %v2739_v50 = vld [vmem:[#allocation5 + $0xcf0] sm:$0xff]  ;;  %v2737_v5 = vld [vmem:[#allocation5 + $0xc48] sm:$0xff]  ;;  %v2736_v18 = vld [vmem:[#allocation5 + $0xc40] sm:$0xff] }
 0x67a   : > { %v2444_v13 = vpop.f32.mrf.mxu0  ;;  %2636 = vmatmul.mubr.f32.vlgmr.msra.gmra.mxu1 %v2479_v11  ;;  %2832 = vmatprep.subr.mxu0 %v2739_v50  ;;  %v2738_v11 = vld [vmem:[#allocation5 + $0xce8] sm:$0xff] }
 0x67b   : > { %v2482_v15 = vmax.f32 %v2441_v51, 0.0  ;;  %v2445_v52 = vadd.f32 %v2444_v13, %v2359_v58  ;;  %2833 = vmatpush2.msra.mxu0 %v2738_v11  ;;  %v2735_v51 = vld [vmem:[#allocation5 + $0xba0] sm:$0xff]  ;;  %v2734_v13 = vld [vmem:[#allocation5 + $0xb98] sm:$0xff]  ;;  %v3030_v50 = vld [vmem:[#allocation5 + $0x1388] sm:$0xff] }
 0x67c   : > { %v2446_v23 = vpop.f32.mrf.mxu0  ;;  %2834 = vmatprep.subr.mxu0 %v2737_v5  ;;  %v3029_v11 = vld [vmem:[#allocation5 + $0x12e8] sm:$0xff]  ;;  %v3028_v5 = vld [vmem:[#allocation5 + $0x12e0] sm:$0xff] }
 0x67d   : > { %v2447_v17 = vadd.f32 %v2446_v23, %v2363_v7  ;;  %2641 = vmatprep.mubr.f32.mxu1 %v2482_v15  ;;  %v2483_v14 = vmax.f32 %v2445_v52, 0.0  ;;  %2835 = vmatpush2.msra.mxu0 %v2736_v18  ;;  %v3003_v15 = vld [vmem:[#allocation5 + $0xa60] sm:$0xff]  ;;  %v3001_v52 = vld [vmem:[#allocation5 + $0x9b8] sm:$0xff]  ;;  %v3000_v23 = vld [vmem:[#allocation5 + $0x9b0] sm:$0xff] }
 0x67e   : > { %v2450_v20 = vpop.f32.mrf.mxu0  ;;  %2642 = vmatmul.mubr.f32.gmra.mxu1 %v2481_v16  ;;  %2836 = vmatprep.subr.mxu0 %v2735_v51  ;;  %v3002_v16 = vld [vmem:[#allocation5 + $0xa58] sm:$0xff]  ;;  %v3027_v18 = vld [vmem:[#allocation5 + $0x1240] sm:$0xff] }
 0x67f   : > { %v2484_v54 = vmax.f32 %v2447_v17, 0.0  ;;  %v2451_v26 = vadd.f32 %v2450_v20, %v2359_v58  ;;  %2837 = vmatpush2.msra.mxu0 %v2734_v13  ;;  %3048 = vmatprep.subr.mxu1 %v3003_v15  ;;  %v2999_v17 = vld [vmem:[#allocation5 + $0x910] sm:$0xff]  ;;  %v2998_v20 = vld [vmem:[#allocation5 + $0x908] sm:$0xff]  ;;  %v3026_v51 = vld [vmem:[#allocation5 + $0x1238] sm:$0xff] }
 0x680   : > { %v2452_v21 = vpop.f32.mrf.mxu0  ;;  %3049 = vmatpush1.msra.mxu1 %v3002_v16  ;;  %v3025_v13 = vld [vmem:[#allocation5 + $0x1198] sm:$0xff]  ;;  %v3022_v15 = vld [vmem:[#allocation5 + $0x10e8] sm:$0xff] }
 0x681   : > { %v2453_v55 = vadd.f32 %v2452_v21, %v2363_v7  ;;  %2647 = vmatprep.mubr.f32.mxu1 %v2484_v54  ;;  %v2485_v56 = vmax.f32 %v2451_v26, 0.0  ;;  %3050 = vmatprep.subr.mxu1 %v3001_v52  ;;  %v2997_v54 = vld [vmem:[#allocation5 + $0x868] sm:$0xff]  ;;  %v2995_v26 = vld [vmem:[#allocation5 + $0x7c0] sm:$0xff]  ;;  %v2994_v21 = vld [vmem:[#allocation5 + $0x7b8] sm:$0xff] }
 0x682   : > { %v2456_v24 = vpop.f32.mrf.mxu0  ;;  %2648 = vmatmul.mubr.f32.gmra.mxu1 %v2483_v14  ;;  %v2996_v14 = vld [vmem:[#allocation5 + $0x860] sm:$0xff]  ;;  %v3021_v16 = vld [vmem:[#allocation5 + $0x1048] sm:$0xff] }
 0x683   : > { %v2486_v25 = vmax.f32 %v2453_v55, 0.0  ;;  %v2457_v19 = vadd.f32 %v2456_v24, %v2359_v58  ;;  %3051 = vmatpush1.msra.mxu1 %v3000_v23  ;;  %v2993_v55 = vld [vmem:[#allocation5 + $0x718] sm:$0xff]  ;;  %v2992_v24 = vld [vmem:[#allocation5 + $0x710] sm:$0xff]  ;;  %v3020_v52 = vld [vmem:[#allocation5 + $0x1040] sm:$0xff] }
 0x684   : > { %v2458_v1 = vpop.f32.mrf.mxu0  ;;  %3052 = vmatprep.subr.mxu1 %v2999_v17  ;;  %v3019_v23 = vld [vmem:[#allocation5 + $0xfa0] sm:$0xff]  ;;  %v3018_v17 = vld [vmem:[#allocation5 + $0xf98] sm:$0xff] }
 0x685   : > { %v2459_v59 = vadd.f32 %v2458_v1, %v2363_v7  ;;  %2653 = vmatprep.mubr.f32.mxu1 %v2486_v25  ;;  %v2487_v2 = vmax.f32 %v2457_v19, 0.0  ;;  %3053 = vmatpush1.msra.mxu1 %v2998_v20  ;;  %v2991_v25 = vld [vmem:[#allocation5 + $0x670] sm:$0xff]  ;;  %v2989_v19 = vld [vmem:[#allocation5 + $0x5c8] sm:$0xff]  ;;  %v2988_v1 = vld [vmem:[#allocation5 + $0x5c0] sm:$0xff] }
 0x686   : > { %v2462_v34 = vpop.f32.mrf.mxu0  ;;  %2654 = vmatmul.mubr.f32.gmra.mxu1 %v2485_v56  ;;  %3054 = vmatprep.subr.mxu1 %v2997_v54  ;;  %v2990_v56 = vld [vmem:[#allocation5 + $0x668] sm:$0xff]  ;;  %v3017_v20 = vld [vmem:[#allocation5 + $0xef8] sm:$0xff]  ;;  %v3016_v54 = vld [vmem:[#allocation5 + $0xef0] sm:$0xff] }
 0x687   : > { %v2488_v62 = vmax.f32 %v2459_v59, 0.0  ;;  %v2463_v27 = vadd.f32 %v2462_v34, %v2359_v58  ;;  %3055 = vmatpush1.msra.mxu1 %v2996_v14  ;;  %v2987_v59 = vld [vmem:[#allocation5 + $0x520] sm:$0xff]  ;;  %v2986_v34 = vld [vmem:[#allocation5 + $0x518] sm:$0xff]  ;;  %v3015_v14 = vld [vmem:[#allocation5 + $0xe50] sm:$0xff] }
 0x688   : > { %v2464_v39 = vpop.f32.mrf.mxu0  ;;  %3056 = vmatprep.subr.mxu1 %v2995_v26  ;;  %v3014_v26 = vld [vmem:[#allocation5 + $0xe48] sm:$0xff] }
 0x689   : > { %v2465_v42 = vadd.f32 %v2464_v39, %v2363_v7  ;;  %2659 = vmatprep.mubr.f32.mxu1 %v2488_v62  ;;  %v2489_v44 = vmax.f32 %v2463_v27, 0.0  ;;  %3057 = vmatpush1.msra.mxu1 %v2994_v21  ;;  %v2985_v62 = vld [vmem:[#allocation5 + $0x478] sm:$0xff]  ;;  %v2983_v27 = vld [vmem:[#allocation5 + $0x3d0] sm:$0xff]  ;;  %v2982_v39 = vld [vmem:[#allocation5 + $0x3c8] sm:$0xff] }
 0x68a   : > { %v2468_v40 = vpop.f32.mrf.mxu0  ;;  %2660 = vmatmul.mubr.f32.gmra.mxu1 %v2487_v2  ;;  %3058 = vmatprep.subr.mxu1 %v2993_v55  ;;  %v2984_v2 = vld [vmem:[#allocation5 + $0x470] sm:$0xff]  ;;  %v3013_v21 = vld [vmem:[#allocation5 + $0xda8] sm:$0xff]  ;;  %v3012_v55 = vld [vmem:[#allocation5 + $0xda0] sm:$0xff] }
 0x68b   : > { %v2490_v43 = vmax.f32 %v2465_v42, 0.0  ;;  %v2469_v57 = vadd.f32 %v2468_v40, %v2359_v58  ;;  %3059 = vmatpush1.msra.mxu1 %v2992_v24  ;;  %v2981_v42 = vld [vmem:[#allocation5 + $0x328] sm:$0xff]  ;;  %v2980_v40 = vld [vmem:[#allocation5 + $0x320] sm:$0xff]  ;;  %v2559_v24 = vld [vmem:[#allocation19] sm:$0x3] }
 0x68c   : > { %v2470_v45 = vpop.f32.mrf.mxu0  ;;  %3060 = vmatprep.subr.mxu1 %v2991_v25  ;;  %v2564_v25 = vrot.slane %v2559_v24, %v4875_v46 }
 0x68d   : > { %v2471_v53 = vadd.f32 %v2470_v45, %v2363_v7  ;;  %2665 = vmatprep.mubr.f32.mxu1 %v2490_v43  ;;  %v2491_v47 = vmax.f32 %v2469_v57, 0.0  ;;  %3061 = vmatpush1.msra.mxu1 %v2990_v56  ;;  %v2979_v43 = vld [vmem:[#allocation5 + $0x280] sm:$0xff]  ;;  %v2977_v57 = vld [vmem:[#allocation5 + $0x1d8] sm:$0xff]  ;;  %v2976_v45 = vld [vmem:[#allocation5 + $0x1d0] sm:$0xff]  ;;  %v2568_v56 = vrot.slane %v2559_v24, %v4877_v48 }
 0x68e   : > { %v2474_v3 = vpop.f32.mrf.mxu0  ;;  %2666 = vmatmul.mubr.f32.gmra.mxu1 %v2489_v44  ;;  %3062 = vmatprep.subr.mxu1 %v2989_v19  ;;  %v2978_v44 = vld [vmem:[#allocation5 + $0x278] sm:$0xff] }
 0x68f   : > { %v2492_v4 = vmax.f32 %v2471_v53, 0.0  ;;  %v2475_v8 = vadd.f32 %v2474_v3, %v2359_v58  ;;  %v2733_v58 = vld [vmem:[#allocation5 + $0xaf8] sm:$0xff]  ;;  %3063 = vmatpush1.msra.mxu1 %v2988_v1  ;;  %v2975_v53 = vld [vmem:[#allocation5 + $0x130] sm:$0xff]  ;;  %v2974_v3 = vld [vmem:[#allocation5 + $0x128] sm:$0xff] }
 0x690   : > { %v2476_v49 = vpop.f32.mrf.mxu0  ;;  %2838 = vmatprep.subr.mxu0 %v2733_v58  ;;  %3064 = vmatprep.subr.mxu1 %v2987_v59  ;;  %v3024_v58 = vld [vmem:[#allocation5 + $0x1190] sm:$0xff] }
 0x691   : > { %v2477_v60 = vadd.f32 %v2476_v49, %v2363_v7  ;;  %2671 = vmatprep.mubr.f32.mxu1 %v2492_v4  ;;  %v2493_v10 = vmax.f32 %v2475_v8, 0.0  ;;  %v2732_v7 = vld [vmem:[#allocation5 + $0xaf0] sm:$0xff]  ;;  %3065 = vmatpush1.msra.mxu1 %v2986_v34  ;;  %v2973_v4 = vld [vmem:[#allocation5 + $0x88] sm:$0xff]  ;;  %v3035_v8 = vld [vmem:[#allocation5 + $0x14e0] sm:$0xff] }
 0x692   : > { %2672 = vmatmul.mubr.f32.gmra.mxu1 %v2491_v47  ;;  %2839 = vmatpush2.msra.mxu0 %v2732_v7  ;;  %v2972_v47 = vld [vmem:[#allocation5 + $0x80] sm:$0xff]  ;;  %v3034_v49 = vld [vmem:[#allocation5 + $0x14d8] sm:$0xff]  ;;  %v3023_v7 = vld [vmem:[#allocation5 + $0x10f0] sm:$0xff] }
 0x693   : > { %v2494_v61 = vmax.f32 %v2477_v60, 0.0  ;;  %3066 = vmatprep.subr.mxu1 %v2985_v62  ;;  %v3033_v60 = vld [vmem:[#allocation5 + $0x1438] sm:$0xff] }
 0x694   : > { %3067 = vmatpush1.msra.mxu1 %v2984_v2 }
 0x695   : > { %2677 = vmatprep.mubr.f32.mxu1 %v2494_v61  ;;  %3068 = vmatprep.subr.mxu1 %v2983_v27  ;;  %v3032_v61 = vld [vmem:[#allocation5 + $0x1430] sm:$0xff] }
 0x696   : > { %2678 = vmatmul.mubr.f32.gmra.mxu1 %v2493_v10  ;;  %v3031_v10 = vld [vmem:[#allocation5 + $0x1390] sm:$0xff] }
 0x697   : > { %3069 = vmatpush1.msra.mxu1 %v2982_v39 }
 0x698   : > { %3070 = vmatprep.subr.mxu1 %v2981_v42 }
 0x699   : > { %3071 = vmatpush1.msra.mxu1 %v2980_v40 }
 0x69a   : > { %3072 = vmatprep.subr.mxu1 %v2979_v43 }
 0x69b   : > { %3073 = vmatpush1.msra.mxu1 %v2978_v44 }
 0x69c   : > { %3074 = vmatprep.subr.mxu1 %v2977_v57 }
 0x69d   : > { %3075 = vmatpush1.msra.mxu1 %v2976_v45 }
 0x69e   : > { %3076 = vmatprep.subr.mxu1 %v2975_v53 }
 0x69f   : > { %3077 = vmatpush1.msra.mxu1 %v2974_v3 }
 0x6a0   : > { %3078 = vmatprep.subr.mxu1 %v2973_v4 }
 0x6a1   : > { %3079 = vmatpush1.msra.mxu1 %v2972_v47 }
 0x6a2   : > { %3080 = vmatprep.subr.mxu1 %v3035_v8 }
 0x6a3   : > { %3081 = vmatpush2.msra.mxu1 %v3034_v49 }
 0x6a4   : > { %3082 = vmatprep.subr.mxu1 %v3033_v60 }
 0x6a5   : > { %3083 = vmatpush2.msra.mxu1 %v3032_v61 }
 0x6a6   : > { %3084 = vmatprep.subr.mxu1 %v3031_v10 }
 0x6a7   : > { %3085 = vmatpush2.msra.mxu1 %v3030_v50 }
 0x6a8   : > { %3086 = vmatprep.subr.mxu1 %v3029_v11 }
 0x6a9   : > { %3087 = vmatpush2.msra.mxu1 %v3028_v5 }
 0x6aa   : > { %3088 = vmatprep.subr.mxu1 %v3027_v18 }
 0x6ab   : > { %3089 = vmatpush2.msra.mxu1 %v3026_v51 }
 0x6ac   : > { %3090 = vmatprep.subr.mxu1 %v3025_v13 }
 0x6ad   : > { %3091 = vmatpush2.msra.mxu1 %v3024_v58 }
 0x6ae   : > { %3092 = vmatprep.subr.mxu1 %v3023_v7 }
 0x6af   : > { %3093 = vmatpush2.msra.mxu1 %v3022_v15 }
 0x6b0   : > { %3094 = vmatprep.subr.mxu1 %v3021_v16 }
 0x6b1   : > { %3095 = vmatpush2.msra.mxu1 %v3020_v52 }
 0x6b2   : > { %3096 = vmatprep.subr.mxu1 %v3019_v23 }
 0x6b3   : > { %3097 = vmatpush2.msra.mxu1 %v3018_v17 }
 0x6b4   : > { %3098 = vmatprep.subr.mxu1 %v3017_v20 }
 0x6b5   : > { %3099 = vmatpush2.msra.mxu1 %v3016_v54 }
 0x6b6   : > { %3100 = vmatprep.subr.mxu1 %v3015_v14 }
 0x6b7   : > { %3101 = vmatpush2.msra.mxu1 %v3014_v26 }
 0x6b8   : > { %3102 = vmatprep.subr.mxu1 %v3013_v21 }
 0x6b9   : > { %3103 = vmatpush2.msra.mxu1 %v3012_v55 }
 0x73a   : > { %v2637_v19 = vpop.f32.mrf.mxu1 }
 0x73b   : > { %v2638_v1 = vadd.f32 %v2637_v19, %v2564_v25 }
 0x73c   : > { %v2639_v59 = vpop.f32.mrf.mxu1 }
 0x73d   : > { %v2640_v34 = vadd.f32 %v2639_v59, %v2568_v56  ;;  %v2684_v27 = vmax.f32 %v2638_v1, 0.0 }
 0x73e   : > { %v2643_v62 = vpop.f32.mrf.mxu1 }
 0x73f   : > { %v2685_v2 = vmax.f32 %v2640_v34, 0.0  ;;  %v2644_v39 = vadd.f32 %v2643_v62, %v2564_v25 }
 0x740   : > { %v2645_v42 = vpop.f32.mrf.mxu1 }
 0x741   : > { %v2646_v40 = vadd.f32 %v2645_v42, %v2568_v56  ;;  %2840 = vmatprep.mubr.f32.mxu0 %v2685_v2  ;;  %v2686_v57 = vmax.f32 %v2644_v39, 0.0  ;;  %v3011_v2 = vld [vmem:[#allocation5 + $0xd00] sm:$0xff]  ;;  %v3009_v39 = vld [vmem:[#allocation5 + $0xc58] sm:$0xff]  ;;  %v3008_v42 = vld [vmem:[#allocation5 + $0xc50] sm:$0xff] }
 0x742   : > { %v2649_v43 = vpop.f32.mrf.mxu1  ;;  %2841 = vmatmul.mubr.f32.vlgmr.msra.gmra.mxu0 %v2684_v27  ;;  %3104 = vmatprep.subr.mxu1 %v3011_v2  ;;  %v3010_v27 = vld [vmem:[#allocation5 + $0xcf8] sm:$0xff] }
 0x743   : > { %v2687_v44 = vmax.f32 %v2646_v40, 0.0  ;;  %v2650_v45 = vadd.f32 %v2649_v43, %v2564_v25  ;;  %3105 = vmatpush2.msra.mxu1 %v3010_v27  ;;  %v3007_v40 = vld [vmem:[#allocation5 + $0xbb0] sm:$0xff]  ;;  %v3006_v43 = vld [vmem:[#allocation5 + $0xba8] sm:$0xff] }
 0x744   : > { %v2651_v53 = vpop.f32.mrf.mxu1  ;;  %3106 = vmatprep.subr.mxu1 %v3009_v39 }
 0x745   : > { %v2652_v3 = vadd.f32 %v2651_v53, %v2568_v56  ;;  %2846 = vmatprep.mubr.f32.mxu0 %v2687_v44  ;;  %v2688_v8 = vmax.f32 %v2650_v45, 0.0  ;;  %3107 = vmatpush2.msra.mxu1 %v3008_v42  ;;  %v3192_v44 = vld [vmem:[#allocation5 + $0xa70] sm:$0xff]  ;;  %v3190_v45 = vld [vmem:[#allocation5 + $0x9c8] sm:$0xff]  ;;  %v3189_v53 = vld [vmem:[#allocation5 + $0x9c0] sm:$0xff] }
 0x746   : > { %v2655_v4 = vpop.f32.mrf.mxu1  ;;  %2847 = vmatmul.mubr.f32.gmra.mxu0 %v2686_v57  ;;  %3108 = vmatprep.subr.mxu1 %v3007_v40  ;;  %v3191_v57 = vld [vmem:[#allocation5 + $0xa68] sm:$0xff] }
 0x747   : > { %v2689_v47 = vmax.f32 %v2652_v3, 0.0  ;;  %v2656_v49 = vadd.f32 %v2655_v4, %v2564_v25  ;;  %3109 = vmatpush2.msra.mxu1 %v3006_v43  ;;  %3225 = vmatprep.subr.mxu0 %v3192_v44  ;;  %v3188_v3 = vld [vmem:[#allocation5 + $0x920] sm:$0xff]  ;;  %v3187_v4 = vld [vmem:[#allocation5 + $0x918] sm:$0xff] }
 0x748   : > { %v2657_v60 = vpop.f32.mrf.mxu1  ;;  %3226 = vmatpush1.msra.mxu0 %v3191_v57 }
 0x749   : > { %v2658_v61 = vadd.f32 %v2657_v60, %v2568_v56  ;;  %2852 = vmatprep.mubr.f32.mxu0 %v2689_v47  ;;  %v2690_v11 = vmax.f32 %v2656_v49, 0.0  ;;  %3227 = vmatprep.subr.mxu0 %v3190_v45  ;;  %v3186_v47 = vld [vmem:[#allocation5 + $0x878] sm:$0xff] }
 0x74a   : > { %v2661_v10 = vpop.f32.mrf.mxu1  ;;  %2853 = vmatmul.mubr.f32.gmra.mxu0 %v2688_v8  ;;  %v2764_v8 = vld [vmem:[#allocation20] sm:$0x3] }
 0x74b   : > { %v2691_v50 = vmax.f32 %v2658_v61, 0.0  ;;  %v2662_v5 = vadd.f32 %v2661_v10, %v2564_v25  ;;  %3228 = vmatpush1.msra.mxu0 %v3189_v53  ;;  %v4996_v49 = vrot.slane %v2764_v8, %v4875_v46  ;;  %v4999_v60 = vrot.slane %v2764_v8, %v4877_v48  ;;  %v2905_v10 = vld [vmem:[#allocation7] sm:$0x3] }
 0x74c   : > { %v2663_v18 = vpop.f32.mrf.mxu1  ;;  %3229 = vmatprep.subr.mxu0 %v3188_v3 }
 0x74d   : > { %v2664_v51 = vadd.f32 %v2663_v18, %v2568_v56  ;;  %2858 = vmatprep.mubr.f32.mxu0 %v2691_v50  ;;  %v2692_v7 = vmax.f32 %v2662_v5, 0.0  ;;  %3230 = vmatpush1.msra.mxu0 %v3187_v4 }
 0x74e   : > { %v2667_v13 = vpop.f32.mrf.mxu1  ;;  %2859 = vmatmul.mubr.f32.gmra.mxu0 %v2690_v11  ;;  %3231 = vmatprep.subr.mxu0 %v3186_v47 }
 0x74f   : > { %v2693_v58 = vmax.f32 %v2664_v51, 0.0  ;;  %v2668_v15 = vadd.f32 %v2667_v13, %v2564_v25  ;;  %v5004_v51 = vrot.slane %v2905_v10, %v4875_v46  ;;  %v5007_v13 = vrot.slane %v2905_v10, %v4877_v48  ;;  %v3185_v10 = vld [vmem:[#allocation5 + $0x870] sm:$0xff] }
 0x750   : > { %v2669_v16 = vpop.f32.mrf.mxu1  ;;  %3232 = vmatpush1.msra.mxu0 %v3185_v10 }
 0x751   : > { %v2670_v52 = vadd.f32 %v2669_v16, %v2568_v56  ;;  %2864 = vmatprep.mubr.f32.mxu0 %v2693_v58  ;;  %v2694_v20 = vmax.f32 %v2668_v15, 0.0 }
 0x752   : > { %v2673_v23 = vpop.f32.mrf.mxu1  ;;  %2865 = vmatmul.mubr.f32.gmra.mxu0 %v2692_v7 }
 0x753   : > { %v2695_v17 = vmax.f32 %v2670_v52, 0.0  ;;  %v2674_v54 = vadd.f32 %v2673_v23, %v2564_v25 }
 0x754   : > { %v2675_v14 = vpop.f32.mrf.mxu1 }
 0x755   : > { %v2676_v26 = vadd.f32 %v2675_v14, %v2568_v56  ;;  %2870 = vmatprep.mubr.f32.mxu0 %v2695_v17  ;;  %v2696_v24 = vmax.f32 %v2674_v54, 0.0 }
 0x756   : > { %v2679_v21 = vpop.f32.mrf.mxu1  ;;  %2871 = vmatmul.mubr.f32.gmra.mxu0 %v2694_v20 }
 0x757   : > { %v2697_v55 = vmax.f32 %v2676_v26, 0.0  ;;  %v2680_v19 = vadd.f32 %v2679_v21, %v2564_v25  ;;  %v3005_v25 = vld [vmem:[#allocation5 + $0xb08] sm:$0xff] }
 0x758   : > { %v2681_v1 = vpop.f32.mrf.mxu1  ;;  %3110 = vmatprep.subr.mxu1 %v3005_v25 }
 0x759   : > { %v2682_v59 = vadd.f32 %v2681_v1, %v2568_v56  ;;  %2876 = vmatprep.mubr.f32.mxu0 %v2697_v55  ;;  %v2698_v62 = vmax.f32 %v2680_v19, 0.0  ;;  %v3004_v56 = vld [vmem:[#allocation5 + $0xb00] sm:$0xff] }
 0x75a   : > { %2877 = vmatmul.mubr.f32.gmra.mxu0 %v2696_v24  ;;  %3111 = vmatpush2.msra.mxu1 %v3004_v56 }
 0x75b   : > { %v2699_v34 = vmax.f32 %v2682_v59, 0.0 }
 0x75d   : > { %2882 = vmatprep.mubr.f32.mxu0 %v2699_v34 }
 0x75e   : > { %2883 = vmatmul.mubr.f32.gmra.mxu0 %v2698_v62 }
 0x802   : > { %v2842_v61 = vpop.f32.mrf.mxu0 }
 0x803   : > { %v2843_v50 = vadd.f32 %v2842_v61, %v4996_v49 }
 0x804   : > { %v2844_v11 = vpop.f32.mrf.mxu0 }
 0x805   : > { %v2889_v5 = vmax.f32 %v2843_v50, 0.0  ;;  %v2845_v18 = vadd.f32 %v2844_v11, %v4999_v60 }
 0x806   : > { %v2848_v58 = vpop.f32.mrf.mxu0 }
 0x807   : > { %v2890_v7 = vmax.f32 %v2845_v18, 0.0  ;;  %v2849_v15 = vadd.f32 %v2848_v58, %v4996_v49  ;;  %v2917_v17 = vmul.f32 %v5004_v51, %v2889_v5  ;;  %v3184_v18 = vld [vmem:[#allocation5 + $0x7d0] sm:$0xff] }
 0x808   : > { %v2850_v16 = vpop.f32.mrf.mxu0  ;;  %3233 = vmatprep.subr.mxu0 %v3184_v18  ;;  %v3170_v18 = vld [vmem:[#allocation5 + $0x338] sm:$0xff] }
 0x809   : > { %v2891_v52 = vmax.f32 %v2849_v15, 0.0  ;;  %v2851_v23 = vadd.f32 %v2850_v16, %v4999_v60  ;;  %3112 = vmatprep.mubr.f32.mxu1 %v2890_v7  ;;  %v2918_v20 = vmul.f32 %v5007_v13, %v2890_v7  ;;  %v3183_v7 = vld [vmem:[#allocation5 + $0x7c8] sm:$0xff] }
 0x80a   : > { %v2854_v54 = vpop.f32.mrf.mxu0  ;;  %3113 = vmatmul.mubr.f32.vlgmr.msra.gmra.mxu1 %v2889_v5  ;;  %3234 = vmatpush1.msra.mxu0 %v3183_v7  ;;  %v3168_v7 = vld [vmem:[#allocation5 + $0x290] sm:$0xff] }
 0x80b   : > { %v2892_v14 = vmax.f32 %v2851_v23, 0.0  ;;  %v2855_v26 = vadd.f32 %v2854_v54, %v4996_v49  ;;  %v2933_v21 = vadd.f32 %v2918_v20, %v2917_v17  ;;  %v2919_v24 = vmul.f32 %v5004_v51, %v2891_v52  ;;  %v3182_v17 = vld [vmem:[#allocation5 + $0x728] sm:$0xff] }
 0x80c   : > { %v2856_v55 = vpop.f32.mrf.mxu0  ;;  %v4502_v54 = vmov 0   ;;  %3235 = vmatprep.subr.mxu0 %v3182_v17  ;;  %v3161_v17 = vld [vmem:[#allocation5 + $0x90] sm:$0xff] }
 0x80d   : > { %v2920_v19 = vmul.f32 %v5007_v13, %v2892_v14  ;;  %v2893_v1 = vmax.f32 %v2855_v26, 0.0  ;;  %v2857_v59 = vadd.f32 %v2856_v55, %v4999_v60  ;;  %2934 = vadd.xlane.f32.xlu0 %v2933_v21  ;;  %3118 = vmatprep.mubr.f32.mxu1 %v2892_v14  ;;  %v3181_v55 = vld [vmem:[#allocation5 + $0x720] sm:$0xff] }
 0x80e   : > { %v2860_v34 = vpop.f32.mrf.mxu0  ;;  %3119 = vmatmul.mubr.f32.gmra.mxu1 %v2891_v52  ;;  %4050 = vset.pattern.permute.xlu0 %v4502_v54 }
 0x80f   : > { %v2894_v62 = vmax.f32 %v2857_v59, 0.0  ;;  %v2861_v2 = vadd.f32 %v2860_v34, %v4996_v49  ;;  %v2936_v27 = vadd.f32 %v2920_v19, %v2919_v24  ;;  %v2921_v43 = vmul.f32 %v5004_v51, %v2893_v1  ;;  %4051 = vset.pattern.permute.xlu1 %v4502_v54  ;;  %v3180_v19 = vld [vmem:[#allocation5 + $0x680] sm:$0xff]  ;;  %3236 = vmatpush1.msra.mxu0 %v3181_v55  ;;  %v3223_v54 = vld [vmem:[#allocation5 + $0x14e8] sm:$0xff]  ;;  %v3219_v55 = vld [vmem:[#allocation5 + $0x1398] sm:$0xff] }
 0x810   : > { %v2862_v39 = vpop.f32.mrf.mxu0  ;;  %3237 = vmatprep.subr.mxu0 %v3180_v19  ;;  %v3217_v19 = vld [vmem:[#allocation5 + $0x12f0] sm:$0xff] }
 0x811   : > { %v2895_v42 = vmax.f32 %v2861_v2, 0.0  ;;  %v2863_v40 = vadd.f32 %v2862_v39, %v4999_v60  ;;  %2937 = vadd.xlane.f32.xlu0 %v2936_v27  ;;  %3124 = vmatprep.mubr.f32.mxu1 %v2894_v62  ;;  %v2922_v25 = vmul.f32 %v5007_v13, %v2894_v62  ;;  %v3179_v2 = vld [vmem:[#allocation5 + $0x678] sm:$0xff] }
 0x812   : > { %v2866_v56 = vpop.f32.mrf.mxu0  ;;  %3125 = vmatmul.mubr.f32.gmra.mxu1 %v2893_v1  ;;  %3238 = vmatpush1.msra.mxu0 %v3179_v2  ;;  %v3212_v2 = vld [vmem:[#allocation5 + $0x1100] sm:$0xff] }
 0x813   : > { %v2896_v44 = vmax.f32 %v2863_v40, 0.0  ;;  %v2867_v57 = vadd.f32 %v2866_v56, %v4996_v49  ;;  %v2939_v45 = vadd.f32 %v2922_v25, %v2921_v43  ;;  %v2923_v3 = vmul.f32 %v5004_v51, %v2895_v42  ;;  %v3178_v43 = vld [vmem:[#allocation5 + $0x5d8] sm:$0xff]  ;;  %v3177_v56 = vld [vmem:[#allocation5 + $0x5d0] sm:$0xff] }
 0x814   : > { %v2868_v53 = vpop.f32.mrf.mxu0  ;;  %3239 = vmatprep.subr.mxu0 %v3178_v43  ;;  %v3207_v43 = vld [vmem:[#allocation5 + $0xfa8] sm:$0xff] }
 0x815   : > { %v2924_v4 = vmul.f32 %v5007_v13, %v2896_v44  ;;  %v2897_v47 = vmax.f32 %v2867_v57, 0.0  ;;  %v2869_v8 = vadd.f32 %v2868_v53, %v4999_v60  ;;  %2940 = vadd.xlane.f32.xlu1 %v2939_v45  ;;  %3130 = vmatprep.mubr.f32.mxu1 %v2896_v44 }
 0x816   : > { %v2872_v61 = vpop.f32.mrf.mxu0  ;;  %3131 = vmatmul.mubr.f32.gmra.mxu1 %v2895_v42  ;;  %3240 = vmatpush1.msra.mxu0 %v3177_v56  ;;  %v3205_v56 = vld [vmem:[#allocation5 + $0xf00] sm:$0xff] }
 0x817   : > { %v2898_v50 = vmax.f32 %v2869_v8, 0.0  ;;  %v2873_v11 = vadd.f32 %v2872_v61, %v4996_v49  ;;  %v2942_v5 = vadd.f32 %v2924_v4, %v2923_v3  ;;  %v2925_v15 = vmul.f32 %v5004_v51, %v2897_v47  ;;  %v3176_v3 = vld [vmem:[#allocation5 + $0x530] sm:$0xff]  ;;  %v3174_v8 = vld [vmem:[#allocation5 + $0x488] sm:$0xff] }
 0x818   : > { %v2874_v58 = vpop.f32.mrf.mxu0  ;;  %3241 = vmatprep.subr.mxu0 %v3176_v3  ;;  %v3200_v3 = vld [vmem:[#allocation5 + $0xd10] sm:$0xff] }
 0x819   : > { %v2926_v16 = vmul.f32 %v5007_v13, %v2898_v50  ;;  %v2899_v52 = vmax.f32 %v2873_v11, 0.0  ;;  %v2875_v23 = vadd.f32 %v2874_v58, %v4999_v60  ;;  %2943 = vadd.xlane.f32.xlu1 %v2942_v5  ;;  %3136 = vmatprep.mubr.f32.mxu1 %v2898_v50  ;;  %v3173_v50 = vld [vmem:[#allocation5 + $0x480] sm:$0xff]  ;;  %v3171_v5 = vld [vmem:[#allocation5 + $0x3d8] sm:$0xff]  ;;  %v3169_v58 = vld [vmem:[#allocation5 + $0x330] sm:$0xff] }
 0x81a   : > { %v2878_v20 = vpop.f32.mrf.mxu0  ;;  %3137 = vmatmul.mubr.f32.gmra.mxu1 %v2897_v47  ;;  %v3175_v47 = vld [vmem:[#allocation5 + $0x528] sm:$0xff] }
 0x81b   : > { %v2900_v14 = vmax.f32 %v2875_v23, 0.0  ;;  %v2879_v26 = vadd.f32 %v2878_v20, %v4996_v49  ;;  %v2945_v21 = vadd.f32 %v2926_v16, %v2925_v15  ;;  %v2927_v1 = vmul.f32 %v5004_v51, %v2899_v52  ;;  %3242 = vmatpush1.msra.mxu0 %v3175_v47  ;;  %v3165_v15 = vld [vmem:[#allocation5 + $0x1e0] sm:$0xff]  ;;  %v3162_v23 = vld [vmem:[#allocation5 + $0x98] sm:$0xff]  ;;  %v3224_v20 = vld [vmem:[#allocation5 + $0x14f0] sm:$0xff] }
 0x81c   : > { %v2880_v24 = vpop.f32.mrf.mxu0  ;;  %3243 = vmatprep.subr.mxu0 %v3174_v8  ;;  %v3164_v16 = vld [vmem:[#allocation5 + $0x140] sm:$0xff] }
 0x81d   : > { %v2928_v59 = vmul.f32 %v5007_v13, %v2900_v14  ;;  %v2901_v34 = vmax.f32 %v2879_v26, 0.0  ;;  %v2881_v62 = vadd.f32 %v2880_v24, %v4999_v60  ;;  %2946 = vadd.xlane.f32.xlu0 %v2945_v21  ;;  %3142 = vmatprep.mubr.f32.mxu1 %v2900_v14  ;;  %v3222_v14 = vld [vmem:[#allocation5 + $0x1448] sm:$0xff]  ;;  %v3221_v26 = vld [vmem:[#allocation5 + $0x1440] sm:$0xff]  ;;  %v3218_v24 = vld [vmem:[#allocation5 + $0x12f8] sm:$0xff] }
 0x81e   : > { %v2884_v27 = vpop.f32.mrf.mxu0  ;;  %3143 = vmatmul.mubr.f32.gmra.mxu1 %v2899_v52  ;;  %3244 = vmatpush1.msra.mxu0 %v3173_v50  ;;  %v3163_v52 = vld [vmem:[#allocation5 + $0x138] sm:$0xff]  ;;  %v3220_v21 = vld [vmem:[#allocation5 + $0x13a0] sm:$0xff]  ;;  %v3193_v50 = vld [vmem:[#allocation5 + $0xb10] sm:$0xff] }
 0x81f   : > { %v2902_v39 = vmax.f32 %v2881_v62, 0.0  ;;  %v2885_v42 = vadd.f32 %v2884_v27, %v4996_v49  ;;  %v2948_v40 = vadd.f32 %v2928_v59, %v2927_v1  ;;  %v2929_v44 = vmul.f32 %v5004_v51, %v2901_v34  ;;  %v3216_v1 = vld [vmem:[#allocation5 + $0x1250] sm:$0xff]  ;;  %v3215_v59 = vld [vmem:[#allocation5 + $0x1248] sm:$0xff]  ;;  %v3213_v62 = vld [vmem:[#allocation5 + $0x11a0] sm:$0xff] }
 0x820   : > { %v2886_v25 = vpop.f32.mrf.mxu0  ;;  %v3211_v27 = vld [vmem:[#allocation5 + $0x10f8] sm:$0xff]  ;;  %v3197_v47 = vld [vmem:[#allocation5 + $0xc60] sm:$0xff] }
 0x821   : > { %v2930_v57 = vmul.f32 %v5007_v13, %v2902_v39  ;;  %v2903_v45 = vmax.f32 %v2885_v42, 0.0  ;;  %v2887_v53 = vadd.f32 %v2886_v25, %v4999_v60  ;;  %2949 = vadd.xlane.f32.xlu1 %v2948_v40  ;;  %3148 = vmatprep.mubr.f32.mxu1 %v2902_v39  ;;  %v3172_v60 = vld [vmem:[#allocation5 + $0x3e0] sm:$0xff]  ;;  %v3210_v39 = vld [vmem:[#allocation5 + $0x1058] sm:$0xff]  ;;  %v3209_v42 = vld [vmem:[#allocation5 + $0x1050] sm:$0xff] }
 0x822   : > { %3149 = vmatmul.mubr.f32.gmra.mxu1 %v2901_v34  ;;  %3245 = vmatprep.subr.mxu0 %v3172_v60  ;;  %v3214_v34 = vld [vmem:[#allocation5 + $0x11a8] sm:$0xff]  ;;  %v3208_v40 = vld [vmem:[#allocation5 + $0xfb0] sm:$0xff]  ;;  %v3196_v8 = vld [vmem:[#allocation5 + $0xbc0] sm:$0xff] }
 0x823   : > { %v2904_v4 = vmax.f32 %v2887_v53, 0.0  ;;  %v2951_v49 = vadd.f32 %v2930_v57, %v2929_v44  ;;  %v2931_v61 = vmul.f32 %v5004_v51, %v2903_v45  ;;  %3246 = vmatpush1.msra.mxu0 %v3171_v5  ;;  %v3167_v51 = vld [vmem:[#allocation5 + $0x288] sm:$0xff]  ;;  %v3204_v44 = vld [vmem:[#allocation5 + $0xe60] sm:$0xff]  ;;  %v3203_v57 = vld [vmem:[#allocation5 + $0xe58] sm:$0xff] }
 0x824   : > { %3247 = vmatprep.subr.mxu0 %v3170_v18  ;;  %v3206_v25 = vld [vmem:[#allocation5 + $0xf08] sm:$0xff]  ;;  %v3201_v53 = vld [vmem:[#allocation5 + $0xdb0] sm:$0xff]  ;;  %v3825_v60 = vld [vmem:[#allocation2] ss:$0 sm:$0xff] }
 0x825   : > { %v2932_v10 = vmul.f32 %v5007_v13, %v2904_v4  ;;  %2952 = vadd.xlane.f32.xlu0 %v2951_v49  ;;  %3154 = vmatprep.mubr.f32.mxu1 %v2904_v4  ;;  %v3166_v13 = vld [vmem:[#allocation5 + $0x1e8] sm:$0xff] }
 0x826   : > { %3155 = vmatmul.mubr.f32.gmra.mxu1 %v2903_v45  ;;  %3248 = vmatpush1.msra.mxu0 %v3169_v58  ;;  %v3202_v45 = vld [vmem:[#allocation5 + $0xdb8] sm:$0xff]  ;;  %v3199_v4 = vld [vmem:[#allocation5 + $0xd08] sm:$0xff] }
 0x827   : > { %v2954_v11 = vadd.f32 %v2932_v10, %v2931_v61  ;;  %3249 = vmatprep.subr.mxu0 %v3168_v7  ;;  %v3198_v49 = vld [vmem:[#allocation5 + $0xc68] sm:$0xff]  ;;  %v3195_v61 = vld [vmem:[#allocation5 + $0xbb8] sm:$0xff] }
 0x828   : > { %3250 = vmatpush1.msra.mxu0 %v3167_v51  ;;  %v3194_v10 = vld [vmem:[#allocation5 + $0xb18] sm:$0xff] }
 0x829   : > { %2955 = vadd.xlane.f32.xlu1 %v2954_v11  ;;  %3251 = vmatprep.subr.mxu0 %v3166_v13 }
 0x82a   : > { %3252 = vmatpush1.msra.mxu0 %v3165_v15 }
 0x82b   : > { %3253 = vmatprep.subr.mxu0 %v3164_v16 }
 0x82c   : > { %3254 = vmatpush1.msra.mxu0 %v3163_v52 }
 0x82d   : > { %3255 = vmatprep.subr.mxu0 %v3162_v23 }
 0x82e   : > { %3256 = vmatpush1.msra.mxu0 %v3161_v17 }
 0x82f   : > { %3257 = vmatprep.subr.mxu0 %v3224_v20 }
 0x830   : > { %3258 = vmatpush2.msra.mxu0 %v3223_v54 }
 0x831   : > { %3259 = vmatprep.subr.mxu0 %v3222_v14  ;;  %v3413_v14 = vld [vmem:[#allocation5 + $0x14f8] sm:$0xff] }
 0x832   : > { %3260 = vmatpush2.msra.mxu0 %v3221_v26  ;;  %v3397_v26 = vld [vmem:[#allocation5 + $0xa78] sm:$0xff]  ;;  %3829 = vmatprep.subr.mxu1 %v3413_v14 }
 0x833   : > { %3261 = vmatprep.subr.mxu0 %v3220_v21  ;;  %v3412_v21 = vld [vmem:[#allocation5 + $0x1450] sm:$0xff]  ;;  %3830 = vmatpush3.msra.mxu1 %v3397_v26 }
 0x834   : > { %3262 = vmatpush2.msra.mxu0 %v3219_v55  ;;  %v3396_v55 = vld [vmem:[#allocation5 + $0x9d0] sm:$0xff]  ;;  %3831 = vmatprep.subr.mxu1 %v3412_v21 }
 0x835   : > { %3263 = vmatprep.subr.mxu0 %v3218_v24  ;;  %3832 = vmatpush3.msra.mxu1 %v3396_v55 }
 0x836   : > { %3264 = vmatpush2.msra.mxu0 %v3217_v19  ;;  %v3411_v19 = vld [vmem:[#allocation5 + $0x13a8] sm:$0xff] }
 0x837   : > { %3265 = vmatprep.subr.mxu0 %v3216_v1  ;;  %3833 = vmatprep.subr.mxu1 %v3411_v19 }
 0x838   : > { %3266 = vmatpush2.msra.mxu0 %v3215_v59  ;;  %v3395_v59 = vld [vmem:[#allocation5 + $0x928] sm:$0xff] }
 0x839   : > { %3267 = vmatprep.subr.mxu0 %v3214_v34  ;;  %v3410_v34 = vld [vmem:[#allocation5 + $0x1300] sm:$0xff]  ;;  %3834 = vmatpush3.msra.mxu1 %v3395_v59 }
 0x83a   : > { %3268 = vmatpush2.msra.mxu0 %v3213_v62  ;;  %v3394_v62 = vld [vmem:[#allocation5 + $0x880] sm:$0xff]  ;;  %3835 = vmatprep.subr.mxu1 %v3410_v34 }
 0x83b   : > { %3269 = vmatprep.subr.mxu0 %v3212_v2  ;;  %v3409_v2 = vld [vmem:[#allocation5 + $0x1258] sm:$0xff]  ;;  %3836 = vmatpush3.msra.mxu1 %v3394_v62 }
 0x83c   : > { %3270 = vmatpush2.msra.mxu0 %v3211_v27  ;;  %v3393_v27 = vld [vmem:[#allocation5 + $0x7d8] sm:$0xff]  ;;  %3837 = vmatprep.subr.mxu1 %v3409_v2 }
 0x83d   : > { %3271 = vmatprep.subr.mxu0 %v3210_v39  ;;  %v3408_v39 = vld [vmem:[#allocation5 + $0x11b0] sm:$0xff]  ;;  %3838 = vmatpush3.msra.mxu1 %v3393_v27 }
 0x83e   : > { %3272 = vmatpush2.msra.mxu0 %v3209_v42  ;;  %v3392_v42 = vld [vmem:[#allocation5 + $0x730] sm:$0xff]  ;;  %3839 = vmatprep.subr.mxu1 %v3408_v39 }
 0x83f   : > { %3273 = vmatprep.subr.mxu0 %v3208_v40  ;;  %v3407_v40 = vld [vmem:[#allocation5 + $0x1108] sm:$0xff]  ;;  %3840 = vmatpush3.msra.mxu1 %v3392_v42 }
 0x840   : > { %3274 = vmatpush2.msra.mxu0 %v3207_v43  ;;  %v3391_v43 = vld [vmem:[#allocation5 + $0x688] sm:$0xff]  ;;  %3841 = vmatprep.subr.mxu1 %v3407_v40 }
 0x841   : > { %3275 = vmatprep.subr.mxu0 %v3206_v25  ;;  %v3406_v25 = vld [vmem:[#allocation5 + $0x1060] sm:$0xff]  ;;  %3842 = vmatpush3.msra.mxu1 %v3391_v43 }
 0x842   : > { %3276 = vmatpush2.msra.mxu0 %v3205_v56  ;;  %v3390_v56 = vld [vmem:[#allocation5 + $0x5e0] sm:$0xff]  ;;  %3843 = vmatprep.subr.mxu1 %v3406_v25  ;;  %v3401_v25 = vld [vmem:[#allocation5 + $0xd18] sm:$0xff] }
 0x843   : > { %3277 = vmatprep.subr.mxu0 %v3204_v44  ;;  %v3405_v44 = vld [vmem:[#allocation5 + $0xfb8] sm:$0xff]  ;;  %3844 = vmatpush3.msra.mxu1 %v3390_v56  ;;  %v3386_v43 = vld [vmem:[#allocation5 + $0x340] sm:$0xff] }
 0x844   : > { %3278 = vmatpush2.msra.mxu0 %v3203_v57  ;;  %v3389_v57 = vld [vmem:[#allocation5 + $0x538] sm:$0xff]  ;;  %3845 = vmatprep.subr.mxu1 %v3405_v44  ;;  %v3400_v44 = vld [vmem:[#allocation5 + $0xc70] sm:$0xff] }
 0x845   : > { %3279 = vmatprep.subr.mxu0 %v3202_v45  ;;  %v3404_v45 = vld [vmem:[#allocation5 + $0xf10] sm:$0xff]  ;;  %3846 = vmatpush3.msra.mxu1 %v3389_v57  ;;  %v3385_v56 = vld [vmem:[#allocation5 + $0x298] sm:$0xff] }
 0x846   : > { %3280 = vmatpush2.msra.mxu0 %v3201_v53  ;;  %v3388_v53 = vld [vmem:[#allocation5 + $0x490] sm:$0xff]  ;;  %3847 = vmatprep.subr.mxu1 %v3404_v45  ;;  %v3399_v45 = vld [vmem:[#allocation5 + $0xbc8] sm:$0xff] }
 0x847   : > { %3281 = vmatprep.subr.mxu0 %v3200_v3  ;;  %v3403_v3 = vld [vmem:[#allocation5 + $0xe68] sm:$0xff]  ;;  %3848 = vmatpush3.msra.mxu1 %v3388_v53  ;;  %v3384_v57 = vld [vmem:[#allocation5 + $0x1f0] sm:$0xff] }
 0x848   : > { %3282 = vmatpush2.msra.mxu0 %v3199_v4  ;;  %v3387_v4 = vld [vmem:[#allocation5 + $0x3e8] sm:$0xff]  ;;  %3849 = vmatprep.subr.mxu1 %v3403_v3  ;;  %v3398_v3 = vld [vmem:[#allocation5 + $0xb20] sm:$0xff] }
 0x849   : > { %3283 = vmatprep.subr.mxu0 %v3198_v49  ;;  %v3402_v49 = vld [vmem:[#allocation5 + $0xdc0] sm:$0xff]  ;;  %3850 = vmatpush3.msra.mxu1 %v3387_v4  ;;  %v3383_v53 = vld [vmem:[#allocation5 + $0x148] sm:$0xff] }
 0x84a   : > { %3284 = vmatpush2.msra.mxu0 %v3197_v47  ;;  %v3036_v47 = vld [vmem:[#allocation22] sm:$0x3]  ;;  %3851 = vmatprep.subr.mxu1 %v3402_v49  ;;  %v3382_v4 = vld [vmem:[#allocation5 + $0xa0] sm:$0xff]  ;;  %v3338_v49 = vld [vmem:[#allocation23] sm:$0x3] }
 0x84b   : > { %3285 = vmatprep.subr.mxu0 %v3196_v8  ;;  %v3045_v8 = vrot.slane %v3036_v47, %v4877_v48  ;;  %3852 = vmatpush3.msra.mxu1 %v3386_v43 }
 0x84c   : > { %3286 = vmatpush2.msra.mxu0 %v3195_v61  ;;  %v3041_v61 = vrot.slane %v3036_v47, %v4875_v46  ;;  %3853 = vmatprep.subr.mxu1 %v3401_v25 }
 0x84d   : > { %3287 = vmatprep.subr.mxu0 %v3194_v10  ;;  %3854 = vmatpush3.msra.mxu1 %v3385_v56 }
 0x84e   : > { %3288 = vmatpush2.msra.mxu0 %v3193_v50  ;;  %3855 = vmatprep.subr.mxu1 %v3400_v44 }
 0x84f   : > { %3856 = vmatpush3.msra.mxu1 %v3384_v57 }
 0x850   : > { %3857 = vmatprep.subr.mxu1 %v3399_v45 }
 0x851   : > { %3858 = vmatpush3.msra.mxu1 %v3383_v53 }
 0x852   : > { %3859 = vmatprep.subr.mxu1 %v3398_v3 }
 0x853   : > { %3860 = vmatpush3.msra.mxu1 %v3382_v4 }
 0x896   : > { %v2935_v11 = vpop.xlane.xlu0 %2934 }
 0x897   : > { %v2964_v5 = vadd.f32 %v3825_v60, %v2935_v11 }
 0x899   : > { %3531 = vperm.xlu0 %4050, %v2964_v5  }
 0x89a   : > { %v2938_v18 = vpop.xlane.xlu0 %2937 }
 0x89b   : > { %v2965_v58 = vadd.f32 %v3825_v60, %v2938_v18 }
 0x89d   : > { %3536 = vperm.xlu1 %4051, %v2965_v58  }
 0x89e   : > { %v2941_v7 = vpop.xlane.xlu1 %2940 }
 0x89f   : > { %v2966_v51 = vadd.f32 %v3825_v60, %v2941_v7 }
 0x8a1   : > { %3541 = vperm.xlu1 %4051, %v2966_v51  }
 0x8a2   : > { %v2944_v13 = vpop.xlane.xlu1 %2943 }
 0x8a3   : > { %v2967_v15 = vadd.f32 %v3825_v60, %v2944_v13 }
 0x8a5   : > { %3546 = vperm.xlu1 %4051, %v2967_v15  }
 0x8a6   : > { %v2947_v16 = vpop.xlane.xlu0 %2946 }
 0x8a7   : > { %v2968_v52 = vadd.f32 %v3825_v60, %v2947_v16 }
 0x8a9   : > { %3551 = vperm.xlu1 %4051, %v2968_v52  }
 0x8aa   : > { %v2950_v23 = vpop.xlane.xlu1 %2949 }
 0x8ab   : > { %v2969_v17 = vadd.f32 %v3825_v60, %v2950_v23 }
 0x8ad   : > { %3556 = vperm.xlu1 %4051, %v2969_v17  }
 0x8ae   : > { %v2953_v20 = vpop.xlane.xlu0 %2952 }
 0x8af   : > { %v2970_v54 = vadd.f32 %v3825_v60, %v2953_v20 }
 0x8b1   : > { %3561 = vperm.xlu1 %4051, %v2970_v54  }
 0x8b2   : > { %v2956_v24 = vpop.xlane.xlu1 %2955 }
 0x8b3   : > { %v2971_v1 = vadd.f32 %v3825_v60, %v2956_v24 }
 0x8b5   : > { %3566 = vperm.xlu1 %4051, %v2971_v1  }
 0x8ca   : > { %v3114_v10 = vpop.f32.mrf.mxu1 }
 0x8cb   : > { %v3115_v11 = vadd.f32 %v3114_v10, %v3041_v61  ;;  %v5046_v10 = vrot.slane %v3338_v49, %v4877_v48 }
 0x8cc   : > { %v3116_v50 = vpop.f32.mrf.mxu1 }
 0x8cd   : > { %v3117_v60 = vadd.f32 %v3116_v50, %v3045_v8 }
 0x8ce   : > { %v3120_v5 = vpop.f32.mrf.mxu1 }
 0x8cf   : > { %3289 = vmatprep.mubr.f32.mxu0 %v3117_v60  ;;  %v3121_v7 = vadd.f32 %v3120_v5, %v3041_v61 }
 0x8d0   : > { %v3122_v18 = vpop.f32.mrf.mxu1  ;;  %3290 = vmatmul.mubr.f32.vlgmr.msra.gmra.mxu0 %v3115_v11 }
 0x8d1   : > { %v3123_v58 = vadd.f32 %v3122_v18, %v3045_v8 }
 0x8d2   : > { %v3126_v51 = vpop.f32.mrf.mxu1 }
 0x8d3   : > { %3295 = vmatprep.mubr.f32.mxu0 %v3123_v58  ;;  %v3127_v16 = vadd.f32 %v3126_v51, %v3041_v61 }
 0x8d4   : > { %v3128_v13 = vpop.f32.mrf.mxu1  ;;  %3296 = vmatmul.mubr.f32.gmra.mxu0 %v3121_v7 }
 0x8d5   : > { %v3129_v15 = vadd.f32 %v3128_v13, %v3045_v8 }
 0x8d6   : > { %v3132_v52 = vpop.f32.mrf.mxu1 }
 0x8d7   : > { %3301 = vmatprep.mubr.f32.mxu0 %v3129_v15  ;;  %v3133_v20 = vadd.f32 %v3132_v52, %v3041_v61 }
 0x8d8   : > { %v3134_v23 = vpop.f32.mrf.mxu1  ;;  %3302 = vmatmul.mubr.f32.gmra.mxu0 %v3127_v16 }
 0x8d9   : > { %v3135_v17 = vadd.f32 %v3134_v23, %v3045_v8 }
 0x8da   : > { %v3138_v54 = vpop.f32.mrf.mxu1 }
 0x8db   : > { %3307 = vmatprep.mubr.f32.mxu0 %v3135_v17  ;;  %v3139_v21 = vadd.f32 %v3138_v54, %v3041_v61 }
 0x8dc   : > { %v3140_v14 = vpop.f32.mrf.mxu1  ;;  %3308 = vmatmul.mubr.f32.gmra.mxu0 %v3133_v20 }
 0x8dd   : > { %v3141_v26 = vadd.f32 %v3140_v14, %v3045_v8 }
 0x8de   : > { %v3144_v55 = vpop.f32.mrf.mxu1 }
 0x8df   : > { %3313 = vmatprep.mubr.f32.mxu0 %v3141_v26  ;;  %v3145_v1 = vadd.f32 %v3144_v55, %v3041_v61 }
 0x8e0   : > { %v3146_v24 = vpop.f32.mrf.mxu1  ;;  %3314 = vmatmul.mubr.f32.gmra.mxu0 %v3139_v21 }
 0x8e1   : > { %v3147_v19 = vadd.f32 %v3146_v24, %v3045_v8 }
 0x8e2   : > { %v3150_v59 = vpop.f32.mrf.mxu1 }
 0x8e3   : > { %3319 = vmatprep.mubr.f32.mxu0 %v3147_v19  ;;  %v3151_v2 = vadd.f32 %v3150_v59, %v3041_v61 }
 0x8e4   : > { %v3152_v34 = vpop.f32.mrf.mxu1  ;;  %3320 = vmatmul.mubr.f32.gmra.mxu0 %v3145_v1 }
 0x8e5   : > { %v3153_v62 = vadd.f32 %v3152_v34, %v3045_v8 }
 0x8e6   : > { %v3156_v27 = vpop.f32.mrf.mxu1 }
 0x8e7   : > { %3325 = vmatprep.mubr.f32.mxu0 %v3153_v62  ;;  %v3157_v40 = vadd.f32 %v3156_v27, %v3041_v61 }
 0x8e8   : > { %v3158_v39 = vpop.f32.mrf.mxu1  ;;  %3326 = vmatmul.mubr.f32.gmra.mxu0 %v3151_v2 }
 0x8e9   : > { %v3159_v42 = vadd.f32 %v3158_v39, %v3045_v8  ;;  %v5042_v8 = vrot.slane %v3338_v49, %v4875_v46 }
 0x8eb   : > { %3331 = vmatprep.mubr.f32.mxu0 %v3159_v42 }
 0x8ec   : > { %3332 = vmatmul.mubr.f32.gmra.mxu0 %v3157_v40 }
 0x990   : > { %v3291_v47 = vpop.f32.mrf.mxu0 }
 0x991   : > { %v3292_v61 = vadd.f32 %v3291_v47, %v4915_v0 }
 0x992   : > { %v3293_v50 = vpop.f32.mrf.mxu0 }
 0x993   : > { %v3294_v60 = vadd.f32 %v3293_v50, %v4917_v6  ;;  %v3350_v11 = vadd.f32 %v5042_v8, %v3292_v61 }
 0x994   : > { %v3297_v5 = vpop.f32.mrf.mxu0 }
 0x995   : > { %v3351_v18 = vadd.f32 %v5046_v10, %v3294_v60  ;;  %v3298_v58 = vadd.f32 %v3297_v5, %v4919_v63  ;;  %v3366_v13 = vmax.f32 %v3350_v11, 0.0  ;;  %v3537_v5 = vpop.permute.xlu1 %3536 }
 0x996   : > { %v3299_v7 = vpop.f32.mrf.mxu0 }
 0x997   : > { %v3367_v51 = vmax.f32 %v3351_v18, 0.0  ;;  %v3300_v46 = vadd.f32 %v3299_v7, %v4921_v12  ;;  %v3352_v0 = vadd.f32 %v5042_v8, %v3298_v58  ;;  %v3527_v18 = vand.u32 127, %v1191_v36  ;;  %v3826_v58 = vld [vmem:[#allocation25] ss:$0 sm:$0xff] }
 0x998   : > { %v3303_v15 = vpop.f32.mrf.mxu0 }
 0x999   : > { %v3353_v48 = vadd.f32 %v5046_v10, %v3300_v46  ;;  %v3304_v16 = vadd.f32 %v3303_v15, %v4923_v9  ;;  %3485 = vmatprep.mubr.f32.mxu1 %v3367_v51  ;;  %v3368_v17 = vmax.f32 %v3352_v0, 0.0  ;;  %vm3528_vm0 = vcmp.eq.s32.totalorder %v3527_v18, 3 }
 0x99a   : > { %v3305_v6 = vpop.f32.mrf.mxu0  ;;  %3486 = vmatmul.mubr.f32.vlgmr.msra.gmra.mxu1 %v3366_v13 }
 0x99b   : > { %v3369_v52 = vmax.f32 %v3353_v48, 0.0  ;;  %v3306_v23 = vadd.f32 %v3305_v6, %v4925_v22  ;;  %v3354_v63 = vadd.f32 %v5042_v8, %v3304_v16 }
 0x99c   : > { %v3309_v20 = vpop.f32.mrf.mxu0 }
 0x99d   : > { %v3355_v12 = vadd.f32 %v5046_v10, %v3306_v23  ;;  %v3310_v54 = vadd.f32 %v3309_v20, %v4927_v28  ;;  %3490 = vmatprep.mubr.f32.mxu1 %v3369_v52  ;;  %v3370_v21 = vmax.f32 %v3354_v63, 0.0 }
 0x99e   : > { %v3311_v14 = vpop.f32.mrf.mxu0  ;;  %3491 = vmatmul.mubr.f32.gmra.mxu1 %v3368_v17 }
 0x99f   : > { %v3371_v26 = vmax.f32 %v3355_v12, 0.0  ;;  %v3312_v9 = vadd.f32 %v3311_v14, %v4929_v29  ;;  %v3356_v55 = vadd.f32 %v5042_v8, %v3310_v54 }
 0x9a0   : > { %v3315_v24 = vpop.f32.mrf.mxu0 }
 0x9a1   : > { %v3357_v22 = vadd.f32 %v5046_v10, %v3312_v9  ;;  %v3316_v19 = vadd.f32 %v3315_v24, %v4931_v30  ;;  %3495 = vmatprep.mubr.f32.mxu1 %v3371_v26  ;;  %v3372_v34 = vmax.f32 %v3356_v55, 0.0 }
 0x9a2   : > { %v3317_v1 = vpop.f32.mrf.mxu0  ;;  %3496 = vmatmul.mubr.f32.gmra.mxu1 %v3370_v21 }
 0x9a3   : > { %v3373_v59 = vmax.f32 %v3357_v22, 0.0  ;;  %v3318_v28 = vadd.f32 %v3317_v1, %v4933_v31  ;;  %v3358_v62 = vadd.f32 %v5042_v8, %v3316_v19 }
 0x9a4   : > { %v3321_v2 = vpop.f32.mrf.mxu0 }
 0x9a5   : > { %v3359_v29 = vadd.f32 %v5046_v10, %v3318_v28  ;;  %v3322_v27 = vadd.f32 %v3321_v2, %v4935_v32  ;;  %3500 = vmatprep.mubr.f32.mxu1 %v3373_v59  ;;  %v3374_v40 = vmax.f32 %v3358_v62, 0.0 }
 0x9a6   : > { %v3323_v39 = vpop.f32.mrf.mxu0  ;;  %3501 = vmatmul.mubr.f32.gmra.mxu1 %v3372_v34 }
 0x9a7   : > { %v3375_v42 = vmax.f32 %v3359_v29, 0.0  ;;  %v3324_v30 = vadd.f32 %v3323_v39, %v4937_v33  ;;  %v3360_v43 = vadd.f32 %v5042_v8, %v3322_v27 }
 0x9a8   : > { %v3327_v25 = vpop.f32.mrf.mxu0 }
 0x9a9   : > { %v3361_v31 = vadd.f32 %v5046_v10, %v3324_v30  ;;  %v3328_v56 = vadd.f32 %v3327_v25, %v4939_v35  ;;  %3505 = vmatprep.mubr.f32.mxu1 %v3375_v42  ;;  %v3376_v45 = vmax.f32 %v3360_v43, 0.0 }
 0x9aa   : > { %v3329_v44 = vpop.f32.mrf.mxu0  ;;  %3506 = vmatmul.mubr.f32.gmra.mxu1 %v3374_v40 }
 0x9ab   : > { %v3377_v57 = vmax.f32 %v3361_v31, 0.0  ;;  %v3330_v32 = vadd.f32 %v3329_v44, %v4941_v37  ;;  %v3362_v53 = vadd.f32 %v5042_v8, %v3328_v56 }
 0x9ac   : > { %v3333_v3 = vpop.f32.mrf.mxu0 }
 0x9ad   : > { %v3363_v33 = vadd.f32 %v5046_v10, %v3330_v32  ;;  %v3334_v4 = vadd.f32 %v3333_v3, %v4943_v38  ;;  %3510 = vmatprep.mubr.f32.mxu1 %v3377_v57  ;;  %v3378_v61 = vmax.f32 %v3362_v53, 0.0 }
 0x9ae   : > { %v3335_v49 = vpop.f32.mrf.mxu0  ;;  %3511 = vmatmul.mubr.f32.gmra.mxu1 %v3376_v45 }
 0x9af   : > { %v3379_v47 = vmax.f32 %v3363_v33, 0.0  ;;  %v3336_v35 = vadd.f32 %v3335_v49, %v4945_v41  ;;  %v3364_v50 = vadd.f32 %v5042_v8, %v3334_v4  ;;  %v3542_v41 = vpop.permute.xlu1 %3541 }
 0x9b1   : > { %v3365_v60 = vadd.f32 %v5046_v10, %v3336_v35  ;;  %3515 = vmatprep.mubr.f32.mxu1 %v3379_v47  ;;  %v3380_v11 = vmax.f32 %v3364_v50, 0.0  ;;  %v3532_v10 = vpop.permute.xlu0 %3531 }
 0x9b2   : > { %3516 = vmatmul.mubr.f32.gmra.mxu1 %v3378_v61 }
 0x9b3   : > { %v3381_v37 = vmax.f32 %v3365_v60, 0.0  ;;  %v3547_v16 = vpop.permute.xlu1 %3546 }
 0x9b5   : > { %3520 = vmatprep.mubr.f32.mxu1 %v3381_v37 }
 0x9b6   : > { %3521 = vmatmul.mubr.f32.gmra.mxu1 %v3380_v11 }
 0x9b7   : > { %v3552_v14 = vpop.permute.xlu1 %3551 }
 0x9bb   : > { %v3557_v1 = vpop.permute.xlu1 %3556 }
 0x9bf   : > { %v3562_v42 = vpop.permute.xlu1 %3561 }
 0x9c3   : > { %v3567_v44 = vpop.permute.xlu1 %3566 }
 0xa5a   : > { %v3861_v38 = vpop.f32.mrf.mxu1 }
 0xa5c   : > { %v3862_v7 = vpop.f32.mrf.mxu1 }
 0xa5d   : > { %v3863_v51 = vadd.f32 %v3862_v7, %v3861_v38 }
 0xa5e   : > { %v3864_v46 = vpop.f32.mrf.mxu1 }
 0xa5f   : > { %v3488_v8 = vadd.f32 %v3863_v51, %v3826_v58 }
 0xa60   : > { %v3865_v13 = vpop.f32.mrf.mxu1 }
 0xa61   : > { %v3569_v0 = vsel %vm3528_vm0, %v3532_v10, %v3488_v8  ;;  %v3866_v36 = vadd.f32 %v3865_v13, %v3864_v46 }
 0xa62   : > { %3577 = vst [vmem:[%s5085_s25] sm:$0xff] %v3569_v0  ;;  %v3867_v15 = vpop.f32.mrf.mxu1 }
 0xa63   : > { %v3493_v48 = vadd.f32 %v3866_v36, %v3826_v58 }
 0xa64   : > { %v3868_v6 = vpop.f32.mrf.mxu1 }
 0xa65   : > { %v3570_v52 = vsel %vm3528_vm0, %v3537_v5, %v3493_v48  ;;  %v3869_v23 = vadd.f32 %v3868_v6, %v3867_v15 }
 0xa66   : > { %3578 = vst [vmem:[%s5085_s25 + $0x8] sm:$0xff] %v3570_v52  ;;  %v3870_v17 = vpop.f32.mrf.mxu1 }
 0xa67   : > { %v3498_v63 = vadd.f32 %v3869_v23, %v3826_v58 }
 0xa68   : > { %v3871_v20 = vpop.f32.mrf.mxu1 }
 0xa69   : > { %v3571_v12 = vsel %vm3528_vm0, %v3542_v41, %v3498_v63  ;;  %v3872_v54 = vadd.f32 %v3871_v20, %v3870_v17 }
 0xa6a   : > { %3579 = vst [vmem:[%s5085_s25 + $0x10] sm:$0xff] %v3571_v12  ;;  %v3873_v26 = vpop.f32.mrf.mxu1 }
 0xa6b   : > { %v3503_v9 = vadd.f32 %v3872_v54, %v3826_v58 }
 0xa6c   : > { %v3874_v21 = vpop.f32.mrf.mxu1 }
 0xa6d   : > { %v3572_v55 = vsel %vm3528_vm0, %v3547_v16, %v3503_v9  ;;  %v3875_v24 = vadd.f32 %v3874_v21, %v3873_v26 }
 0xa6e   : > { %3580 = vst [vmem:[%s5085_s25 + $0x18] sm:$0xff] %v3572_v55  ;;  %v3876_v22 = vpop.f32.mrf.mxu1 }
 0xa6f   : > { %v3508_v19 = vadd.f32 %v3875_v24, %v3826_v58 }
 0xa70   : > { %v3877_v59 = vpop.f32.mrf.mxu1 }
 0xa71   : > { %v3573_v28 = vsel %vm3528_vm0, %v3552_v14, %v3508_v19  ;;  %v3878_v34 = vadd.f32 %v3877_v59, %v3876_v22 }
 0xa72   : > { %3581 = vst [vmem:[%s5085_s25 + $0x20] sm:$0xff] %v3573_v28  ;;  %v3879_v62 = vpop.f32.mrf.mxu1 }
 0xa73   : > { %v3513_v2 = vadd.f32 %v3878_v34, %v3826_v58 }
 0xa74   : > { %v3880_v29 = vpop.f32.mrf.mxu1 }
 0xa75   : > { %v3574_v27 = vsel %vm3528_vm0, %v3557_v1, %v3513_v2  ;;  %v3881_v39 = vadd.f32 %v3880_v29, %v3879_v62 }
 0xa76   : > { %3582 = vst [vmem:[%s5085_s25 + $0x28] sm:$0xff] %v3574_v27  ;;  %v3882_v30 = vpop.f32.mrf.mxu1 }
 0xa77   : > { %v3518_v40 = vadd.f32 %v3881_v39, %v3826_v58 }
 0xa78   : > { %v3883_v43 = vpop.f32.mrf.mxu1 }
 0xa79   : > { %v3575_v25 = vsel %vm3528_vm0, %v3562_v42, %v3518_v40  ;;  %v3884_v31 = vadd.f32 %v3883_v43, %v3882_v30 }
 0xa7a   : > { %3583 = vst [vmem:[%s5085_s25 + $0x30] sm:$0xff] %v3575_v25 }
 0xa7b   : > { %v3523_v56 = vadd.f32 %v3884_v31, %v3826_v58 }
 0xa7d   : > { %v3576_v57 = vsel %vm3528_vm0, %v3567_v44, %v3523_v56 }
 0xa7e   : > { %3584 = vst [vmem:[%s5085_s25 + $0x38] sm:$0xff] %v3576_v57 }
 0xa7f PF: > { %s37_s26 = sadd.s32 1, %s4480_s26  }
 0xa80   : > { %p34_p6 = scmp.ge.s32.totalorder %s37_s26, 4  }
 0xa82   :  { %36 = sbr.rel (!%p34_p6) target bundleno = 12 (0xc), region = 179 }
 0xa87   :  { %3607 = vsyncpa [#allocation4], 1 }
 0xa88   :  { %3609 = vsyncpa [#allocation4 + $0x1], 1 }
 0xa89   :  { %3610 = vsyncpa [#allocation6], 1 }
 0xa8a   :  { %3611 = vsyncpa [#allocation9], 1 }
 0xa8b   :  { %3612 = vsyncpa [#allocation12], 1 }
 0xa8c   :  { %3613 = vsyncpa [#allocation15], 1 }
 0xa8d   :  { %3614 = vsyncpa [#allocation18], 1 }
 0xa8e   :  { %3615 = vsyncpa [#allocation21], 1 }
 0xa8f   :  { %3616 = vsyncpa [#allocation24], 1 }

</bundles_post_ra>
